<compile_context>
chip_gen: v7x
topology: tpu7x:2x2x1
jax: 0.10.0
libtpu: 0.0.40
codegen_flags: <defaults>
</compile_context>

<pallas_src>
import functools
import math
from typing import NamedTuple

import numpy as np
import jax
import jax.numpy as jnp
from jax.experimental import pallas as pl
from jax.experimental.pallas import tpu as pltpu

# ----------------------------- hyper-parameters --------------------------------
HIDDEN = 32                 # siamese.hidden_channels
HALF = HIDDEN // 2          # AverageConformerESAN.hidden_channels
NUM_FILTERS = 32
NUM_GAUSSIANS = 16
NUM_INTERACTIONS = 2
CUTOFF = 10.0
MAX_Z = 100
LN2 = math.log(2.0)

RBF_OFFSETS = np.linspace(0.0, CUTOFF, NUM_GAUSSIANS).astype(np.float32)
RBF_COEFF = float(-0.5 / (RBF_OFFSETS[1] - RBF_OFFSETS[0]) ** 2)


def _round_up(x, m):
    return ((x + m - 1) // m) * m


def _ssp(x):
    """Shifted softplus, numerically stable (VPU/EUP ops, f32)."""
    return jnp.maximum(x, 0.0) + jnp.log1p(jnp.exp(-jnp.abs(x))) - LN2


# ----------------------------- fused Pallas kernel ------------------------------
def _esan_kernel(pairs_ref, h0_ref, wb_ref, fb_ref, o_ref, *,
                 coeff, a, half, num_interactions, num_filters, woffs, foffs):
    """Both SchNet passes (branch-stacked channels) + fused aggregation epilogue.

    pairs_ref : [2, P] f32   row 0 = pair distance, row 1 = cosine-cutoff * valid mask
    h0_ref    : [2H, N] f32  branch-stacked initial node embeddings (atoms on lanes)
    wb_ref    : bf16 blob    all matmul weights / selector / aggregation matrices
    fb_ref    : f32 blob     all biases, RBF offsets, output bias
    o_ref     : [HALF, n_mol] f32
    """
    f32 = jnp.float32
    bf16 = jnp.bfloat16

    def wslice(name):
        r0, r, c0, c = woffs[name]
        return wb_ref[r0:r0 + r, c0:c0 + c]

    def fslice(name):
        r0, r, c0, c = foffs[name]
        return fb_ref[r0:r0 + r, c0:c0 + c]

    dist = pairs_ref[0:1, :]                       # [1, P]
    cosw = pairs_ref[1:2, :]                       # [1, P] (already masked on host)

    # Gaussian RBF expansion, lane-dense over all (receiver-offset, sender) pairs.
    diff = dist - fslice("offsets")                # [G, P]
    rbf = jnp.exp(coeff * diff * diff).astype(bf16)

    # Filter MLP for all (interaction, branch) blocks at once (independent of h,
    # hoisted out of the interaction loop); "-log2" of the softplus folded into fb2.
    t1 = jnp.dot(wslice("fW1"), rbf, preferred_element_type=f32) + fslice("fb1")
    t1 = jnp.maximum(t1, 0.0) + jnp.log1p(jnp.exp(-jnp.abs(t1)))          # softplus
    w_all = (jnp.dot(wslice("fW2"), t1.astype(bf16), preferred_element_type=f32)
             + fslice("fb2")) * cosw               # [2*T*F, P]

    S2 = wslice("S2")                              # [P, N] bf16 receiver-sum selector
    hT = h0_ref[...]                               # [2*HIDDEN, N] f32
    F2 = 2 * num_filters
    for t in range(num_interactions):              # statically unrolled (T = 2)
        w_t = w_all[t * F2:(t + 1) * F2, :]                                # [2F, P]
        x = jnp.dot(wslice(f"cW1_{t}"), hT.astype(bf16),
                    preferred_element_type=f32)                            # [2F, N]
        # Replicate sender features over the `a` receiver offsets (lane concat —
        # no O(N^3) helper matmul).
        x_rep = jnp.concatenate([x] * a, axis=1)                           # [2F, P]
        prod = (w_t * x_rep).astype(bf16)
        m = jnp.dot(prod, S2, preferred_element_type=f32)                  # [2F, N]
        m = _ssp(jnp.dot(wslice(f"cW2_{t}"), m.astype(bf16),
                         preferred_element_type=f32) + fslice(f"cb2_{t}"))
        m = jnp.dot(wslice(f"iW_{t}"), m.astype(bf16),
                    preferred_element_type=f32) + fslice(f"ib_{t}")
        hT = hT + m

    # Readout head truncated at lin1 + act (hidden -> hidden // 2), no sum.
    hout = _ssp(jnp.dot(wslice("finW"), hT.astype(bf16),
                        preferred_element_type=f32) + fslice("finb"))      # [2*HALF, N]

    # Fused aggregation epilogue.  A1s / A1i are zero on padded lanes and on the other
    # branch's lanes, so the quarantined bias-driven values never reach the output.
    agg_s = jnp.dot(hout[0:half, :].astype(bf16), wslice("A1s"),
                    preferred_element_type=f32)                            # [HALF, n_mol]
    agg_i = jnp.dot(hout[half:2 * half, :].astype(bf16), wslice("A1i"),
                    preferred_element_type=f32)
    o_ref[...] = (jnp.dot(wslice("dsW"), agg_s.astype(bf16),
                          preferred_element_type=f32) + agg_i + fslice("bout"))


# ----------------------------- blob packing helpers -----------------------------
def _blockdiag_list(mats):
    rows = sum(m.shape[0] for m in mats)
    cols = sum(m.shape[1] for m in mats)
    out = jnp.zeros((rows, cols), mats[0].dtype)
    r = c = 0
    for m in mats:
        out = out.at[r:r + m.shape[0], c:c + m.shape[1]].set(m)
        r += m.shape[0]
        c += m.shape[1]
    return out


def _pack_blob(entries, width, dtype):
    """Stack (name, 2-D array) entries row-wise into one [R, width] blob.

    Returns (blob, offsets) where offsets[name] = (row0, rows, col0, cols)."""
    parts, offs, r0 = [], {}, 0
    for name, arr in entries:
        arr = jnp.asarray(arr).astype(dtype)
        rows, cols = arr.shape
        assert cols <= width, (name, arr.shape, width)
        prows = _round_up(rows, 8)
        buf = jnp.zeros((prows, width), dtype).at[:rows, :cols].set(arr)
        parts.append(buf)
        offs[name] = (r0, rows, 0, cols)
        r0 += prows
    return jnp.concatenate(parts, axis=0), offs


# ----------------------------- index glue (host) --------------------------------
def get_per_positions_index(batch, conformers_index):
    """Exact re-implementation of the reference index construction (numpy)."""
    batch = np.asarray(batch)
    conformers_index = np.asarray(conformers_index)
    per_position_index = [[] for _ in range(int(batch.max()) + 1)]
    per_conformer_index = [[] for _ in range(int(conformers_index.max()) + 1)]
    pos_counter = 0
    last_mol_index = conformers_index[0]
    for atom_idx, conformer_idx in enumerate(batch):
        mol_idx = conformers_index[conformer_idx]
        positions = per_position_index[conformer_idx]
        if mol_idx != last_mol_index:
            last_mol_index = mol_idx
        elif len(positions) == 0 and pos_counter != 0:
            pos_counter -= len(per_position_index[batch[atom_idx - 1]])
            if len(per_conformer_index[mol_idx]) == 0:
                per_conformer_index[mol_idx] = [
                    mol_idx for _ in range(len(per_position_index[batch[atom_idx - 1]]))
                ]
        positions.append(pos_counter)
        per_position_index[conformer_idx] = positions
        pos_counter += 1
    per_position_index = [it for sub in per_position_index for it in sub]
    per_conformer_index = [it for sub in per_conformer_index for it in sub]
    return (np.array(per_position_index, dtype=np.int32),
            np.array(per_conformer_index, dtype=np.int32))


# ----------------------------- parameter init -----------------------------------
def init_schnet_params(key):
    ks = jax.random.split(key, 8)
    s = 0.1
    T, G, F, H = NUM_INTERACTIONS, NUM_GAUSSIANS, NUM_FILTERS, HIDDEN
    return {
        "embedding": jax.random.normal(ks[0], (MAX_Z, H)) * s,
        "fW1": jax.random.normal(ks[1], (T, G, F)) * s,
        "fb1": jnp.zeros((T, 1, F)),
        "fW2": jax.random.normal(ks[2], (T, F, F)) * s,
        "fb2": jnp.zeros((T, 1, F)),
        "cW1": jax.random.normal(ks[3], (T, H, F)) * s,
        "cW2": jax.random.normal(ks[4], (T, F, H)) * s,
        "cb2": jnp.zeros((T, 1, H)),
        "iW": jax.random.normal(ks[5], (T, H, H)) * s,
        "ib": jnp.zeros((T, 1, H)),
        "finW": jax.random.normal(ks[6], (H, HALF)) * s,
        "finb": jnp.zeros((1, HALF)),
    }


# ----------------------------- jitted forward ------------------------------------
class _Cfg(NamedTuple):
    n_atoms: int
    n_avg: int
    n_conf: int
    n_mol: int
    n_graph: int
    a: int
    N: int
    P: int


def _forward_impl(params, z, pos, ppi, lane_s, lane_i, mol_s, mol_i, real, counts, cfg):
    f32, bf16 = jnp.float32, jnp.bfloat16
    T = NUM_INTERACTIONS
    N, P, a, n_graph, n_mol, n_avg = cfg.N, cfg.P, cfg.a, cfg.n_graph, cfg.n_mol, cfg.n_avg

    # ---- averaged species / coordinates (MeanAggregation over per_position_index) --
    A_mean = (ppi[None, :] == jnp.arange(n_avg)[:, None]).astype(f32)     # [n_avg, n_atoms]
    A_mean = A_mean / jnp.maximum(A_mean.sum(axis=1, keepdims=True), 1.0)
    # round before the int cast (mean of identical ints may be 5.9999995)
    z_avg = jnp.round(A_mean @ z.astype(f32)).astype(jnp.int32)           # [n_avg]
    pos_avg = A_mean @ pos                                                # [n_avg, 3]

    # ---- scatter both branches' atoms into the per-graph padded lane layout --------
    z_lane = jnp.zeros((N,), jnp.int32).at[lane_s].set(z).at[lane_i].set(z_avg)
    pos_lane = jnp.zeros((N, 3), f32).at[lane_s].set(pos).at[lane_i].set(pos_avg)

    # ---- per-graph dense pairwise distances & masked cosine-cutoff envelope --------
    pos_g = pos_lane.reshape(n_graph, a, 3)
    d2 = jnp.sum((pos_g[:, :, None, :] - pos_g[:, None, :, :]) ** 2, axis=-1)
    d = jnp.sqrt(jnp.maximum(d2, 0.0))                                    # [ng, a_i, a_j]
    real_g = real.reshape(n_graph, a)
    valid = (real_g[:, :, None] & real_g[:, None, :]
             & (~jnp.eye(a, dtype=bool))[None] & (d < CUTOFF))
    cosw = 0.5 * (jnp.cos(d * (math.pi / CUTOFF)) + 1.0) * valid
    # pair index p = i * N + (g * a + j)   (receiver offset i major, sender lane minor)
    pairs = jnp.stack([jnp.transpose(d, (1, 0, 2)).reshape(P),
                       jnp.transpose(cosw, (1, 0, 2)).reshape(P)]).astype(f32)   # [2, P]

    # ---- initial node embeddings, branch-stacked channel layout [2H, N] ------------
    is_s = (mol_s >= 0)[:, None]
    is_i = (mol_i >= 0)[:, None]
    h0 = jnp.concatenate(
        [(params["siamese"]["embedding"][z_lane] * is_s).T,
         (params["info_sharing"]["embedding"][z_lane] * is_i).T], axis=0).astype(f32)

    # ---- receiver-sum selector and per-branch, per-molecule aggregation matrices ---
    p_arr = jnp.arange(P)
    r_of_p = ((p_arr % N) // a) * a + (p_arr // N)
    S2 = (r_of_p[:, None] == jnp.arange(N)[None, :])                      # [P, N]
    A1s = (mol_s[:, None] == jnp.arange(n_mol)[None, :])                  # [N, n_mol]
    A1i = (mol_i[:, None] == jnp.arange(n_mol)[None, :])

    # ---- packed bf16 weight blob (block-diagonal over the branch axis) -------------
    ps, pi = params["siamese"], params["info_sharing"]
    fW1 = jnp.concatenate([p["fW1"][t].T for t in range(T) for p in (ps, pi)], axis=0)
    fb1 = jnp.concatenate([p["fb1"][t].reshape(-1) for t in range(T) for p in (ps, pi)])
    # fold softplus' -log2 of the filter net into fb2:  fW2^T @ (sp(x) - ln2) + fb2
    fb2 = jnp.concatenate([(p["fb2"][t].reshape(-1) - LN2 * p["fW2"][t].sum(axis=0))
                           for t in range(T) for p in (ps, pi)])
    fW2 = _blockdiag_list([p["fW2"][t].T for t in range(T) for p in (ps, pi)])

    wb_entries = [("fW1", fW1), ("fW2", fW2)]
    for t in range(T):
        wb_entries += [
            (f"cW1_{t}", _blockdiag_list([ps["cW1"][t].T, pi["cW1"][t].T])),
            (f"cW2_{t}", _blockdiag_list([ps["cW2"][t].T, pi["cW2"][t].T])),
            (f"iW_{t}", _blockdiag_list([ps["iW"][t].T, pi["iW"][t].T])),
        ]
    wb_entries += [
        ("finW", _blockdiag_list([ps["finW"].T, pi["finW"].T])),
        ("dsW", params["ds_W"]),
        ("S2", S2),
        ("A1s", A1s),
        ("A1i", A1i),
    ]
    w_width = max(2 * NUM_INTERACTIONS * NUM_FILTERS, 2 * HIDDEN, N, n_mol)
    wblob, woffs = _pack_blob(wb_entries, w_width, bf16)

    # ---- packed f32 bias blob (one column per bias vector, lane-packed) ------------
    bias_entries = [("fb1", fb1), ("fb2", fb2)]
    for t in range(T):
        bias_entries += [
            (f"cb2_{t}", jnp.concatenate([ps["cb2"][t].reshape(-1), pi["cb2"][t].reshape(-1)])),
            (f"ib_{t}", jnp.concatenate([ps["ib"][t].reshape(-1), pi["ib"][t].reshape(-1)])),
        ]
    bias_entries += [
        ("finb", jnp.concatenate([ps["finb"].reshape(-1), pi["finb"].reshape(-1)])),
        ("offsets", jnp.asarray(RBF_OFFSETS, f32)),
    ]
    fb_rows = _round_up(max(max(v.shape[0] for _, v in bias_entries), HALF), 8)
    cols, foffs = [], {}
    for col_idx, (name, v) in enumerate(bias_entries):
        col = jnp.zeros((fb_rows, 1), f32).at[:v.shape[0], 0].set(v.astype(f32))
        cols.append(col)
        foffs[name] = (0, int(v.shape[0]), col_idx, 1)
    # DeepSets bias folded with per-molecule conformer counts (linear applied per
    # conformer before the sum over conformers == W @ sum + count * b).
    bout = params["ds_b"].reshape(HALF, 1) * counts.reshape(1, n_mol)
    bout_block = jnp.zeros((fb_rows, n_mol), f32).at[:HALF, :].set(bout)
    foffs["bout"] = (0, HALF, len(bias_entries), n_mol)
    fblob = jnp.concatenate(cols + [bout_block], axis=1)

    # ---- single fused pallas_call (no grid: one step, everything resident in VMEM) -
    kernel = functools.partial(
        _esan_kernel, coeff=RBF_COEFF, a=a, half=HALF,
        num_interactions=NUM_INTERACTIONS, num_filters=NUM_FILTERS,
        woffs=woffs, foffs=foffs)
    out = pl.pallas_call(
        kernel,
        out_shape=jax.ShapeDtypeStruct((HALF, n_mol), f32),
        compiler_params=pltpu.CompilerParams(vmem_limit_bytes=32 * 1024 * 1024),
    )(pairs, h0, wblob, fblob)

    return out.T                                                          # [n_mol, HALF]


_forward_jit = jax.jit(_forward_impl, static_argnames=("cfg",))


# ----------------------------- public forward -----------------------------------
def average_conformer_esan_forward(params, z, pos, batch, conformers_index,
                                   per_position_index, per_conformer_index):
    # -------- host-side static structure (numpy; no device syncs inside jit) -------
    batch_np = np.asarray(jax.device_get(batch)).astype(np.int64)
    ci_np = np.asarray(jax.device_get(conformers_index)).astype(np.int64)
    ppi_np = np.asarray(jax.device_get(per_position_index)).astype(np.int64)
    pci_np = np.asarray(jax.device_get(per_conformer_index)).astype(np.int64)

    n_atoms = int(batch_np.shape[0])
    n_conf = int(batch_np.max()) + 1
    n_mol = int(ci_np.max()) + 1
    n_avg = int(ppi_np.max()) + 1

    sizes_s = np.bincount(batch_np, minlength=n_conf)
    sizes_i = np.bincount(pci_np, minlength=n_mol)
    a = int(max(sizes_s.max(), sizes_i.max()))
    n_graph = n_conf + n_mol
    N = n_graph * a
    P = a * N

    def ranks(idx, nseg):
        r = np.zeros(idx.shape[0], np.int64)
        c = np.zeros(nseg, np.int64)
        for k, g in enumerate(idx):
            r[k] = c[g]
            c[g] += 1
        return r

    lane_s = batch_np * a + ranks(batch_np, n_conf)                # siamese atom -> lane
    lane_i = (n_conf + pci_np) * a + ranks(pci_np, n_mol)          # averaged atom -> lane

    mol_s = np.full(N, -1, np.int32)
    mol_s[lane_s] = ci_np[batch_np]
    mol_i = np.full(N, -1, np.int32)
    mol_i[lane_i] = pci_np
    real = np.zeros(N, bool)
    real[lane_s] = True
    real[lane_i] = True
    counts = np.bincount(ci_np, minlength=n_mol).astype(np.float32)   # conformers / mol

    cfg = _Cfg(n_atoms=n_atoms, n_avg=n_avg, n_conf=n_conf, n_mol=n_mol,
               n_graph=n_graph, a=a, N=N, P=P)

    return _forward_jit(
        params,
        jnp.asarray(z, jnp.int32),
        jnp.asarray(pos, jnp.float32),
        jnp.asarray(ppi_np, jnp.int32),
        jnp.asarray(lane_s, jnp.int32),
        jnp.asarray(lane_i, jnp.int32),
        jnp.asarray(mol_s, jnp.int32),
        jnp.asarray(mol_i, jnp.int32),
        jnp.asarray(real),
        jnp.asarray(counts, jnp.float32),
        cfg=cfg,
    )


# ----------------------------- main ---------------------------------------------
if __name__ == "__main__":
    key = jax.random.PRNGKey(0)
    k1, k2, k3, k4, k5, k6 = jax.random.split(key, 6)

    n_mol = 2
    conf_per_mol = 2
    atoms_per_mol = 8
    n_conf = n_mol * conf_per_mol

    conformers_index = np.repeat(np.arange(n_mol), conf_per_mol)      # conformer -> mol
    batch = np.repeat(np.arange(n_conf), atoms_per_mol)               # atom -> conformer

    # Atomic numbers identical across conformers of the same molecule.
    z_mol = jax.random.randint(k1, (n_mol, atoms_per_mol), 1, 10)
    z = jnp.concatenate(
        [z_mol[m] for m in range(n_mol) for _ in range(conf_per_mol)], axis=0
    )

    # Positions: per-molecule base geometry + per-conformer perturbation.
    base = jax.random.normal(k2, (n_mol, atoms_per_mol, 3)) * 2.0
    noise = jax.random.normal(k3, (n_conf, atoms_per_mol, 3)) * 0.1
    pos = (base[conformers_index] + noise).reshape(-1, 3).astype(jnp.float32)

    per_position_index, per_conformer_index = get_per_positions_index(
        batch, conformers_index
    )

    params = {
        "siamese": init_schnet_params(k4),
        "info_sharing": init_schnet_params(k5),
        "ds_W": jax.random.normal(k6, (HALF, HALF)) * 0.1,
        "ds_b": jnp.zeros((HALF,)),
    }

    out = average_conformer_esan_forward(
        params,
        jnp.asarray(z, dtype=jnp.int32),
        pos,
        jnp.asarray(batch, dtype=jnp.int32),
        jnp.asarray(conformers_index, dtype=jnp.int32),
        jnp.asarray(per_position_index, dtype=jnp.int32),
        jnp.asarray(per_conformer_index, dtype=jnp.int32),
    )
    jax.block_until_ready(out)
    assert out.shape == (n_mol, HALF) and out.dtype == jnp.float32
    print("KERNEL_OK")
</pallas_src>

<mosaic_0001>
module attributes {stable_mosaic.version = 11 : i64} {
  func.func @_esan_kernel(%arg0: memref<2x384xf32, #tpu.memory_space<vmem>>, %arg1: memref<64x48xf32, #tpu.memory_space<vmem>>, %arg2: memref<1168x128xbf16, #tpu.memory_space<vmem>>, %arg3: memref<128x10xf32, #tpu.memory_space<vmem>>, %arg4: memref<16x2xf32, #tpu.memory_space<vmem>>) attributes {dimension_semantics = [], scalar_prefetch = 0 : i64, scratch_operands = 0 : i64, tpu.core_type = #tpu.core_type<tc>} {
    %c0 = arith.constant 0 : index
    %c0_0 = arith.constant 0 : index
    %0 = vector.load %arg0[%c0, %c0_0] : memref<2x384xf32, #tpu.memory_space<vmem>>, vector<1x384xf32>
    %c1 = arith.constant 1 : index
    %c0_1 = arith.constant 0 : index
    %1 = vector.load %arg0[%c1, %c0_1] : memref<2x384xf32, #tpu.memory_space<vmem>>, vector<1x384xf32>
    %c0_2 = arith.constant 0 : index
    %c7 = arith.constant 7 : index
    %2 = vector.load %arg3[%c0_2, %c7] : memref<128x10xf32, #tpu.memory_space<vmem>>, vector<16x1xf32>
    %3 = vector.broadcast %0 : vector<1x384xf32> to vector<16x384xf32>
    %4 = vector.broadcast %2 : vector<16x1xf32> to vector<16x384xf32>
    %5 = arith.subf %3, %4 : vector<16x384xf32>
    %cst = arith.constant -1.12499988 : f32
    %6 = vector.broadcast %cst : f32 to vector<16x384xf32>
    %7 = arith.mulf %6, %5 : vector<16x384xf32>
    %8 = arith.mulf %7, %5 : vector<16x384xf32>
    %9 = math.exp %8 : vector<16x384xf32>
    %10 = arith.truncf %9 : vector<16x384xf32> to vector<16x384xbf16>
    %c0_3 = arith.constant 0 : index
    %c0_4 = arith.constant 0 : index
    %11 = vector.load %arg2[%c0_3, %c0_4] : memref<1168x128xbf16, #tpu.memory_space<vmem>>, vector<128x16xbf16>
    %cst_5 = arith.constant dense<0.000000e+00> : vector<128x384xf32>
    %12 = tpu.matmul %11, %10, %cst_5 {dimension_numbers = #tpu.dot_dimension_numbers<[1], [0], [0], [1], [0, 0, 1, 1], [], []>} : vector<128x16xbf16>, vector<16x384xbf16>, vector<128x384xf32> -> vector<128x384xf32>
    %c0_6 = arith.constant 0 : index
    %c0_7 = arith.constant 0 : index
    %13 = vector.load %arg3[%c0_6, %c0_7] : memref<128x10xf32, #tpu.memory_space<vmem>>, vector<128x1xf32>
    %14 = vector.broadcast %13 : vector<128x1xf32> to vector<128x384xf32>
    %15 = arith.addf %12, %14 : vector<128x384xf32>
    %cst_8 = arith.constant 0.000000e+00 : f32
    %16 = vector.broadcast %cst_8 : f32 to vector<128x384xf32>
    %17 = arith.maximumf %15, %16 : vector<128x384xf32>
    %18 = math.absf %15 : vector<128x384xf32>
    %cst_9 = arith.constant 0.000000e+00 : f32
    %19 = vector.broadcast %cst_9 : f32 to vector<128x384xf32>
    %20 = arith.subf %19, %18 : vector<128x384xf32>
    %21 = math.exp %20 : vector<128x384xf32>
    %22 = math.log1p %21 : vector<128x384xf32>
    %23 = arith.addf %17, %22 : vector<128x384xf32>
    %c128 = arith.constant 128 : index
    %c0_10 = arith.constant 0 : index
    %24 = vector.load %arg2[%c128, %c0_10] : memref<1168x128xbf16, #tpu.memory_space<vmem>>, vector<128x128xbf16>
    %25 = arith.truncf %23 : vector<128x384xf32> to vector<128x384xbf16>
    %cst_11 = arith.constant dense<0.000000e+00> : vector<128x384xf32>
    %26 = tpu.matmul %24, %25, %cst_11 {dimension_numbers = #tpu.dot_dimension_numbers<[1], [0], [0], [1], [0, 0, 1, 1], [], []>} : vector<128x128xbf16>, vector<128x384xbf16>, vector<128x384xf32> -> vector<128x384xf32>
    %c0_12 = arith.constant 0 : index
    %c1_13 = arith.constant 1 : index
    %27 = vector.load %arg3[%c0_12, %c1_13] : memref<128x10xf32, #tpu.memory_space<vmem>>, vector<128x1xf32>
    %28 = vector.broadcast %27 : vector<128x1xf32> to vector<128x384xf32>
    %29 = arith.addf %26, %28 : vector<128x384xf32>
    %30 = vector.broadcast %1 : vector<1x384xf32> to vector<128x384xf32>
    %31 = arith.mulf %29, %30 : vector<128x384xf32>
    %c688 = arith.constant 688 : index
    %c0_14 = arith.constant 0 : index
    %32 = vector.load %arg2[%c688, %c0_14] : memref<1168x128xbf16, #tpu.memory_space<vmem>>, vector<384x48xbf16>
    %c0_15 = arith.constant 0 : index
    %c0_16 = arith.constant 0 : index
    %33 = vector.load %arg1[%c0_15, %c0_16] : memref<64x48xf32, #tpu.memory_space<vmem>>, vector<64x48xf32>
    %34 = vector.extract_strided_slice %31 {offsets = [0, 0], sizes = [64, 384], strides = [1, 1]} : vector<128x384xf32> to vector<64x384xf32>
    %c256 = arith.constant 256 : index
    %c0_17 = arith.constant 0 : index
    %35 = vector.load %arg2[%c256, %c0_17] : memref<1168x128xbf16, #tpu.memory_space<vmem>>, vector<64x64xbf16>
    %36 = arith.truncf %33 : vector<64x48xf32> to vector<64x48xbf16>
    %cst_18 = arith.constant dense<0.000000e+00> : vector<64x48xf32>
    %37 = tpu.matmul %35, %36, %cst_18 {dimension_numbers = #tpu.dot_dimension_numbers<[1], [0], [0], [1], [0, 0, 1, 1], [], []>} : vector<64x64xbf16>, vector<64x48xbf16>, vector<64x48xf32> -> vector<64x48xf32>
    %38 = tpu.concatenate %37, %37, %37, %37, %37, %37, %37, %37 in 1 : vector<64x48xf32>, vector<64x48xf32>, vector<64x48xf32>, vector<64x48xf32>, vector<64x48xf32>, vector<64x48xf32>, vector<64x48xf32>, vector<64x48xf32> -> vector<64x384xf32>
    %39 = arith.mulf %34, %38 : vector<64x384xf32>
    %40 = arith.truncf %39 : vector<64x384xf32> to vector<64x384xbf16>
    %cst_19 = arith.constant dense<0.000000e+00> : vector<64x48xf32>
    %41 = tpu.matmul %40, %32, %cst_19 {dimension_numbers = #tpu.dot_dimension_numbers<[1], [0], [0], [1], [0, 0, 1, 1], [], []>} : vector<64x384xbf16>, vector<384x48xbf16>, vector<64x48xf32> -> vector<64x48xf32>
    %c320 = arith.constant 320 : index
    %c0_20 = arith.constant 0 : index
    %42 = vector.load %arg2[%c320, %c0_20] : memref<1168x128xbf16, #tpu.memory_space<vmem>>, vector<64x64xbf16>
    %43 = arith.truncf %41 : vector<64x48xf32> to vector<64x48xbf16>
    %cst_21 = arith.constant dense<0.000000e+00> : vector<64x48xf32>
    %44 = tpu.matmul %42, %43, %cst_21 {dimension_numbers = #tpu.dot_dimension_numbers<[1], [0], [0], [1], [0, 0, 1, 1], [], []>} : vector<64x64xbf16>, vector<64x48xbf16>, vector<64x48xf32> -> vector<64x48xf32>
    %c0_22 = arith.constant 0 : index
    %c2 = arith.constant 2 : index
    %45 = vector.load %arg3[%c0_22, %c2] : memref<128x10xf32, #tpu.memory_space<vmem>>, vector<64x1xf32>
    %46 = vector.broadcast %45 : vector<64x1xf32> to vector<64x48xf32>
    %47 = arith.addf %44, %46 : vector<64x48xf32>
    %cst_23 = arith.constant 0.000000e+00 : f32
    %48 = vector.broadcast %cst_23 : f32 to vector<64x48xf32>
    %49 = arith.maximumf %47, %48 : vector<64x48xf32>
    %50 = math.absf %47 : vector<64x48xf32>
    %cst_24 = arith.constant 0.000000e+00 : f32
    %51 = vector.broadcast %cst_24 : f32 to vector<64x48xf32>
    %52 = arith.subf %51, %50 : vector<64x48xf32>
    %53 = math.exp %52 : vector<64x48xf32>
    %54 = math.log1p %53 : vector<64x48xf32>
    %55 = arith.addf %49, %54 : vector<64x48xf32>
    %cst_25 = arith.constant 0.693147182 : f32
    %56 = vector.broadcast %cst_25 : f32 to vector<64x48xf32>
    %57 = arith.subf %55, %56 : vector<64x48xf32>
    %c384 = arith.constant 384 : index
    %c0_26 = arith.constant 0 : index
    %58 = vector.load %arg2[%c384, %c0_26] : memref<1168x128xbf16, #tpu.memory_space<vmem>>, vector<64x64xbf16>
    %59 = arith.truncf %57 : vector<64x48xf32> to vector<64x48xbf16>
    %cst_27 = arith.constant dense<0.000000e+00> : vector<64x48xf32>
    %60 = tpu.matmul %58, %59, %cst_27 {dimension_numbers = #tpu.dot_dimension_numbers<[1], [0], [0], [1], [0, 0, 1, 1], [], []>} : vector<64x64xbf16>, vector<64x48xbf16>, vector<64x48xf32> -> vector<64x48xf32>
    %c0_28 = arith.constant 0 : index
    %c3 = arith.constant 3 : index
    %61 = vector.load %arg3[%c0_28, %c3] : memref<128x10xf32, #tpu.memory_space<vmem>>, vector<64x1xf32>
    %62 = vector.broadcast %61 : vector<64x1xf32> to vector<64x48xf32>
    %63 = arith.addf %60, %62 : vector<64x48xf32>
    %64 = arith.addf %33, %63 : vector<64x48xf32>
    %65 = vector.extract_strided_slice %31 {offsets = [64, 0], sizes = [64, 384], strides = [1, 1]} : vector<128x384xf32> to vector<64x384xf32>
    %c448 = arith.constant 448 : index
    %c0_29 = arith.constant 0 : index
    %66 = vector.load %arg2[%c448, %c0_29] : memref<1168x128xbf16, #tpu.memory_space<vmem>>, vector<64x64xbf16>
    %67 = arith.truncf %64 : vector<64x48xf32> to vector<64x48xbf16>
    %cst_30 = arith.constant dense<0.000000e+00> : vector<64x48xf32>
    %68 = tpu.matmul %66, %67, %cst_30 {dimension_numbers = #tpu.dot_dimension_numbers<[1], [0], [0], [1], [0, 0, 1, 1], [], []>} : vector<64x64xbf16>, vector<64x48xbf16>, vector<64x48xf32> -> vector<64x48xf32>
    %69 = tpu.concatenate %68, %68, %68, %68, %68, %68, %68, %68 in 1 : vector<64x48xf32>, vector<64x48xf32>, vector<64x48xf32>, vector<64x48xf32>, vector<64x48xf32>, vector<64x48xf32>, vector<64x48xf32>, vector<64x48xf32> -> vector<64x384xf32>
    %70 = arith.mulf %65, %69 : vector<64x384xf32>
    %71 = arith.truncf %70 : vector<64x384xf32> to vector<64x384xbf16>
    %cst_31 = arith.constant dense<0.000000e+00> : vector<64x48xf32>
    %72 = tpu.matmul %71, %32, %cst_31 {dimension_numbers = #tpu.dot_dimension_numbers<[1], [0], [0], [1], [0, 0, 1, 1], [], []>} : vector<64x384xbf16>, vector<384x48xbf16>, vector<64x48xf32> -> vector<64x48xf32>
    %c512 = arith.constant 512 : index
    %c0_32 = arith.constant 0 : index
    %73 = vector.load %arg2[%c512, %c0_32] : memref<1168x128xbf16, #tpu.memory_space<vmem>>, vector<64x64xbf16>
    %74 = arith.truncf %72 : vector<64x48xf32> to vector<64x48xbf16>
    %cst_33 = arith.constant dense<0.000000e+00> : vector<64x48xf32>
    %75 = tpu.matmul %73, %74, %cst_33 {dimension_numbers = #tpu.dot_dimension_numbers<[1], [0], [0], [1], [0, 0, 1, 1], [], []>} : vector<64x64xbf16>, vector<64x48xbf16>, vector<64x48xf32> -> vector<64x48xf32>
    %c0_34 = arith.constant 0 : index
    %c4 = arith.constant 4 : index
    %76 = vector.load %arg3[%c0_34, %c4] : memref<128x10xf32, #tpu.memory_space<vmem>>, vector<64x1xf32>
    %77 = vector.broadcast %76 : vector<64x1xf32> to vector<64x48xf32>
    %78 = arith.addf %75, %77 : vector<64x48xf32>
    %cst_35 = arith.constant 0.000000e+00 : f32
    %79 = vector.broadcast %cst_35 : f32 to vector<64x48xf32>
    %80 = arith.maximumf %78, %79 : vector<64x48xf32>
    %81 = math.absf %78 : vector<64x48xf32>
    %cst_36 = arith.constant 0.000000e+00 : f32
    %82 = vector.broadcast %cst_36 : f32 to vector<64x48xf32>
    %83 = arith.subf %82, %81 : vector<64x48xf32>
    %84 = math.exp %83 : vector<64x48xf32>
    %85 = math.log1p %84 : vector<64x48xf32>
    %86 = arith.addf %80, %85 : vector<64x48xf32>
    %cst_37 = arith.constant 0.693147182 : f32
    %87 = vector.broadcast %cst_37 : f32 to vector<64x48xf32>
    %88 = arith.subf %86, %87 : vector<64x48xf32>
    %c576 = arith.constant 576 : index
    %c0_38 = arith.constant 0 : index
    %89 = vector.load %arg2[%c576, %c0_38] : memref<1168x128xbf16, #tpu.memory_space<vmem>>, vector<64x64xbf16>
    %90 = arith.truncf %88 : vector<64x48xf32> to vector<64x48xbf16>
    %cst_39 = arith.constant dense<0.000000e+00> : vector<64x48xf32>
    %91 = tpu.matmul %89, %90, %cst_39 {dimension_numbers = #tpu.dot_dimension_numbers<[1], [0], [0], [1], [0, 0, 1, 1], [], []>} : vector<64x64xbf16>, vector<64x48xbf16>, vector<64x48xf32> -> vector<64x48xf32>
    %c0_40 = arith.constant 0 : index
    %c5 = arith.constant 5 : index
    %92 = vector.load %arg3[%c0_40, %c5] : memref<128x10xf32, #tpu.memory_space<vmem>>, vector<64x1xf32>
    %93 = vector.broadcast %92 : vector<64x1xf32> to vector<64x48xf32>
    %94 = arith.addf %91, %93 : vector<64x48xf32>
    %95 = arith.addf %64, %94 : vector<64x48xf32>
    %c640 = arith.constant 640 : index
    %c0_41 = arith.constant 0 : index
    %96 = vector.load %arg2[%c640, %c0_41] : memref<1168x128xbf16, #tpu.memory_space<vmem>>, vector<32x64xbf16>
    %97 = arith.truncf %95 : vector<64x48xf32> to vector<64x48xbf16>
    %cst_42 = arith.constant dense<0.000000e+00> : vector<32x48xf32>
    %98 = tpu.matmul %96, %97, %cst_42 {dimension_numbers = #tpu.dot_dimension_numbers<[1], [0], [0], [1], [0, 0, 1, 1], [], []>} : vector<32x64xbf16>, vector<64x48xbf16>, vector<32x48xf32> -> vector<32x48xf32>
    %c0_43 = arith.constant 0 : index
    %c6 = arith.constant 6 : index
    %99 = vector.load %arg3[%c0_43, %c6] : memref<128x10xf32, #tpu.memory_space<vmem>>, vector<32x1xf32>
    %100 = vector.broadcast %99 : vector<32x1xf32> to vector<32x48xf32>
    %101 = arith.addf %98, %100 : vector<32x48xf32>
    %cst_44 = arith.constant 0.000000e+00 : f32
    %102 = vector.broadcast %cst_44 : f32 to vector<32x48xf32>
    %103 = arith.maximumf %101, %102 : vector<32x48xf32>
    %104 = math.absf %101 : vector<32x48xf32>
    %cst_45 = arith.constant 0.000000e+00 : f32
    %105 = vector.broadcast %cst_45 : f32 to vector<32x48xf32>
    %106 = arith.subf %105, %104 : vector<32x48xf32>
    %107 = math.exp %106 : vector<32x48xf32>
    %108 = math.log1p %107 : vector<32x48xf32>
    %109 = arith.addf %103, %108 : vector<32x48xf32>
    %cst_46 = arith.constant 0.693147182 : f32
    %110 = vector.broadcast %cst_46 : f32 to vector<32x48xf32>
    %111 = arith.subf %109, %110 : vector<32x48xf32>
    %112 = vector.extract_strided_slice %111 {offsets = [0, 0], sizes = [16, 48], strides = [1, 1]} : vector<32x48xf32> to vector<16x48xf32>
    %113 = arith.truncf %112 : vector<16x48xf32> to vector<16x48xbf16>
    %c1072 = arith.constant 1072 : index
    %c0_47 = arith.constant 0 : index
    %114 = vector.load %arg2[%c1072, %c0_47] : memref<1168x128xbf16, #tpu.memory_space<vmem>>, vector<48x2xbf16>
    %cst_48 = arith.constant dense<0.000000e+00> : vector<16x2xf32>
    %115 = tpu.matmul %113, %114, %cst_48 {dimension_numbers = #tpu.dot_dimension_numbers<[1], [0], [0], [1], [0, 0, 1, 1], [], []>} : vector<16x48xbf16>, vector<48x2xbf16>, vector<16x2xf32> -> vector<16x2xf32>
    %116 = vector.extract_strided_slice %111 {offsets = [16, 0], sizes = [16, 48], strides = [1, 1]} : vector<32x48xf32> to vector<16x48xf32>
    %117 = arith.truncf %116 : vector<16x48xf32> to vector<16x48xbf16>
    %c1120 = arith.constant 1120 : index
    %c0_49 = arith.constant 0 : index
    %118 = vector.load %arg2[%c1120, %c0_49] : memref<1168x128xbf16, #tpu.memory_space<vmem>>, vector<48x2xbf16>
    %cst_50 = arith.constant dense<0.000000e+00> : vector<16x2xf32>
    %119 = tpu.matmul %117, %118, %cst_50 {dimension_numbers = #tpu.dot_dimension_numbers<[1], [0], [0], [1], [0, 0, 1, 1], [], []>} : vector<16x48xbf16>, vector<48x2xbf16>, vector<16x2xf32> -> vector<16x2xf32>
    %c672 = arith.constant 672 : index
    %c0_51 = arith.constant 0 : index
    %120 = vector.load %arg2[%c672, %c0_51] : memref<1168x128xbf16, #tpu.memory_space<vmem>>, vector<16x16xbf16>
    %121 = arith.truncf %115 : vector<16x2xf32> to vector<16x2xbf16>
    %cst_52 = arith.constant dense<0.000000e+00> : vector<16x2xf32>
    %122 = tpu.matmul %120, %121, %cst_52 {dimension_numbers = #tpu.dot_dimension_numbers<[1], [0], [0], [1], [0, 0, 1, 1], [], []>} : vector<16x16xbf16>, vector<16x2xbf16>, vector<16x2xf32> -> vector<16x2xf32>
    %123 = arith.addf %122, %119 : vector<16x2xf32>
    %c0_53 = arith.constant 0 : index
    %c8 = arith.constant 8 : index
    %124 = vector.load %arg3[%c0_53, %c8] : memref<128x10xf32, #tpu.memory_space<vmem>>, vector<16x2xf32>
    %125 = arith.addf %123, %124 : vector<16x2xf32>
    %c0_54 = arith.constant 0 : index
    %c0_55 = arith.constant 0 : index
    %126 = vector.load %arg4[%c0_54, %c0_55] : memref<16x2xf32, #tpu.memory_space<vmem>>, vector<16x2xf32>
    tpu.vector_store %arg4[%c0_54, %c0_55], %125 {strides = array<i32>} : memref<16x2xf32, #tpu.memory_space<vmem>>, vector<16x2xf32>,
    return
  }
}

</mosaic_0001>

<bundles_post_ra>
// kernel: _forward_impl.1
= control target key start
LH: loop header
LB: loop body
LE: loop exit
PB: predicated region body
PF: predicated region fallthrough
CT: control target
= control target key end

     0   :  { %v5068_v0 = vmov 7   ;;  %v24_v2 = vlaneseq  ;;  %v7921_v13 = vmov 0   ;;  %vm234_vm0 = vcmask 130048   ;;  %s5072_s18 = smov 96   ;;  %s5073_s19 = smov 16   ;;  %s7916_s3 = inlined_call_operand.vmem [shape: f32[128,10], index: 3, kind: input, shape index: {}]   ;;  %s7917_s0 = inlined_call_operand.vmem [shape: f32[2,384], index: 0, kind: input, shape index: {}]   ;;  %s7918_s2 = inlined_call_operand.vmem [shape: bf16[1168,128], index: 2, kind: input, shape index: {}]   ;;  %s7919_s1 = inlined_call_operand.vmem [shape: f32[64,48], index: 1, kind: input, shape index: {}]   ;;  %s7920_s4 = inlined_call_operand.vmem [shape: f32[16,2], index: 4, kind: output, shape index: {}]  }
   0x1   :  { %4635 = vset.pattern.permute.xlu0 %v5068_v0  ;;  %v21_v1 = vld [vmem:[%s7916_s3] sm:$0xff]  ;;  %v22_v3 = vld [vmem:[%s7916_s3 + $0x8] sm:$0xff]  ;;  %291 = vmatprep.mubr.bf16.mxu0 %v7921_v13  ;;  %v101_v14 = vld [vmem:[%s7916_s3 + $0x18] sm:$0xff]  ;;  %s5074_s22 = smov 64   ;;  %s5075_s25 = smov 48  }
   0x2   :  { %41 = vperm.xlu0 %4635, %v21_v1   ;;  %v25_v4 = vshrl.u32 %v24_v2, 7  ;;  %v4053_v5 = vld [vmem:[%s7917_s0 + $0x1] ss:$2 sm:$0x7]  ;;  %4636 = vset.pattern.permute.xlu1 %v7921_v13  ;;  %v100_v15 = vld [vmem:[%s7916_s3 + $0x10] sm:$0xff]  ;;  %v103_v17 = vld [vmem:[%s7916_s3 + $0x28] sm:$0xff] }
   0x3   :  { %v5129_v12 = vld [vmem:[%s7918_s2] sm:$0xff]   ;;  %116 = vperm.xlu1 %4636, %v21_v1   ;;  %v104_v18 = vld [vmem:[%s7916_s3 + $0x30] sm:$0xff]  ;;  %v105_v19 = vld [vmem:[%s7916_s3 + $0x38] sm:$0xff]  ;;  %s5076_s29 = smov 112   ;;  %s5077_s14 = smov 32  }
   0x4   :  { %v26_v6 = vsub.s32 0, %v25_v4  ;;  %v30_v7 = vsub.s32 1, %v25_v4  ;;  %v34_v8 = vsub.s32 2, %v25_v4  ;;  %4387 = vmatprep.mubr.msk.bf16.mxu1 %vm234_vm0, %v5129_v12  ;;  %v102_v16 = vld [vmem:[%s7916_s3 + $0x20] sm:$0xff]  ;;  %v107_v21 = vld [vmem:[%s7916_s3 + $0x48] sm:$0xff]  ;;  %v108_v22 = vld [vmem:[%s7916_s3 + $0x50] sm:$0xff] }
   0x5   :  { %v106_v20 = vld [vmem:[%s7916_s3 + $0x40] sm:$0xff]  ;;  %v109_v23 = vld [vmem:[%s7916_s3 + $0x58] sm:$0xff]  ;;  %v111_v25 = vld [vmem:[%s7916_s3 + $0x68] sm:$0xff]  ;;  %s5078_s24 = smov 80  }
   0x6   :  { %46 = vperm.xlu0 %4635, %v22_v3   ;;  %v5120_v9 = vrot.slane %v4053_v5, %v26_v6  ;;  %v5122_v10 = vrot.slane %v4053_v5, %v30_v7  ;;  %v5124_v11 = vrot.slane %v4053_v5, %v34_v8  ;;  %v110_v24 = vld [vmem:[%s7916_s3 + $0x60] sm:$0xff]  ;;  %v112_v26 = vld [vmem:[%s7916_s3 + $0x70] sm:$0xff]  ;;  %v113_v27 = vld [vmem:[%s7916_s3 + $0x78] sm:$0xff] }
   0x7   :  { %121 = vperm.xlu1 %4636, %v22_v3   ;;  %v18_v28 = vld [vmem:[%s7917_s0] ss:$2 sm:$0x7]  ;;  %v4653_v3 = vld [vmem:[%s7918_s2 + $0x8] sm:$0xff]   ;;  %v4654_v4 = vld [vmem:[%s7918_s2 + $0x10] sm:$0xff]  }
   0x8   :  { %7942 = vst [vmem:[#allocation2_spill] sm:$0xff] %v5120_v9  ;;  %7943 = vst [vmem:[#allocation3_spill] sm:$0xff] %v5122_v10  ;;  %v27_v29 = vrot.slane %v18_v28, %v26_v6  ;;  %v31_v30 = vrot.slane %v18_v28, %v30_v7  ;;  %v35_v31 = vrot.slane %v18_v28, %v34_v8  ;;  %v4655_v5 = vld [vmem:[%s7918_s2 + $0x18] sm:$0xff]   ;;  %v4656_v6 = vld [vmem:[%s7918_s2 + $0x20] sm:$0xff]  }
   0x9   :  { %7944 = vst [vmem:[#allocation4_spill] sm:$0xff] %v5124_v11  ;;  %v4657_v7 = vld [vmem:[%s7918_s2 + $0x28] sm:$0xff]   ;;  %v4658_v8 = vld [vmem:[%s7918_s2 + $0x30] sm:$0xff]  }
   0xa   :  { %4637 = vset.pattern.permute.xlu0 %v7921_v13 }
   0xb   :  { %131 = vperm.xlu1 %4636, %v101_v14   ;;  %126 = vperm.xlu0 %4637, %v100_v15  }
   0xf   :  { %136 = vperm.xlu1 %4636, %v102_v16   ;;  %141 = vperm.xlu0 %4637, %v103_v17  }
  0x13   :  { %146 = vperm.xlu1 %4636, %v104_v18   ;;  %151 = vperm.xlu0 %4637, %v105_v19  }
  0x17   :  { %156 = vperm.xlu1 %4636, %v106_v20   ;;  %161 = vperm.xlu0 %4637, %v107_v21  }
  0x1b   :  { %166 = vperm.xlu1 %4636, %v108_v22   ;;  %171 = vperm.xlu0 %4637, %v109_v23  }
  0x1f   :  { %176 = vperm.xlu1 %4636, %v110_v24   ;;  %181 = vperm.xlu0 %4637, %v111_v25  }
  0x23   :  { %186 = vperm.xlu1 %4636, %v112_v26   ;;  %191 = vperm.xlu0 %4637, %v113_v27  }
  0x81   :  { %v42_v32 = vpop.permute.xlu0 %41 }
  0x82   :  { %v49_v33 = vsub.f32 %v27_v29, %v42_v32  ;;  %v50_v34 = vsub.f32 %v31_v30, %v42_v32  ;;  %v51_v35 = vsub.f32 %v35_v31, %v42_v32  ;;  %v117_v14 = vpop.permute.xlu1 %116 }
  0x84   :  { %v55_v36 = vmul.f32 -1.1249999, %v49_v33  ;;  %v56_v37 = vmul.f32 -1.1249999, %v50_v34  ;;  %v57_v38 = vmul.f32 -1.1249999, %v51_v35 }
  0x85   :  { %v47_v39 = vpop.permute.xlu0 %46 }
  0x86   :  { %v61_v40 = vmul.f32 %v55_v36, %v49_v33  ;;  %v62_v41 = vmul.f32 %v56_v37, %v50_v34  ;;  %v63_v42 = vmul.f32 %v57_v38, %v51_v35  ;;  %v52_v43 = vsub.f32 %v27_v29, %v47_v39  ;;  %v122_v15 = vpop.permute.xlu1 %121 }
  0x87   :  { %v53_v44 = vsub.f32 %v31_v30, %v47_v39  ;;  %v54_v45 = vsub.f32 %v35_v31, %v47_v39 }
  0x88   :  { %v67_v46 = vmul.f32 1.442695, %v61_v40  ;;  %v69_v47 = vmul.f32 1.442695, %v62_v41  ;;  %v58_v48 = vmul.f32 -1.1249999, %v52_v43 }
  0x89   :  { %v59_v49 = vmul.f32 -1.1249999, %v53_v44  ;;  %v60_v50 = vmul.f32 -1.1249999, %v54_v45  ;;  %v71_v51 = vmul.f32 1.442695, %v63_v42 }
  0x8a   :  { %v64_v52 = vmul.f32 %v58_v48, %v52_v43  ;;  %4725 = vpow2.f32 %v67_v46  ;;  %v5226_v16 = vpop.permute.xlu1 %131  ;;  %v5228_v17 = vpop.permute.xlu0 %126 }
  0x8b   :  { %v65_v53 = vmul.f32 %v59_v49, %v53_v44  ;;  %v66_v54 = vmul.f32 %v60_v50, %v54_v45  ;;  %4727 = vpow2.f32 %v69_v47 }
  0x8c   :  { %v73_v55 = vmul.f32 1.442695, %v64_v52  ;;  %4729 = vpow2.f32 %v71_v51 }
  0x8d   :  { %v75_v56 = vmul.f32 1.442695, %v65_v53  ;;  %v77_v57 = vmul.f32 1.442695, %v66_v54 }
  0x8e   :  { %4731 = vpow2.f32 %v73_v55  ;;  %v5246_v39 = vpop.permute.xlu1 %136 }
  0x8f   :  { %4733 = vpow2.f32 %v75_v56 }
  0x90   :  { %4735 = vpow2.f32 %v77_v57 }
  0x94   :  { %v4726_v58 = vpop.eup %4725 }
  0x95   :  { %v4728_v59 = vpop.eup %4727 }
  0x96   :  { %v4730_v60 = vpop.eup %4729 }
  0x98   :  { %v4732_v61 = vpop.eup %4731 }
  0x99   :  { %v4734_v62 = vpop.eup %4733  ;;  %v79_v63 = vpack.c.bf16 %v4732_v61, %v4726_v58 }
  0x9a   :  { %v4736_v0 = vpop.eup %4735  ;;  %v80_v1 = vpack.c.bf16 %v4734_v62, %v4728_v59  ;;  %v5268_v59 = vpop.permute.xlu1 %146 }
  0x9b   :  { %v81_v2 = vpack.c.bf16 %v4736_v0, %v4730_v60 }
  0x9c   :  { %259 = vmatprep.subr.bf16.mxu0 %v80_v1 }
  0x9d   :  { %4385 = vmatprep.subr.bf16.mxu1 %v81_v2  ;;  %260 = vmatpush1.bf16.msra.mxu0 %v79_v63 }
  0x9e   :  { %4386 = vmatpush3.bf16.msra.mxu1 %v81_v2 }
  0xa0   :  { %4062 = vmatmul.mubr.msk.bf16.vlgmr.msra.gmra.mrb[0].mxu0 %vm234_vm0, %v5129_v12  ;;  %v4659_v12 = vld [vmem:[%s7918_s2 + $0x38] sm:$0xff]  }
  0xa1   :  { %4388 = vmatmul.mubr.msk.bf16.vlgmr.msra.gmra.mrb[0].mxu1 %vm234_vm0, %v4653_v3  ;;  %301 = vmatprep.mubr.bf16.mxu0 %v7921_v13 }
  0xa2   :  { %4391 = vmatprep.mubr.msk.bf16.mxu1 %vm234_vm0, %v4654_v4 }
  0xa8   :  { %4063 = vmatmul.mubr.msk.bf16.gmra.mrb[4].mxu0 %vm234_vm0, %v4653_v3 }
  0xa9   :  { %4392 = vmatmul.mubr.msk.bf16.gmra.mrb[4].mxu1 %vm234_vm0, %v4655_v5  ;;  %311 = vmatprep.mubr.bf16.mxu0 %v7921_v13 }
  0xaa   :  { %4395 = vmatprep.mubr.msk.bf16.mxu1 %vm234_vm0, %v4656_v6 }
  0xb0   :  { %4064 = vmatmul.mubr.msk.bf16.gmra.mrb[8].mxu0 %vm234_vm0, %v4654_v4 }
  0xb1   :  { %4396 = vmatmul.mubr.msk.bf16.gmra.mrb[8].mxu1 %vm234_vm0, %v4657_v7  ;;  %321 = vmatprep.mubr.bf16.mxu0 %v7921_v13 }
  0xb2   :  { %4399 = vmatprep.mubr.msk.bf16.mxu1 %vm234_vm0, %v4658_v8 }
  0xb8   :  { %4065 = vmatmul.mubr.msk.bf16.gmra.mrb[12].mxu0 %vm234_vm0, %v4655_v5 }
  0xb9   :  { %4400 = vmatmul.mubr.msk.bf16.gmra.mrb[12].mxu1 %vm234_vm0, %v4659_v12  ;;  %331 = vmatprep.mubr.bf16.mxu0 %v7921_v13 }
  0xba   :  { %1373 = vmatprep.mubr.bf16.mxu1 %v7921_v13 }
  0xc0   :  { %4066 = vmatmul.mubr.msk.bf16.gmra.mrb[16].mxu0 %vm234_vm0, %v4656_v6 }
  0xc1   :  { %341 = vmatprep.mubr.bf16.mxu0 %v7921_v13 }
  0xc8   :  { %4067 = vmatmul.mubr.msk.bf16.gmra.mrb[20].mxu0 %vm234_vm0, %v4657_v7 }
  0xc9   :  { %351 = vmatprep.mubr.bf16.mxu0 %v7921_v13 }
  0xd0   :  { %4068 = vmatmul.mubr.msk.bf16.gmra.mrb[24].mxu0 %vm234_vm0, %v4658_v8 }
  0xd1   :  { %361 = vmatprep.mubr.bf16.mxu0 %v7921_v13 }
  0xd8   :  { %4069 = vmatmul.mubr.msk.bf16.gmra.mrb[28].mxu0 %vm234_vm0, %v4659_v12 }
 0x173   :  { %v293_v18 = vpop.f32.mrb[0].mxu0 }
 0x174   :  { %v5230_v19 = vadd.f32 %v293_v18, %v117_v14  ;;  %v4389_v20 = vpop.f32.mrb[0].mxu1  ;;  %v295_v21 = vpop.f32.mrb[1].mxu0 }
 0x175   :  { %v5233_v22 = vadd.f32 %v4389_v20, %v5228_v17  ;;  %v5235_v23 = vadd.f32 %v295_v21, %v117_v14  ;;  %v406_v24 = vpop.f32.mrb[1].mxu1  ;;  %v297_v25 = vpop.f32.mrb[2].mxu0 }
 0x176   :  { %v517_v26 = vand.u32 2147483647, %v5230_v19  ;;  %v5238_v27 = vadd.f32 %v406_v24, %v117_v14  ;;  %v5240_v28 = vadd.f32 %v297_v25, %v122_v15  ;;  %v4390_v29 = vpop.f32.mrb[2].mxu1  ;;  %v299_v30 = vpop.f32.mrb[3].mxu0 }
 0x177   :  { %v525_v31 = vand.u32 2147483647, %v5233_v22  ;;  %v409_v33 = vpop.f32.mrb[3].mxu1  ;;  %v518_v34 = vand.u32 2147483647, %v5235_v23  ;;  %v5249_v41 = vadd.f32 %v4390_v29, %v5226_v16  ;;  %v5251_v42 = vadd.f32 %v299_v30, %v122_v15 }
 0x178   :  { %v565_v32 = vsub.f32 0.0, %v517_v26  ;;  %v520_v35 = vand.u32 2147483647, %v5240_v28  ;;  %v519_v38 = vand.u32 2147483647, %v5238_v27  ;;  %v5253_v46 = vadd.f32 %v409_v33, %v122_v15 }
 0x179   :  { %v573_v37 = vsub.f32 0.0, %v525_v31  ;;  %v566_v44 = vsub.f32 0.0, %v518_v34  ;;  %v528_v53 = vand.u32 2147483647, %v5249_v41  ;;  %v521_v56 = vand.u32 2147483647, %v5251_v42 }
 0x17a   :  { %v613_v36 = vmul.f32 1.442695, %v565_v32  ;;  %v568_v40 = vsub.f32 0.0, %v520_v35  ;;  %v567_v49 = vsub.f32 0.0, %v519_v38  ;;  %v522_v61 = vand.u32 2147483647, %v5253_v46 }
 0x17b   :  { %v303_v43 = vpop.f32.mrb[4].mxu0  ;;  %v629_v48 = vmul.f32 1.442695, %v573_v37  ;;  %v615_v60 = vmul.f32 1.442695, %v566_v44  ;;  %v576_v1 = vsub.f32 0.0, %v528_v53 }
 0x17c   :  { %4737 = vpow2.f32 %v613_v36  ;;  %v619_v45 = vmul.f32 1.442695, %v568_v40  ;;  %v4393_v47 = vpop.f32.mrb[4].mxu1  ;;  %v5256_v50 = vadd.f32 %v303_v43, %v5228_v17  ;;  %v305_v51 = vpop.f32.mrb[5].mxu0  ;;  %v617_v62 = vmul.f32 1.442695, %v567_v49 }
 0x17d   :  { %v422_v52 = vpop.f32.mrb[5].mxu1  ;;  %v5259_v54 = vpop.f32.mrb[6].mxu0  ;;  %v5273_v0 = vadd.f32 %v4393_v47, %v5268_v59  ;;  %v569_v3 = vsub.f32 0.0, %v521_v56  ;;  %v570_v6 = vsub.f32 0.0, %v522_v61  ;;  %v635_v15 = vmul.f32 1.442695, %v576_v1 }
 0x17e   :  { %v5261_v55 = vpop.f32.mrb[6].mxu1  ;;  %4739 = vpow2.f32 %v619_v45  ;;  %v5264_v57 = vpop.f32.mrb[7].mxu0  ;;  %v523_v63 = vand.u32 2147483647, %v5256_v50  ;;  %v5294_v29 = vadd.f32 %v305_v51, %v5228_v17  ;;  %v5322_v56 = vadd.f32 %v422_v52, %v5246_v39 }
 0x17f   :  { %v5266_v58 = vpop.f32.mrb[7].mxu1  ;;  %4741 = vpow2.f32 %v629_v48  ;;  %v537_v12 = vand.u32 2147483647, %v5273_v0  ;;  %v621_v21 = vmul.f32 1.442695, %v569_v3  ;;  %v5318_v49 = vpop.permute.xlu0 %141 }
 0x180   :  { %4743 = vpow2.f32 %v615_v60  ;;  %v571_v8 = vsub.f32 0.0, %v523_v63  ;;  %v623_v26 = vmul.f32 1.442695, %v570_v6  ;;  %v524_v45 = vand.u32 2147483647, %v5294_v29 }
 0x181   :  { %4745 = vpow2.f32 %v617_v62  ;;  %v585_v33 = vsub.f32 0.0, %v537_v12  ;;  %v531_v63 = vand.u32 2147483647, %v5322_v56 }
 0x182   :  { %v625_v32 = vmul.f32 1.442695, %v571_v8 }
 0x183   :  { %v5275_v2 = vpop.f32.mrb[8].mxu0  ;;  %v653_v53 = vmul.f32 1.442695, %v585_v33  ;;  %v572_v33 = vsub.f32 0.0, %v524_v45 }
 0x184   :  { %v5277_v4 = vpop.f32.mrb[8].mxu1  ;;  %v5279_v5 = vpop.f32.mrb[9].mxu0 }
 0x185   :  { %v5285_v18 = vpop.f32.mrb[9].mxu1  ;;  %v5287_v20 = vpop.f32.mrb[10].mxu0  ;;  %v627_v51 = vmul.f32 1.442695, %v572_v33 }
 0x186   :  { %v5281_v7 = vpop.eup %4737  ;;  %v5289_v24 = vpop.f32.mrb[10].mxu1 }
 0x187   :  { %v709_v14 = vadd.f32 1.0, %v5281_v7  ;;  %v5291_v25 = vpop.f32.mrb[11].mxu0  ;;  %v5296_v30 = vpop.f32.mrb[11].mxu1  ;;  %v712_v52 = vmul.f32 -0.5, %v5281_v7 }
 0x188   :  { %v5298_v31 = vpop.eup %4739 }
 0x189   :  { %4747 = vlog2.f32 %v709_v14  ;;  %v5302_v35 = vpop.eup %4741  ;;  %v736_v44 = vadd.f32 1.0, %v5298_v31  ;;  %v739_v13 = vmul.f32 -0.5, %v5298_v31  ;;  %v713_v45 = vadd.f32 1.0, %v712_v52 }
 0x18a   :  { %4749 = vpow2.f32 %v635_v15  ;;  %v5326_v61 = vpop.eup %4743  ;;  %v781_v62 = vadd.f32 1.0, %v5302_v35  ;;  %v5342_v15 = vadd.f32 %v5259_v54, %v5226_v16  ;;  %v787_v33 = vand.u32 2147483647, %v5302_v35 }
 0x18b   :  { %v5300_v34 = vpop.f32.mrb[12].mxu0  ;;  %4751 = vpow2.f32 %v621_v21  ;;  %v5335_v8 = vpop.eup %4745  ;;  %v784_v21 = vmul.f32 -0.5, %v5302_v35  ;;  %v721_v14 = vmul.f32 -0.5, %v5326_v61 }
 0x18c   :  { %v5307_v17 = vpop.f32.mrb[12].mxu1  ;;  %v5309_v40 = vpop.f32.mrb[13].mxu0  ;;  %4753 = vpow2.f32 %v623_v26  ;;  %v730_v54 = vmul.f32 -0.5, %v5335_v8  ;;  %v727_v38 = vadd.f32 1.0, %v5335_v8  ;;  %v526_v36 = vand.u32 2147483647, %v5342_v15 }
 0x18d   :  { %v5314_v47 = vpop.f32.mrb[13].mxu1  ;;  %v5316_v48 = vpop.f32.mrb[14].mxu0  ;;  %4755 = vpow2.f32 %v625_v32  ;;  %v715_v32 = vand.u32 2147483647, %v5281_v7  ;;  %v785_v37 = vadd.f32 1.0, %v784_v21 }
 0x18e   :  { %7945 = vst [vmem:[#allocation5_spill] sm:$0xff] %v5314_v47  ;;  %7946 = vst [vmem:[#allocation6_spill] sm:$0xff] %v5316_v48  ;;  %v5324_v60 = vpop.f32.mrb[14].mxu1  ;;  %4757 = vlog2.f32 %v736_v44  ;;  %v5331_v3 = vpop.f32.mrb[15].mxu0  ;;  %v718_v44 = vadd.f32 1.0, %v5326_v61 }
 0x18f   :  { %7947 = vst [vmem:[#allocation7_spill] sm:$0xff] %v5324_v60  ;;  %7948 = vst [vmem:[#allocation8_spill] sm:$0xff] %v5331_v3  ;;  %v5333_v6 = vpop.f32.mrb[15].mxu1  ;;  %4759 = vpow2.f32 %v653_v53  ;;  %v5355_v26 = vpop.permute.xlu0 %151  ;;  %v5375_v53 = vadd.f32 %v5264_v57, %v5226_v16  ;;  %v742_v3 = vand.u32 2147483647, %v5298_v31 }
 0x190   :  { %7949 = vst [vmem:[#allocation9_spill] sm:$0xff] %v5333_v6  ;;  %4761 = vlog2.f32 %v781_v62  ;;  %7951 = vst [vmem:[#allocation11_spill] sm:$0xff] %v5355_v26  ;;  %v5367_v11 = vadd.f32 %v5261_v55, %v5355_v26  ;;  %v722_v6 = vadd.f32 1.0, %v721_v14  ;;  %v731_v55 = vadd.f32 1.0, %v730_v54 }
 0x191   :  { %4763 = vlog2.f32 %v718_v44  ;;  %vm5386_vm1 = vcmp.lt.f32.partialorder %v715_v32, 0.0004427343  ;;  %v5392_v44 = vmul.f32 %v5302_v35, %v785_v37  ;;  %v724_v14 = vand.u32 2147483647, %v5326_v61 }
 0x192   :  { %4765 = vlog2.f32 %v727_v38  ;;  %v733_v54 = vand.u32 2147483647, %v5335_v8  ;;  %vm5401_vm2 = vcmp.lt.f32.partialorder %v787_v33, 0.0004427343  ;;  %v5406_v35 = vmul.f32 %v5326_v61, %v722_v6  ;;  %v5420_v6 = vpop.permute.xlu1 %156 }
 0x193   :  { %v4748_v1 = vpop.eup %4747  ;;  %v5353_v43 = vpop.f32.mrb[16].mxu0  ;;  %v5409_v37 = vmul.f32 %v5335_v8, %v731_v55  ;;  %vm743_vm3 = vcmp.lt.f32.partialorder %v742_v3, 0.0004427343  ;;  %v7961_v8 = vmax.f32 %v5230_v19, 0.0  ;;  %v7963_v55 = vmax.f32 %v5240_v28, 0.0 }
 0x194   :  { %7950 = vst [vmem:[#allocation10_spill] sm:$0xff] %v5353_v43  ;;  %v5360_v12 = vpop.f32.mrb[17].mxu0  ;;  %v5362_v62 = vpop.eup %4749  ;;  %v711_v9 = vmul.f32 0.6931472, %v4748_v1  ;;  %v740_v43 = vadd.f32 1.0, %v739_v13  ;;  %v714_v1 = vmul.f32 %v5281_v7, %v713_v45 }
 0x195   :  { %7952 = vst [vmem:[#allocation12_spill] sm:$0xff] %v5360_v12  ;;  %v5369_v10 = vpop.f32.mrb[18].mxu0  ;;  %v5371_v52 = vpop.eup %4751  ;;  %v808_v16 = vadd.f32 1.0, %v5362_v62  ;;  %v811_v48 = vmul.f32 -0.5, %v5362_v62  ;;  %vm5436_vm4 = vcmp.lt.f32.partialorder %v724_v14, 0.0004427343 }
 0x196   :  { %7953 = vst [vmem:[#allocation13_spill] sm:$0xff] %v5369_v10  ;;  %v5377_v12 = vpop.f32.mrb[19].mxu0  ;;  %v5379_v21 = vpop.eup %4753  ;;  %v717_v7 = vsel %vm5386_vm1, %v714_v1, %v711_v9  ;;  %v741_v45 = vmul.f32 %v5298_v31, %v740_v43  ;;  %v748_v43 = vmul.f32 -0.5, %v5371_v52  ;;  %vm5444_vm5 = vcmp.lt.f32.partialorder %v733_v54, 0.0004427343 }
 0x197   :  { %7954 = vst [vmem:[#allocation14_spill] sm:$0xff] %v5377_v12  ;;  %v5383_v10 = vpop.eup %4755  ;;  %v745_v12 = vadd.f32 1.0, %v5371_v52  ;;  %v754_v38 = vadd.f32 1.0, %v5379_v21  ;;  %4767 = vlog2.f32 %v808_v16  ;;  %v5424_v3 = vadd.f32 %v717_v7, %v7961_v8 }
 0x198   :  { %v4758_v57 = vpop.eup %4757  ;;  %v763_v33 = vadd.f32 1.0, %v5383_v10  ;;  %v812_v8 = vadd.f32 1.0, %v811_v48  ;;  %v527_v28 = vand.u32 2147483647, %v5375_v53  ;;  %v5453_v54 = vadd.f32 %v5266_v58, %v5318_v49 }
 0x199   :  { %v738_v32 = vmul.f32 0.6931472, %v4758_v57  ;;  %v5414_v9 = vpop.eup %4759  ;;  %7962 = vst [vmem:[#allocation17_spill] sm:$0xff] %v5424_v3  ;;  %4769 = vlog2.f32 %v745_v12  ;;  %v751_v12 = vand.u32 2147483647, %v5371_v52  ;;  %v5459_v48 = vadd.f32 %v5275_v2, %v5246_v39 }
 0x19a   :  { %v4762_v61 = vpop.eup %4761  ;;  %4771 = vlog2.f32 %v754_v38  ;;  %v889_v14 = vadd.f32 1.0, %v5414_v9  ;;  %v575_v47 = vsub.f32 0.0, %v527_v28  ;;  %v534_v2 = vand.u32 2147483647, %v5453_v54 }
 0x19b   :  { %v5412_v13 = vpop.f32.mrb[20].mxu0  ;;  %v744_v31 = vsel %vm743_vm3, %v741_v45, %v738_v32  ;;  %v579_v32 = vsub.f32 0.0, %v531_v63  ;;  %v814_v45 = vand.u32 2147483647, %v5362_v62  ;;  %v757_v63 = vmul.f32 -0.5, %v5379_v21  ;;  %v4764_v7 = vpop.eup %4763 }
 0x19c   :  { %7959 = vst [vmem:[#allocation15_spill] sm:$0xff] %v5412_v13  ;;  %v5418_v1 = vpop.f32.mrb[21].mxu0  ;;  %v5428_v57 = vadd.f32 %v744_v31, %v7963_v55  ;;  %v574_v13 = vsub.f32 0.0, %v526_v36  ;;  %4773 = vpow2.f32 %v627_v51  ;;  %v783_v31 = vmul.f32 0.6931472, %v4762_v61  ;;  %v4766_v3 = vpop.eup %4765 }
 0x19d   :  { %7960 = vst [vmem:[#allocation16_spill] sm:$0xff] %v5418_v1  ;;  %v5430_v16 = vpop.f32.mrb[22].mxu0  ;;  %v540_v1 = vand.u32 2147483647, %v5367_v11  ;;  %4775 = vlog2.f32 %v763_v33  ;;  %v749_v55 = vadd.f32 1.0, %v748_v43  ;;  %v5455_v61 = vpop.permute.xlu1 %166 }
 0x19e   :  { %7964 = vst [vmem:[#allocation18_spill] sm:$0xff] %v5428_v57  ;;  %7965 = vst [vmem:[#allocation19_spill] sm:$0xff] %v5430_v16  ;;  %v5434_v26 = vpop.f32.mrb[23].mxu0  ;;  %v631_v38 = vmul.f32 1.442695, %v574_v13  ;;  %v758_v16 = vadd.f32 1.0, %v757_v63  ;;  %v789_v43 = vsel %vm5401_vm2, %v5392_v44, %v783_v31  ;;  %v5469_v58 = vadd.f32 %v5277_v4, %v5455_v61 }
 0x19f   :  { %7966 = vst [vmem:[#allocation20_spill] sm:$0xff] %v5434_v26  ;;  %v641_v26 = vmul.f32 1.442695, %v579_v32  ;;  %v760_v57 = vand.u32 2147483647, %v5379_v21  ;;  %v588_v51 = vsub.f32 0.0, %v540_v1 }
 0x1a0   :  { %4777 = vpow2.f32 %v631_v38  ;;  %7971 = vst [vmem:[#allocation21_spill] sm:$0xff] %v5455_v61  ;;  %v720_v33 = vmul.f32 0.6931472, %v4764_v7  ;;  %v766_v1 = vmul.f32 -0.5, %v5383_v10  ;;  %v729_v28 = vmul.f32 0.6931472, %v4766_v3 }
 0x1a1   :  { %4779 = vlog2.f32 %v889_v14  ;;  %v769_v63 = vand.u32 2147483647, %v5383_v10  ;;  %v4768_v7 = vpop.eup %4767  ;;  %v5476_v38 = vmul.f32 %v5362_v62, %v812_v8  ;;  %vm5478_vm6 = vcmp.lt.f32.partialorder %v814_v45, 0.0004427343 }
 0x1a2   :  { %4781 = vpow2.f32 %v641_v26  ;;  %vm5482_vm7 = vcmp.lt.f32.partialorder %v751_v12, 0.0004427343  ;;  %v892_v4 = vmul.f32 -0.5, %v5414_v9  ;;  %v659_v3 = vmul.f32 1.442695, %v588_v51 }
 0x1a3   :  { %v5461_v13 = vpop.f32.mrb[24].mxu0  ;;  %v4770_v26 = vpop.eup %4769  ;;  %v750_v14 = vmul.f32 %v5371_v52, %v749_v55  ;;  %vm5491_vm8 = vcmp.lt.f32.partialorder %v760_v57, 0.0004427343  ;;  %v633_v45 = vmul.f32 1.442695, %v575_v47  ;;  %v7982_v61 = vmax.f32 %v5233_v22, 0.0 }
 0x1a4   :  { %7972 = vst [vmem:[#allocation22_spill] sm:$0xff] %v5461_v13  ;;  %v5471_v32 = vpop.f32.mrb[25].mxu0  ;;  %v529_v12 = vand.u32 2147483647, %v5459_v48  ;;  %v4772_v13 = vpop.eup %4771  ;;  %v726_v52 = vsel %vm5436_vm4, %v5406_v35, %v720_v33  ;;  %v5508_v57 = vadd.f32 %v5279_v5, %v5246_v39  ;;  %v767_v55 = vadd.f32 1.0, %v766_v1 }
 0x1a5   :  { %7973 = vst [vmem:[#allocation23_spill] sm:$0xff] %v5471_v32  ;;  %v5487_v31 = vpop.f32.mrb[26].mxu0  ;;  %v759_v32 = vmul.f32 %v5379_v21, %v758_v16  ;;  %v5500_v51 = vadd.f32 %v789_v43, %v7982_v61  ;;  %v549_v21 = vand.u32 2147483647, %v5469_v58  ;;  %v735_v16 = vsel %vm5444_vm5, %v5409_v37, %v729_v28 }
 0x1a6   :  { %7978 = vst [vmem:[#allocation24_spill] sm:$0xff] %v5487_v31  ;;  %v5496_v8 = vpop.f32.mrb[27].mxu0  ;;  %v5510_v47 = vpop.eup %4773  ;;  %vm5515_vm9 = vcmp.lt.f32.partialorder %v769_v63, 0.0004427343  ;;  %v582_v61 = vsub.f32 0.0, %v534_v2  ;;  %v893_v33 = vadd.f32 1.0, %v892_v4  ;;  %4783 = vpow2.f32 %v659_v3 }
 0x1a7   :  { %7981 = vst [vmem:[#allocation25_spill] sm:$0xff] %v5496_v8  ;;  %v4776_v19 = vpop.eup %4775  ;;  %v810_v35 = vmul.f32 0.6931472, %v4768_v7  ;;  %v895_v43 = vand.u32 2147483647, %v5414_v9  ;;  %4785 = vpow2.f32 %v633_v45  ;;  %v577_v8 = vsub.f32 0.0, %v529_v12 }
 0x1a8   :  { %v747_v39 = vmul.f32 0.6931472, %v4770_v26  ;;  %v756_v5 = vmul.f32 0.6931472, %v4772_v13  ;;  %v7986_v37 = vmax.f32 %v5235_v23, 0.0  ;;  %v772_v28 = vadd.f32 1.0, %v5510_v47 }
 0x1a9   :  { %v597_v63 = vsub.f32 0.0, %v549_v21  ;;  %v530_v2 = vand.u32 2147483647, %v5508_v57  ;;  %v765_v4 = vmul.f32 0.6931472, %v4776_v19  ;;  %v5535_v26 = vadd.f32 %v5285_v18, %v5420_v6 }
 0x1aa   :  { %v5522_v36 = vpop.eup %4777  ;;  %v5526_v1 = vadd.f32 %v726_v52, %v7986_v37  ;;  %v647_v3 = vmul.f32 1.442695, %v582_v61  ;;  %v7989_v12 = vmax.f32 %v5238_v27, 0.0  ;;  %v768_v21 = vmul.f32 %v5383_v10, %v767_v55 }
 0x1ab   :  { %v5520_v31 = vpop.f32.mrb[28].mxu0  ;;  %v790_v13 = vadd.f32 1.0, %v5522_v36  ;;  %v4780_v23 = vpop.eup %4779  ;;  %v894_v37 = vmul.f32 %v5414_v9, %v893_v33  ;;  %vm5545_vm10 = vcmp.lt.f32.partialorder %v895_v43, 0.0004427343  ;;  %v816_v18 = vsel %vm5478_vm6, %v5476_v38, %v810_v35 }
 0x1ac   :  { %7985 = vst [vmem:[#allocation26_spill] sm:$0xff] %v5520_v31  ;;  %v5530_v7 = vpop.f32.mrb[29].mxu0  ;;  %v5541_v52 = vadd.f32 %v735_v16, %v7989_v12  ;;  %v753_v27 = vsel %vm5482_vm7, %v750_v14, %v747_v39  ;;  %v637_v16 = vmul.f32 1.442695, %v577_v8  ;;  %v762_v10 = vsel %vm5491_vm8, %v759_v32, %v756_v5 }
 0x1ad   :  { %7987 = vst [vmem:[#allocation27_spill] sm:$0xff] %v5530_v7  ;;  %v5537_v45 = vpop.f32.mrb[30].mxu0  ;;  %v5551_v7 = vpop.eup %4781  ;;  %4787 = vlog2.f32 %v790_v13  ;;  %v677_v9 = vmul.f32 1.442695, %v597_v63  ;;  %v578_v55 = vsub.f32 0.0, %v530_v2  ;;  %v771_v33 = vsel %vm5515_vm9, %v768_v21, %v765_v4 }
 0x1ae   :  { %7988 = vst [vmem:[#allocation28_spill] sm:$0xff] %v5537_v45  ;;  %v5549_v61 = vpop.f32.mrb[31].mxu0  ;;  %4789 = vlog2.f32 %v772_v28  ;;  %v543_v60 = vand.u32 2147483647, %v5535_v26  ;;  %v7993_v38 = vmax.f32 %v5249_v41, 0.0  ;;  %v835_v8 = vadd.f32 1.0, %v5551_v7 }
 0x1af   :  { %7992 = vst [vmem:[#allocation29_spill] sm:$0xff] %v5549_v61  ;;  %4791 = vpow2.f32 %v647_v3  ;;  %v891_v14 = vmul.f32 0.6931472, %v4780_v23  ;;  %v793_v32 = vmul.f32 -0.5, %v5522_v36  ;;  %v7994_v62 = vmax.f32 %v5251_v42, 0.0 }
 0x1b0   :  { %v5566_v44 = vadd.f32 %v816_v18, %v7993_v38  ;;  %v7995_v22 = vmax.f32 %v5253_v46, 0.0  ;;  %4793 = vpow2.f32 %v637_v16  ;;  %v5579_v28 = vpop.eup %4783  ;;  %v7996_v41 = vmax.f32 %v5256_v50, 0.0 }
 0x1b1   :  { %v5572_v35 = vadd.f32 %v753_v27, %v7994_v62  ;;  %v775_v2 = vmul.f32 -0.5, %v5510_v47  ;;  %4795 = vpow2.f32 %v677_v9  ;;  %v639_v4 = vmul.f32 1.442695, %v578_v55  ;;  %v5586_v42 = vpop.eup %4785 }
 0x1b2   :  { %v5576_v39 = vadd.f32 %v762_v10, %v7995_v22  ;;  %v5583_v63 = vadd.f32 %v771_v33, %v7996_v41  ;;  %v838_v13 = vmul.f32 -0.5, %v5551_v7  ;;  %v591_v3 = vsub.f32 0.0, %v543_v60 }
 0x1b3   :  { %v5592_v23 = vadd.f32 %v5287_v20, %v5318_v49  ;;  %v897_v50 = vsel %vm5545_vm10, %v894_v37, %v891_v14  ;;  %v778_v12 = vand.u32 2147483647, %v5510_v47  ;;  %4797 = vlog2.f32 %v835_v8  ;;  %v5603_v37 = vpop.permute.xlu0 %161 }
 0x1b4   :  { %v794_v21 = vadd.f32 1.0, %v793_v32  ;;  %v796_v18 = vand.u32 2147483647, %v5522_v36  ;;  %v916_v27 = vadd.f32 1.0, %v5579_v28  ;;  %v919_v16 = vmul.f32 -0.5, %v5579_v28 }
 0x1b5   :  { %v776_v9 = vadd.f32 1.0, %v775_v2  ;;  %v799_v55 = vadd.f32 1.0, %v5586_v42  ;;  %4799 = vpow2.f32 %v639_v4  ;;  %v7997_v33 = vmax.f32 %v5273_v0, 0.0 }
 0x1b6   :  { %v839_v38 = vadd.f32 1.0, %v838_v13  ;;  %v665_v14 = vmul.f32 1.442695, %v591_v3  ;;  %v532_v8 = vand.u32 2147483647, %v5592_v23  ;;  %v795_v2 = vmul.f32 %v5522_v36, %v794_v21 }
 0x1b7   :  { %v4788_v19 = vpop.eup %4787  ;;  %v5607_v60 = vadd.f32 %v897_v50, %v7997_v33  ;;  %vm5610_vm11 = vcmp.lt.f32.partialorder %v778_v12, 0.0004427343  ;;  %v841_v22 = vand.u32 2147483647, %v5551_v7  ;;  %vm797_vm12 = vcmp.lt.f32.partialorder %v796_v18, 0.0004427343 }
 0x1b8   :  { %v4790_v32 = vpop.eup %4789  ;;  %v792_v41 = vmul.f32 0.6931472, %v4788_v19  ;;  %4801 = vlog2.f32 %v916_v27  ;;  %v920_v0 = vadd.f32 1.0, %v919_v16  ;;  %v777_v3 = vmul.f32 %v5510_v47, %v776_v9  ;;  %v4660_v33 = vld [vmem:[%s7918_s2 + $0x40] sm:$0xff]  }
 0x1b9   :  { %v5616_v4 = vpop.eup %4791  ;;  %4803 = vlog2.f32 %v799_v55  ;;  %v802_v12 = vmul.f32 -0.5, %v5586_v42  ;;  %v5627_v36 = vmul.f32 %v5551_v7, %v839_v38  ;;  %v8000_v21 = vmax.f32 %v5342_v15, 0.0  ;;  %4419 = vmatprep.mubr.bf16.mxu0 %v4660_v33  ;;  %v5642_v38 = vpop.permute.xlu1 %176 }
 0x1ba   :  { %v798_v50 = vsel %vm797_vm12, %v795_v2, %v792_v41  ;;  %v5624_v19 = vpop.eup %4793  ;;  %4805 = vpow2.f32 %v665_v14  ;;  %v580_v27 = vsub.f32 0.0, %v532_v8  ;;  %v774_v16 = vmul.f32 0.6931472, %v4790_v32  ;;  %v5644_v15 = vpop.permute.xlu0 %171 }
 0x1bb   :  { %v5631_v18 = vadd.f32 %v798_v50, %v8000_v21  ;;  %v5633_v47 = vpop.eup %4795  ;;  %vm5635_vm13 = vcmp.lt.f32.partialorder %v841_v22, 0.0004427343  ;;  %v922_v55 = vand.u32 2147483647, %v5579_v28  ;;  %v865_v41 = vmul.f32 -0.5, %v5616_v4 }
 0x1bc   :  { %v5649_v8 = vmul.f32 %v5579_v28, %v920_v0  ;;  %v862_v32 = vadd.f32 1.0, %v5616_v4  ;;  %v643_v22 = vmul.f32 1.442695, %v580_v27  ;;  %v803_v50 = vadd.f32 1.0, %v802_v12 }
 0x1bd   :  { %v4798_v2 = vpop.eup %4797  ;;  %v805_v21 = vand.u32 2147483647, %v5586_v42  ;;  %v817_v7 = vadd.f32 1.0, %v5624_v19  ;;  %v5656_v33 = vadd.f32 %v5289_v24, %v5644_v15  ;;  %v997_v13 = vadd.f32 1.0, %v5633_v47 }
 0x1be   :  { %4807 = vpow2.f32 %v643_v22  ;;  %v5661_v28 = vadd.f32 %v5291_v25, %v5318_v49  ;;  %v5665_v0 = vadd.f32 %v5296_v30, %v5603_v37  ;;  %v780_v27 = vsel %vm5610_vm11, %v777_v3, %v774_v16 }
 0x1bf   :  { %v5667_v12 = vpop.eup %4799  ;;  %v866_v14 = vadd.f32 1.0, %v865_v41  ;;  %v868_v24 = vand.u32 2147483647, %v5616_v4  ;;  %v837_v10 = vmul.f32 0.6931472, %v4798_v2  ;;  %4809 = vlog2.f32 %v862_v32  ;;  %v5685_v41 = vpop.permute.xlu1 %186 }
 0x1c0   :  { %v552_v22 = vand.u32 2147483647, %v5656_v33  ;;  %v533_v25 = vand.u32 2147483647, %v5661_v28  ;;  %vm5675_vm14 = vcmp.lt.f32.partialorder %v922_v55, 0.0004427343  ;;  %4811 = vlog2.f32 %v817_v7 }
 0x1c1   :  { %v820_v30 = vmul.f32 -0.5, %v5624_v19  ;;  %v546_v62 = vand.u32 2147483647, %v5665_v0  ;;  %v5683_v3 = vadd.f32 %v5300_v34, %v5268_v59  ;;  %8005 = vst [vmem:[#allocation30_spill] sm:$0xff] %v5685_v41  ;;  %4813 = vlog2.f32 %v997_v13 }
 0x1c2   :  { %v4802_v16 = vpop.eup %4801  ;;  %v826_v32 = vadd.f32 1.0, %v5667_v12  ;;  %v600_v2 = vsub.f32 0.0, %v552_v22  ;;  %v581_v55 = vsub.f32 0.0, %v533_v25  ;;  %v8006_v46 = vmax.f32 %v5294_v29, 0.0 }
 0x1c3   :  { %v4804_v20 = vpop.eup %4803  ;;  %v804_v5 = vmul.f32 %v5586_v42, %v803_v50  ;;  %vm5693_vm15 = vcmp.lt.f32.partialorder %v805_v21, 0.0004427343  ;;  %v823_v34 = vand.u32 2147483647, %v5624_v19  ;;  %v5700_v13 = vadd.f32 %v5307_v17, %v5685_v41 }
 0x1c4   :  { %v5690_v7 = vadd.f32 %v780_v27, %v8006_v46  ;;  %v5702_v61 = vpop.eup %4805  ;;  %v843_v29 = vsel %vm5635_vm13, %v5627_v36, %v837_v10  ;;  %v683_v46 = vmul.f32 1.442695, %v600_v2  ;;  %v594_v27 = vsub.f32 0.0, %v546_v62 }
 0x1c5   :  { %v535_v42 = vand.u32 2147483647, %v5683_v3  ;;  %v5709_v50 = vmul.f32 %v5616_v4, %v866_v14  ;;  %v1000_v21 = vmul.f32 -0.5, %v5633_v47  ;;  %v1003_v22 = vand.u32 2147483647, %v5633_v47 }
 0x1c6   :  { %v943_v17 = vadd.f32 1.0, %v5702_v61  ;;  %v918_v25 = vmul.f32 0.6931472, %v4802_v16  ;;  %v821_v45 = vadd.f32 1.0, %v820_v30  ;;  %4815 = vlog2.f32 %v826_v32 }
 0x1c7   :  { %v645_v31 = vmul.f32 1.442695, %v581_v55  ;;  %v8009_v9 = vmax.f32 %v5322_v56, 0.0  ;;  %v801_v36 = vmul.f32 0.6931472, %v4804_v20  ;;  %v829_v62 = vmul.f32 -0.5, %v5667_v12 }
 0x1c8   :  { %v561_v4 = vand.u32 2147483647, %v5700_v13  ;;  %v5720_v14 = vpop.eup %4807  ;;  %vm5722_vm1 = vcmp.lt.f32.partialorder %v868_v24, 0.0004427343  ;;  %4817 = vpow2.f32 %v683_v46  ;;  %v671_v16 = vmul.f32 1.442695, %v594_v27 }
 0x1c9   :  { %v5716_v10 = vadd.f32 %v843_v29, %v8009_v9  ;;  %v583_v30 = vsub.f32 0.0, %v535_v42  ;;  %v5728_v32 = vadd.f32 %v5309_v40, %v5268_v59  ;;  %vm5730_vm2 = vcmp.lt.f32.partialorder %v823_v34, 0.0004427343  ;;  %v4810_v29 = vpop.eup %4809 }
 0x1ca   :  { %v1001_v20 = vadd.f32 1.0, %v1000_v21  ;;  %4819 = vlog2.f32 %v943_v17  ;;  %v844_v55 = vadd.f32 1.0, %v5720_v14  ;;  %v924_v24 = vsel %vm5675_vm14, %v5649_v8, %v918_v25  ;;  %v4812_v42 = vpop.eup %4811  ;;  %v5744_v17 = vpop.permute.xlu0 %181 }
 0x1cb   :  { %v832_v46 = vand.u32 2147483647, %v5667_v12  ;;  %4821 = vpow2.f32 %v645_v31  ;;  %v609_v27 = vsub.f32 0.0, %v561_v4  ;;  %v822_v59 = vmul.f32 %v5624_v19, %v821_v45  ;;  %v4814_v21 = vpop.eup %4813 }
 0x1cc   :  { %vm5740_vm3 = vcmp.lt.f32.partialorder %v1003_v22, 0.0004427343  ;;  %v830_v34 = vadd.f32 1.0, %v829_v62  ;;  %4823 = vlog2.f32 %v844_v55  ;;  %v807_v49 = vsel %vm5693_vm15, %v804_v5, %v801_v36 }
 0x1cd   :  { %4825 = vpow2.f32 %v671_v16  ;;  %v649_v8 = vmul.f32 1.442695, %v583_v30  ;;  %v536_v31 = vand.u32 2147483647, %v5728_v32  ;;  %v8016_v25 = vmax.f32 %v5367_v11, 0.0 }
 0x1ce   :  { %v864_v45 = vmul.f32 0.6931472, %v4810_v29  ;;  %v1002_v19 = vmul.f32 %v5633_v47, %v1001_v20  ;;  %v701_v22 = vmul.f32 1.442695, %v609_v27  ;;  %v819_v62 = vmul.f32 0.6931472, %v4812_v42 }
 0x1cf   :  { %v5751_v9 = vadd.f32 %v924_v24, %v8016_v25  ;;  %vm5754_vm4 = vcmp.lt.f32.partialorder %v832_v46, 0.0004427343  ;;  %v847_v43 = vmul.f32 -0.5, %v5720_v14  ;;  %v584_v5 = vsub.f32 0.0, %v536_v31  ;;  %v8021_v20 = vld [vmem:[#allocation5_spill] sm:$0xff]  ;;  %v8022_v46 = vld [vmem:[#allocation11_spill] sm:$0xff] }
 0x1d0   :  { %v8020_v36 = vmax.f32 %v5375_v53, 0.0  ;;  %v999_v30 = vmul.f32 0.6931472, %v4814_v21  ;;  %v831_v11 = vmul.f32 %v5667_v12, %v830_v34  ;;  %v4816_v29 = vpop.eup %4815  ;;  %4827 = vpow2.f32 %v649_v8  ;;  %v8023_v27 = vld [vmem:[#allocation6_spill] sm:$0xff] }
 0x1d1   :  { %8017 = vst [vmem:[#allocation31_spill] sm:$0xff] %v5751_v9  ;;  %v5768_v24 = vadd.f32 %v8021_v20, %v5642_v38  ;;  %v5772_v42 = vadd.f32 %v8023_v27, %v8022_v46  ;;  %v870_v53 = vsel %vm5722_vm1, %v5709_v50, %v864_v45  ;;  %4829 = vpow2.f32 %v701_v22  ;;  %v8025_v22 = vld [vmem:[#allocation7_spill] sm:$0xff] }
 0x1d2   :  { %v5761_v16 = vadd.f32 %v807_v49, %v8020_v36  ;;  %v651_v34 = vmul.f32 1.442695, %v584_v5  ;;  %v5778_v21 = vpop.eup %4817  ;;  %v5780_v49 = vpop.permute.xlu0 %191  ;;  %v825_v8 = vsel %vm5730_vm2, %v822_v59, %v819_v62  ;;  %v946_v31 = vmul.f32 -0.5, %v5702_v61 }
 0x1d3   :  { %8024 = vst [vmem:[#allocation5_spill] sm:$0xff] %v5780_v49  ;;  %v848_v25 = vadd.f32 1.0, %v847_v43  ;;  %v1005_v50 = vsel %vm5740_vm3, %v1002_v19, %v999_v30  ;;  %v828_v2 = vmul.f32 0.6931472, %v4816_v29  ;;  %v850_v45 = vand.u32 2147483647, %v5720_v14 }
 0x1d4   :  { %v4820_v20 = vpop.eup %4819  ;;  %v5791_v5 = vadd.f32 %v8025_v22, %v5780_v49  ;;  %v8026_v56 = vmax.f32 %v5453_v54, 0.0  ;;  %v949_v62 = vand.u32 2147483647, %v5702_v61  ;;  %v555_v43 = vand.u32 2147483647, %v5768_v24 }
 0x1d5   :  { %v5793_v27 = vpop.eup %4821  ;;  %v538_v40 = vand.u32 2147483647, %v5772_v42  ;;  %v8027_v30 = vmax.f32 %v5459_v48, 0.0  ;;  %v1024_v22 = vadd.f32 1.0, %v5778_v21  ;;  %4831 = vpow2.f32 %v651_v34 }
 0x1d6   :  { %v5797_v59 = vadd.f32 %v870_v53, %v8026_v56  ;;  %v4824_v19 = vpop.eup %4823  ;;  %v8029_v54 = vmax.f32 %v5469_v58, 0.0  ;;  %v947_v56 = vadd.f32 1.0, %v946_v31  ;;  %v849_v55 = vmul.f32 %v5720_v14, %v848_v25 }
 0x1d7   :  { %v5804_v29 = vadd.f32 %v825_v8, %v8027_v30  ;;  %v5808_v12 = vpop.eup %4825  ;;  %v846_v47 = vmul.f32 0.6931472, %v4824_v19  ;;  %v834_v48 = vsel %vm5754_vm4, %v831_v11, %v828_v2  ;;  %vm851_vm5 = vcmp.lt.f32.partialorder %v850_v45, 0.0004427343 }
 0x1d8   :  { %v5812_v53 = vadd.f32 %v1005_v50, %v8029_v54  ;;  %v853_v8 = vadd.f32 1.0, %v5793_v27  ;;  %v564_v30 = vand.u32 2147483647, %v5791_v5  ;;  %vm5819_vm6 = vcmp.lt.f32.partialorder %v949_v62, 0.0004427343  ;;  %v8038_v62 = vld [vmem:[#allocation9_spill] sm:$0xff] }
 0x1d9   :  { %8028 = vst [vmem:[#allocation11_spill] sm:$0xff] %v5804_v29  ;;  %v852_v36 = vsel %vm851_vm5, %v849_v55, %v846_v47  ;;  %v603_v58 = vsub.f32 0.0, %v555_v43  ;;  %v586_v50 = vsub.f32 0.0, %v538_v40  ;;  %v945_v54 = vmul.f32 0.6931472, %v4820_v20  ;;  %v8037_v47 = vld [vmem:[#allocation8_spill] sm:$0xff] }
 0x1da   :  { %8030 = vst [vmem:[#allocation6_spill] sm:$0xff] %v5812_v53  ;;  %v8033_v31 = vmax.f32 %v5592_v23, 0.0  ;;  %4833 = vlog2.f32 %v1024_v22  ;;  %v970_v14 = vadd.f32 1.0, %v5808_v12  ;;  %v5828_v4 = vpop.eup %4827  ;;  %v8035_v11 = vmax.f32 %v5508_v57, 0.0 }
 0x1db   :  { %v948_v2 = vmul.f32 %v5702_v61, %v947_v56  ;;  %v5838_v20 = vadd.f32 %v8037_v47, %v8022_v46  ;;  %v5840_v23 = vpop.eup %4829  ;;  %4835 = vlog2.f32 %v853_v8  ;;  %v612_v45 = vsub.f32 0.0, %v564_v30 }
 0x1dc   :  { %v5825_v19 = vadd.f32 %v852_v36, %v8033_v31  ;;  %v5832_v25 = vadd.f32 %v834_v48, %v8035_v11  ;;  %v5846_v57 = vadd.f32 %v8038_v62, %v5744_v17  ;;  %v1027_v43 = vmul.f32 -0.5, %v5778_v21 }
 0x1dd   :  { %v689_v40 = vmul.f32 1.442695, %v603_v58  ;;  %v655_v22 = vmul.f32 1.442695, %v586_v50  ;;  %v951_v46 = vsel %vm5819_vm6, %v948_v2, %v945_v54  ;;  %v1030_v56 = vand.u32 2147483647, %v5778_v21 }
 0x1de   :  { %8034 = vst [vmem:[#allocation7_spill] sm:$0xff] %v5825_v19  ;;  %8036 = vst [vmem:[#allocation32_spill] sm:$0xff] %v5832_v25  ;;  %4837 = vlog2.f32 %v970_v14  ;;  %v871_v48 = vadd.f32 1.0, %v5828_v4  ;;  %v856_v8 = vmul.f32 -0.5, %v5793_v27  ;;  %v1105_v30 = vadd.f32 1.0, %v5840_v23 }
 0x1df   :  { %4839 = vpow2.f32 %v655_v22  ;;  %v539_v31 = vand.u32 2147483647, %v5838_v20  ;;  %v5857_v11 = vpop.eup %4831  ;;  %v707_v34 = vmul.f32 1.442695, %v612_v45  ;;  %v1028_v2 = vadd.f32 1.0, %v1027_v43  ;;  %v8043_v45 = vld [vmem:[#allocation10_spill] sm:$0xff] }
 0x1e0   :  { %v859_v14 = vand.u32 2147483647, %v5793_v27  ;;  %v973_v47 = vmul.f32 -0.5, %v5808_v12  ;;  %4841 = vpow2.f32 %v689_v40  ;;  %v8039_v62 = vmax.f32 %v5535_v26, 0.0 }
 0x1e1   :  { %vm5868_vm7 = vcmp.lt.f32.partialorder %v1030_v56, 0.0004427343  ;;  %4843 = vlog2.f32 %v871_v48  ;;  %v587_v61 = vsub.f32 0.0, %v539_v31  ;;  %v5874_v50 = vadd.f32 %v8043_v45, %v5420_v6  ;;  %v8054_v31 = vld [vmem:[#allocation13_spill] sm:$0xff] }
 0x1e2   :  { %v5866_v22 = vadd.f32 %v951_v46, %v8039_v62  ;;  %v857_v43 = vadd.f32 1.0, %v856_v8  ;;  %v976_v54 = vand.u32 2147483647, %v5808_v12  ;;  %4845 = vlog2.f32 %v1105_v30 }
 0x1e3   :  { %v880_v40 = vadd.f32 1.0, %v5857_v11  ;;  %v874_v26 = vmul.f32 -0.5, %v5828_v4  ;;  %4847 = vpow2.f32 %v707_v34  ;;  %v558_v46 = vand.u32 2147483647, %v5846_v57  ;;  %v8046_v34 = vld [vmem:[#allocation12_spill] sm:$0xff] }
 0x1e4   :  { %8040 = vst [vmem:[#allocation8_spill] sm:$0xff] %v5866_v22  ;;  %v4834_v55 = vpop.eup %4833  ;;  %v541_v56 = vand.u32 2147483647, %v5874_v50  ;;  %v1029_v48 = vmul.f32 %v5778_v21, %v1028_v2  ;;  %vm5882_vm8 = vcmp.lt.f32.partialorder %v859_v14, 0.0004427343  ;;  %v974_v8 = vadd.f32 1.0, %v973_v47 }
 0x1e5   :  { %v1108_v62 = vmul.f32 -0.5, %v5840_v23  ;;  %v4836_v30 = vpop.eup %4835  ;;  %v877_v45 = vand.u32 2147483647, %v5828_v4  ;;  %v657_v58 = vmul.f32 1.442695, %v587_v61  ;;  %v5890_v22 = vadd.f32 %v8046_v34, %v5420_v6 }
 0x1e6   :  { %v589_v53 = vsub.f32 0.0, %v541_v56  ;;  %v1026_v29 = vmul.f32 0.6931472, %v4834_v55  ;;  %v858_v19 = vmul.f32 %v5793_v27, %v857_v43  ;;  %4849 = vlog2.f32 %v880_v40  ;;  %v8061_v27 = vld [vmem:[#allocation15_spill] sm:$0xff] }
 0x1e7   :  { %v883_v21 = vmul.f32 -0.5, %v5857_v11  ;;  %vm5894_vm9 = vcmp.lt.f32.partialorder %v976_v54, 0.0004427343  ;;  %v875_v47 = vadd.f32 1.0, %v874_v26  ;;  %v606_v25 = vsub.f32 0.0, %v558_v46 }
 0x1e8   :  { %v4838_v2 = vpop.eup %4837  ;;  %v661_v49 = vmul.f32 1.442695, %v589_v53  ;;  %v855_v56 = vmul.f32 0.6931472, %v4836_v30  ;;  %v975_v6 = vmul.f32 %v5808_v12, %v974_v8  ;;  %v1109_v34 = vadd.f32 1.0, %v1108_v62 }
 0x1e9   :  { %v5898_v61 = vpop.eup %4839  ;;  %v1111_v55 = vand.u32 2147483647, %v5840_v23  ;;  %vm5902_vm10 = vcmp.lt.f32.partialorder %v877_v45, 0.0004427343  ;;  %4851 = vpow2.f32 %v657_v58  ;;  %v542_v43 = vand.u32 2147483647, %v5890_v22 }
 0x1ea   :  { %v898_v54 = vadd.f32 1.0, %v5898_v61  ;;  %v5908_v40 = vpop.eup %4841  ;;  %v1032_v53 = vsel %vm5868_vm7, %v1029_v48, %v1026_v29  ;;  %v884_v26 = vadd.f32 1.0, %v883_v21  ;;  %v886_v12 = vand.u32 2147483647, %v5857_v11 }
 0x1eb   :  { %4853 = vpow2.f32 %v661_v49  ;;  %v4844_v46 = vpop.eup %4843  ;;  %v972_v8 = vmul.f32 0.6931472, %v4838_v2  ;;  %v876_v62 = vmul.f32 %v5828_v4, %v875_v47  ;;  %v695_v30 = vmul.f32 1.442695, %v606_v25 }
 0x1ec   :  { %4855 = vlog2.f32 %v898_v54  ;;  %v4846_v45 = vpop.eup %4845  ;;  %v861_v58 = vsel %vm5882_vm8, %v858_v19, %v855_v56  ;;  %v1110_v41 = vmul.f32 %v5840_v23, %v1109_v34  ;;  %vm5917_vm11 = vcmp.lt.f32.partialorder %v1111_v55, 0.0004427343 }
 0x1ed   :  { %v5922_v36 = vpop.eup %4847  ;;  %v8053_v49 = vmax.f32 %v5656_v33, 0.0  ;;  %v1051_v4 = vadd.f32 1.0, %v5908_v40  ;;  %v590_v25 = vsub.f32 0.0, %v542_v43  ;;  %v5931_v19 = vadd.f32 %v8054_v31, %v5603_v37  ;;  %v8057_v33 = vld [vmem:[#allocation14_spill] sm:$0xff] }
 0x1ee   :  { %v873_v23 = vmul.f32 0.6931472, %v4844_v46  ;;  %v885_v21 = vmul.f32 %v5857_v11, %v884_v26  ;;  %vm5934_vm12 = vcmp.lt.f32.partialorder %v886_v12, 0.0004427343  ;;  %v901_v47 = vmul.f32 -0.5, %v5898_v61 }
 0x1ef   :  { %v5926_v48 = vadd.f32 %v1032_v53, %v8053_v49  ;;  %v5941_v56 = vadd.f32 %v8057_v33, %v5603_v37  ;;  %v8058_v34 = vmax.f32 %v5661_v28, 0.0  ;;  %v978_v54 = vsel %vm5894_vm9, %v975_v6, %v972_v8 }
 0x1f0   :  { %v1107_v43 = vmul.f32 0.6931472, %v4846_v45  ;;  %4857 = vpow2.f32 %v695_v30  ;;  %v4850_v11 = vpop.eup %4849  ;;  %v1054_v53 = vmul.f32 -0.5, %v5908_v40  ;;  %v1132_v26 = vadd.f32 1.0, %v5922_v36 }
 0x1f1   :  { %v5945_v55 = vadd.f32 %v861_v58, %v8058_v34  ;;  %v544_v46 = vand.u32 2147483647, %v5931_v19  ;;  %4859 = vlog2.f32 %v1051_v4  ;;  %v663_v28 = vmul.f32 1.442695, %v590_v25 }
 0x1f2   :  { %v545_v58 = vand.u32 2147483647, %v5941_v56  ;;  %v8059_v14 = vmax.f32 %v5665_v0, 0.0  ;;  %v879_v8 = vsel %vm5902_vm10, %v876_v62, %v873_v23  ;;  %v902_v30 = vadd.f32 1.0, %v901_v47 }
 0x1f3   :  { %v592_v45 = vsub.f32 0.0, %v544_v46  ;;  %v5961_v49 = vpop.eup %4851  ;;  %v1113_v31 = vsel %vm5917_vm11, %v1110_v41, %v1107_v43  ;;  %v882_v4 = vmul.f32 0.6931472, %v4850_v11  ;;  %v904_v33 = vand.u32 2147483647, %v5898_v61 }
 0x1f4   :  { %v5957_v6 = vadd.f32 %v978_v54, %v8059_v14  ;;  %v1135_v25 = vmul.f32 -0.5, %v5922_v36  ;;  %v1055_v0 = vadd.f32 1.0, %v1054_v53  ;;  %4861 = vlog2.f32 %v1132_v26  ;;  %v8060_v14 = vld [vmem:[#allocation21_spill] sm:$0xff] }
 0x1f5   :  { %v5967_v34 = vpop.eup %4853  ;;  %v667_v54 = vmul.f32 1.442695, %v592_v45  ;;  %v5971_v62 = vadd.f32 %v8061_v27, %v8060_v14  ;;  %v8062_v47 = vmax.f32 %v5683_v3, 0.0  ;;  %v1057_v41 = vand.u32 2147483647, %v5908_v40 }
 0x1f6   :  { %v4856_v23 = vpop.eup %4855  ;;  %4863 = vpow2.f32 %v663_v28  ;;  %v593_v9 = vsub.f32 0.0, %v545_v58  ;;  %v8063_v43 = vmax.f32 %v5700_v13, 0.0  ;;  %v903_v26 = vmul.f32 %v5898_v61, %v902_v30 }
 0x1f7   :  { %v5975_v46 = vadd.f32 %v879_v8, %v8062_v47  ;;  %v900_v53 = vmul.f32 0.6931472, %v4856_v23  ;;  %4865 = vpow2.f32 %v667_v54  ;;  %v888_v45 = vsel %vm5934_vm12, %v885_v21, %v882_v4 }
 0x1f8   :  { %v5980_v11 = vadd.f32 %v1113_v31, %v8063_v43  ;;  %vm905_vm13 = vcmp.lt.f32.partialorder %v904_v33, 0.0004427343  ;;  %v1136_v27 = vadd.f32 1.0, %v1135_v25  ;;  %v907_v3 = vadd.f32 1.0, %v5961_v49 }
 0x1f9   :  { %v5987_v8 = vmul.f32 %v5908_v40, %v1055_v0  ;;  %v906_v28 = vsel %vm905_vm13, %v903_v26, %v900_v53  ;;  %v925_v58 = vadd.f32 1.0, %v5967_v34  ;;  %v547_v13 = vand.u32 2147483647, %v5971_v62  ;;  %v8067_v40 = vld [vmem:[#allocation16_spill] sm:$0xff]  ;;  %v8069_v53 = vld [vmem:[#allocation19_spill] sm:$0xff] }
 0x1fa   :  { %v5991_v31 = vpop.eup %4857  ;;  %vm5993_vm14 = vcmp.lt.f32.partialorder %v1057_v41, 0.0004427343  ;;  %v8066_v21 = vmax.f32 %v5772_v42, 0.0  ;;  %v1138_v30 = vand.u32 2147483647, %v5922_v36  ;;  %v6004_v33 = vadd.f32 %v8067_v40, %v8060_v14 }
 0x1fb   :  { %v669_v4 = vmul.f32 1.442695, %v593_v9  ;;  %v8068_v25 = vmax.f32 %v5728_v32, 0.0  ;;  %v910_v54 = vmul.f32 -0.5, %v5961_v49  ;;  %v913_v23 = vand.u32 2147483647, %v5961_v49  ;;  %v4860_v41 = vpop.eup %4859 }
 0x1fc   :  { %v5999_v2 = vadd.f32 %v906_v28, %v8066_v21  ;;  %v595_v47 = vsub.f32 0.0, %v547_v13  ;;  %v6015_v43 = vmul.f32 %v5922_v36, %v1136_v27  ;;  %4867 = vlog2.f32 %v907_v3  ;;  %v8070_v13 = vld [vmem:[#allocation20_spill] sm:$0xff] }
 0x1fd   :  { %v6008_v0 = vadd.f32 %v888_v45, %v8068_v25  ;;  %v1078_v9 = vadd.f32 1.0, %v5991_v31  ;;  %4869 = vlog2.f32 %v925_v58  ;;  %v6021_v26 = vadd.f32 %v8069_v53, %v5644_v15 }
 0x1fe   :  { %v673_v32 = vmul.f32 1.442695, %v595_v47  ;;  %v1081_v45 = vmul.f32 -0.5, %v5991_v31  ;;  %4871 = vpow2.f32 %v669_v4  ;;  %v548_v28 = vand.u32 2147483647, %v6004_v33  ;;  %v4862_v27 = vpop.eup %4861 }
 0x1ff   :  { %v6027_v36 = vadd.f32 %v8070_v13, %v5644_v15  ;;  %v1053_v3 = vmul.f32 0.6931472, %v4860_v41  ;;  %vm6029_vm15 = vcmp.lt.f32.partialorder %v1138_v30, 0.0004427343  ;;  %v550_v40 = vand.u32 2147483647, %v6021_v26 }
 0x200   :  { %4873 = vpow2.f32 %v673_v32  ;;  %v6035_v25 = vpop.eup %4863  ;;  %v911_v4 = vadd.f32 1.0, %v910_v54  ;;  %v1084_v47 = vand.u32 2147483647, %v5991_v31  ;;  %v928_v53 = vmul.f32 -0.5, %v5967_v34 }
 0x201   :  { %v596_v15 = vsub.f32 0.0, %v548_v28  ;;  %v6039_v13 = vpop.eup %4865  ;;  %v598_v41 = vsub.f32 0.0, %v550_v40  ;;  %v551_v30 = vand.u32 2147483647, %v6027_v36  ;;  %v1206_v42 = vpack.c.bf16 %v5572_v35, %v5526_v1 }
 0x202   :  { %v1207_v32 = vpack.c.bf16 %v5576_v39, %v5541_v52  ;;  %4875 = vlog2.f32 %v1078_v9  ;;  %v1082_v58 = vadd.f32 1.0, %v1081_v45  ;;  %v931_v54 = vand.u32 2147483647, %v5967_v34  ;;  %v8075_v9 = vld [vmem:[#allocation18_spill] sm:$0xff]  ;;  %v8076_v45 = vld [vmem:[#allocation17_spill] sm:$0xff] }
 0x203   :  { %v952_v37 = vadd.f32 1.0, %v6039_v13  ;;  %v1059_v28 = vsel %vm5993_vm14, %v5987_v8, %v1053_v3  ;;  %v937_v40 = vmul.f32 -0.5, %v6035_v25  ;;  %v675_v29 = vmul.f32 1.442695, %v596_v15  ;;  %1341 = vmatprep.subr.bf16.mxu1 %v1206_v42 }
 0x204   :  { %v679_v14 = vmul.f32 1.442695, %v598_v41  ;;  %4403 = vmatprep.subr.bf16.mxu0 %v1207_v32  ;;  %v1134_v1 = vmul.f32 0.6931472, %v4862_v27  ;;  %vm6052_vm1 = vcmp.lt.f32.partialorder %v913_v23, 0.0004427343  ;;  %v8077_v12 = vpack.c.bf16 %v8075_v9, %v8076_v45 }
 0x205   :  { %v934_v52 = vadd.f32 1.0, %v6035_v25  ;;  %4877 = vlog2.f32 %v952_v37  ;;  %v599_v39 = vsub.f32 0.0, %v551_v30  ;;  %4404 = vmatpush3.bf16.msra.mxu0 %v1207_v32  ;;  %v6061_v8 = vmul.f32 %v5961_v49, %v911_v4  ;;  %v8078_v23 = vld [vmem:[#allocation22_spill] sm:$0xff]  ;;  %v8082_v32 = vld [vmem:[#allocation23_spill] sm:$0xff] }
 0x206   :  { %1342 = vmatpush1.bf16.msra.mxu1 %v8077_v12  ;;  %v929_v61 = vadd.f32 1.0, %v928_v53  ;;  %v1210_v42 = vpack.c.bf16 %v5566_v44, %v5500_v51  ;;  %v6067_v27 = vadd.f32 %v8078_v23, %v5642_v38  ;;  %v4868_v3 = vpop.eup %4867  ;;  %v8079_v37 = vmax.f32 %v5768_v24, 0.0  ;;  %v8086_v23 = vld [vmem:[#allocation24_spill] sm:$0xff] }
 0x207   :  { %v955_v41 = vmul.f32 -0.5, %v6039_v13  ;;  %v499_v12 = vmax.f32 %v5971_v62, 0.0  ;;  %4879 = vpow2.f32 %v675_v29  ;;  %v4870_v49 = vpop.eup %4869  ;;  %v6076_v4 = vmul.f32 %v5991_v31, %v1082_v58 }
 0x208   :  { %v6071_v15 = vadd.f32 %v1059_v28, %v8079_v37  ;;  %v938_v53 = vadd.f32 1.0, %v937_v40  ;;  %4881 = vpow2.f32 %v679_v14  ;;  %v681_v51 = vmul.f32 1.442695, %v599_v39  ;;  %4405 = vmatprep.subr.bf16.mxu0 %v1210_v42  ;;  %v6078_v44 = vpop.eup %4871 }
 0x209   :  { %v1140_v24 = vsel %vm6029_vm15, %v6015_v43, %v1134_v1  ;;  %vm6083_vm2 = vcmp.lt.f32.partialorder %v931_v54, 0.0004427343  ;;  %4883 = vlog2.f32 %v934_v52  ;;  %v553_v29 = vand.u32 2147483647, %v6067_v27  ;;  %4406 = vmatpush3.bf16.msra.mxu0 %v1210_v42 }
 0x20a   :  { %v6088_v31 = vpop.eup %4873  ;;  %v909_v58 = vmul.f32 0.6931472, %v4868_v3  ;;  %v930_v14 = vmul.f32 %v5967_v34, %v929_v61  ;;  %4885 = vpow2.f32 %v681_v51  ;;  %v6093_v28 = vadd.f32 %v8082_v32, %v5642_v38 }
 0x20b   :  { %v927_v21 = vmul.f32 0.6931472, %v4870_v49  ;;  %v940_v43 = vand.u32 2147483647, %v6035_v25  ;;  %v956_v54 = vadd.f32 1.0, %v955_v41  ;;  %v979_v40 = vadd.f32 1.0, %v6088_v31 }
 0x20c   :  { %v8083_v1 = vmax.f32 %v5791_v5, 0.0  ;;  %vm6101_vm3 = vcmp.lt.f32.partialorder %v1084_v47, 0.0004427343  ;;  %v6106_v34 = vmul.f32 %v6035_v25, %v938_v53  ;;  %v601_v9 = vsub.f32 0.0, %v553_v29  ;;  %v4876_v45 = vpop.eup %4875  ;;  %v8087_v47 = vld [vmem:[#allocation25_spill] sm:$0xff] }
 0x20d   :  { %v554_v38 = vand.u32 2147483647, %v6093_v28  ;;  %v958_v61 = vand.u32 2147483647, %v6039_v13  ;;  %v961_v42 = vadd.f32 1.0, %v6078_v44  ;;  %v6113_v5 = vadd.f32 %v8086_v23, %v5744_v17  ;;  %v8105_v23 = vld [vmem:[#allocation29_spill] sm:$0xff] }
 0x20e   :  { %v6099_v52 = vadd.f32 %v1140_v24, %v8083_v1  ;;  %v6117_v3 = vadd.f32 %v8087_v47, %v5744_v17  ;;  %v915_v25 = vsel %vm6052_vm1, %v6061_v8, %v909_v58  ;;  %v685_v37 = vmul.f32 1.442695, %v601_v9 }
 0x20f   :  { %v602_v41 = vsub.f32 0.0, %v554_v38  ;;  %v1209_v49 = vpack.c.bf16 %v5761_v16, %v5690_v7  ;;  %v4878_v53 = vpop.eup %4877  ;;  %v933_v51 = vsel %vm6083_vm2, %v930_v14, %v927_v21  ;;  %v957_v24 = vmul.f32 %v6039_v13, %v956_v54 }
 0x210   :  { %4887 = vlog2.f32 %v979_v40  ;;  %v556_v29 = vand.u32 2147483647, %v6113_v5  ;;  %v954_v17 = vmul.f32 0.6931472, %v4878_v53  ;;  %v557_v35 = vand.u32 2147483647, %v6117_v3 }
 0x211   :  { %4889 = vpow2.f32 %v685_v37  ;;  %v687_v32 = vmul.f32 1.442695, %v602_v41  ;;  %1343 = vmatprep.subr.bf16.mxu1 %v1209_v49  ;;  %v6129_v8 = vpop.eup %4879  ;;  %v1080_v58 = vmul.f32 0.6931472, %v4876_v45  ;;  %vm6131_vm4 = vcmp.lt.f32.partialorder %v940_v43, 0.0004427343 }
 0x212   :  { %vm959_vm5 = vcmp.lt.f32.partialorder %v958_v61, 0.0004427343  ;;  %4891 = vlog2.f32 %v961_v42  ;;  %v8090_v13 = vpack.c.bf16 %v5631_v18, %v5583_v63  ;;  %v6139_v30 = vpop.eup %4881  ;;  %v964_v21 = vmul.f32 -0.5, %v6078_v44 }
 0x213   :  { %v960_v14 = vsel %vm959_vm5, %v957_v24, %v954_v17  ;;  %4893 = vpow2.f32 %v687_v32  ;;  %v1213_v43 = vpack.c.bf16 %v5797_v59, %v5716_v10  ;;  %v4884_v54 = vpop.eup %4883  ;;  %v8091_v40 = vmax.f32 %v5838_v20, 0.0 }
 0x214   :  { %1344 = vmatpush1.bf16.msra.mxu1 %v8090_v13  ;;  %v8092_v9 = vmax.f32 %v5874_v50, 0.0  ;;  %v8093_v63 = vmax.f32 %v5931_v19, 0.0  ;;  %v502_v45 = vmax.f32 %v6021_v26, 0.0  ;;  %v6157_v61 = vpop.eup %4885  ;;  %v988_v42 = vadd.f32 1.0, %v6129_v8 }
 0x215   :  { %v6146_v1 = vadd.f32 %v915_v25, %v8091_v40  ;;  %v1006_v10 = vadd.f32 1.0, %v6139_v30  ;;  %v604_v59 = vsub.f32 0.0, %v556_v29  ;;  %v605_v20 = vsub.f32 0.0, %v557_v35  ;;  %4407 = vmatprep.subr.bf16.mxu0 %v1213_v43 }
 0x216   :  { %v6150_v38 = vadd.f32 %v933_v51, %v8092_v9  ;;  %v6154_v18 = vadd.f32 %v960_v14, %v8093_v63  ;;  %v1086_v50 = vsel %vm6101_vm3, %v6076_v4, %v1080_v58  ;;  %v1015_v47 = vadd.f32 1.0, %v6157_v61  ;;  %4408 = vmatpush3.bf16.msra.mxu0 %v1213_v43  ;;  %v8095_v58 = vld [vmem:[#allocation31_spill] sm:$0xff]  ;;  %v8096_v14 = vld [vmem:[#allocation30_spill] sm:$0xff] }
 0x217   :  { %v6168_v25 = vmul.f32 0.6931472, %v4884_v54  ;;  %v965_v37 = vadd.f32 1.0, %v964_v21  ;;  %v982_v41 = vmul.f32 -0.5, %v6088_v31  ;;  %4895 = vlog2.f32 %v1006_v10  ;;  %v8097_v21 = vld [vmem:[#allocation26_spill] sm:$0xff] }
 0x218   :  { %v967_v49 = vand.u32 2147483647, %v6078_v44  ;;  %v991_v53 = vmul.f32 -0.5, %v6129_v8  ;;  %v1009_v4 = vmul.f32 -0.5, %v6139_v30  ;;  %4897 = vlog2.f32 %v1015_v47 }
 0x219   :  { %v8094_v39 = vmax.f32 %v5846_v57, 0.0  ;;  %4899 = vlog2.f32 %v988_v42  ;;  %v691_v24 = vmul.f32 1.442695, %v604_v59  ;;  %v693_v29 = vmul.f32 1.442695, %v605_v20  ;;  %v8100_v20 = vld [vmem:[#allocation27_spill] sm:$0xff] }
 0x21a   :  { %v4888_v17 = vpop.eup %4887  ;;  %v985_v32 = vand.u32 2147483647, %v6088_v31  ;;  %v1216_v13 = vpack.c.bf16 %v8095_v58, %v5607_v60  ;;  %v6184_v43 = vadd.f32 %v8097_v21, %v8096_v14  ;;  %v6193_v40 = vmul.f32 %v6078_v44, %v965_v37 }
 0x21b   :  { %v6176_v51 = vadd.f32 %v1086_v50, %v8094_v39  ;;  %v6186_v54 = vpop.eup %4889  ;;  %v983_v9 = vadd.f32 1.0, %v982_v41  ;;  %4901 = vpow2.f32 %v691_v24  ;;  %vm6195_vm6 = vcmp.lt.f32.partialorder %v967_v49, 0.0004427343  ;;  %v8103_v39 = vld [vmem:[#allocation5_spill] sm:$0xff]  ;;  %v8104_v24 = vld [vmem:[#allocation28_spill] sm:$0xff] }
 0x21c   :  { %v4892_v63 = vpop.eup %4891  ;;  %v992_v60 = vadd.f32 1.0, %v991_v53  ;;  %v1010_v10 = vadd.f32 1.0, %v1009_v4  ;;  %v1018_v59 = vmul.f32 -0.5, %v6157_v61  ;;  %4409 = vmatprep.subr.bf16.mxu0 %v1216_v13  ;;  %v6202_v50 = vadd.f32 %v8100_v20, %v8096_v14 }
 0x21d   :  { %v6204_v47 = vpop.eup %4893  ;;  %v981_v44 = vmul.f32 0.6931472, %v4888_v17  ;;  %v1033_v37 = vadd.f32 1.0, %v6186_v54  ;;  %4903 = vpow2.f32 %v693_v29  ;;  %v559_v41 = vand.u32 2147483647, %v6184_v43  ;;  %4410 = vmatpush3.bf16.msra.mxu0 %v1216_v13 }
 0x21e   :  { %vm6208_vm7 = vcmp.lt.f32.partialorder %v985_v32, 0.0004427343  ;;  %v994_v53 = vand.u32 2147483647, %v6129_v8  ;;  %v1042_v4 = vadd.f32 1.0, %v6204_v47  ;;  %v6216_v58 = vadd.f32 %v8104_v24, %v8103_v39 }
 0x21f   :  { %v963_v14 = vmul.f32 0.6931472, %v4892_v63  ;;  %v984_v17 = vmul.f32 %v6088_v31, %v983_v9  ;;  %v1012_v29 = vand.u32 2147483647, %v6139_v30  ;;  %v607_v21 = vsub.f32 0.0, %v559_v41 }
 0x220   :  { %v6221_v13 = vmul.f32 %v6129_v8, %v992_v60  ;;  %v1019_v32 = vadd.f32 1.0, %v1018_v59  ;;  %v1021_v20 = vand.u32 2147483647, %v6157_v61  ;;  %v560_v35 = vand.u32 2147483647, %v6202_v50 }
 0x221   :  { %v4896_v19 = vpop.eup %4895  ;;  %v987_v16 = vsel %vm6208_vm7, %v984_v17, %v981_v44  ;;  %v1011_v24 = vmul.f32 %v6139_v30, %v1010_v10  ;;  %4905 = vlog2.f32 %v1033_v37  ;;  %v697_v63 = vmul.f32 1.442695, %v607_v21  ;;  %v8106_v30 = vld [vmem:[#allocation32_spill] sm:$0xff] }
 0x222   :  { %v4898_v31 = vpop.eup %4897  ;;  %v1008_v9 = vmul.f32 0.6931472, %v4896_v19  ;;  %4907 = vlog2.f32 %v1042_v4  ;;  %v608_v41 = vsub.f32 0.0, %v560_v35  ;;  %v562_v8 = vand.u32 2147483647, %v6216_v58 }
 0x223   :  { %v4900_v60 = vpop.eup %4899  ;;  %vm1013_vm8 = vcmp.lt.f32.partialorder %v1012_v29, 0.0004427343  ;;  %v1017_v59 = vmul.f32 0.6931472, %v4898_v31  ;;  %4909 = vpow2.f32 %v697_v63  ;;  %v6231_v57 = vadd.f32 %v8105_v23, %v8103_v39 }
 0x224   :  { %v1014_v49 = vsel %vm1013_vm8, %v1011_v24, %v1008_v9  ;;  %v699_v44 = vmul.f32 1.442695, %v608_v41  ;;  %v610_v17 = vsub.f32 0.0, %v562_v8  ;;  %v1212_v10 = vpack.c.bf16 %v5945_v55, %v8106_v30 }
 0x225   :  { %v6235_v37 = vpop.eup %4901  ;;  %v969_v19 = vsel %vm6195_vm6, %v6193_v40, %v963_v14  ;;  %v6242_v35 = vadd.f32 %v987_v16, %v499_v12  ;;  %v6246_v23 = vadd.f32 %v1014_v49, %v502_v45  ;;  %v563_v4 = vand.u32 2147483647, %v6231_v57  ;;  %v8109_v16 = vld [vmem:[#allocation7_spill] sm:$0xff] }
 0x226   :  { %v990_v39 = vmul.f32 0.6931472, %v4900_v60  ;;  %v1020_v29 = vmul.f32 %v6157_v61, %v1019_v32  ;;  %vm6250_vm9 = vcmp.lt.f32.partialorder %v1021_v20, 0.0004427343  ;;  %v1060_v42 = vadd.f32 1.0, %v6235_v37  ;;  %1345 = vmatprep.subr.bf16.mxu1 %v1212_v10  ;;  %v8110_v45 = vld [vmem:[#allocation11_spill] sm:$0xff] }
 0x227   :  { %v6255_v40 = vpop.eup %4903  ;;  %v1220_v62 = vpack.c.bf16 %v6246_v23, %v6242_v35  ;;  %4911 = vpow2.f32 %v699_v44  ;;  %v703_v26 = vmul.f32 1.442695, %v610_v17  ;;  %v611_v12 = vsub.f32 0.0, %v563_v4  ;;  %v1665_v35 = vld [vmem:[%s7919_s1 + $0x10] sm:$0xff]  ;;  %v1666_v23 = vld [vmem:[%s7919_s1 + $0x18] sm:$0xff] }
 0x228   :  { %v8111_v14 = vpack.c.bf16 %v8109_v16, %v8110_v45  ;;  %v1023_v61 = vsel %vm6250_vm9, %v1020_v29, %v1017_v59  ;;  %v1036_v21 = vmul.f32 -0.5, %v6186_v54  ;;  %4913 = vlog2.f32 %v1060_v42 }
 0x229   :  { %v1069_v32 = vadd.f32 1.0, %v6255_v40  ;;  %v8112_v20 = vmax.f32 %v5890_v22, 0.0  ;;  %v8113_v24 = vsel %vm6131_vm4, %v6106_v34, %v6168_v25  ;;  %vm6273_vm10 = vcmp.lt.f32.partialorder %v994_v53, 0.0004427343  ;;  %v8116_v22 = vld [vmem:[#allocation8_spill] sm:$0xff] }
 0x22a   :  { %1346 = vmatpush1.bf16.msra.mxu1 %v8111_v14  ;;  %v1045_v9 = vmul.f32 -0.5, %v6204_v47  ;;  %4915 = vpow2.f32 %v703_v26  ;;  %v996_v41 = vsel %vm6273_vm10, %v6221_v13, %v990_v39  ;;  %v705_v8 = vmul.f32 1.442695, %v611_v12  ;;  %v8119_v13 = vld [vmem:[#allocation6_spill] sm:$0xff] }
 0x22b   :  { %v1166_v63 = vadd.f32 %v8113_v24, %v8112_v20  ;;  %4917 = vlog2.f32 %v1069_v32  ;;  %v1219_v7 = vpack.c.bf16 %v5957_v6, %v8116_v22  ;;  %v4906_v60 = vpop.eup %4905  ;;  %v8117_v34 = vmax.f32 %v5941_v56, 0.0  ;;  %v5009_v22 = vld [vmem:[%s7916_s3] sm:$0xff] }
 0x22c   :  { %v8118_v53 = vmax.f32 %v6027_v36, 0.0  ;;  %v506_v49 = vmax.f32 %v6093_v28, 0.0  ;;  %v1063_v44 = vmul.f32 -0.5, %v6235_v37  ;;  %v4908_v17 = vpop.eup %4907  ;;  %v1037_v30 = vadd.f32 1.0, %v1036_v21  ;;  %v6390_v28 = vld [vmem:[%s7918_s2 + $0x50] sm:$0xff]  }
 0x22d   :  { %v1169_v25 = vadd.f32 %v969_v19, %v8117_v34  ;;  %4919 = vpow2.f32 %v705_v8  ;;  %4411 = vmatprep.subr.bf16.mxu0 %v1219_v7  ;;  %v1222_v10 = vpack.c.bf16 %v5926_v48, %v8119_v13  ;;  %v1215_v6 = vpack.c.bf16 %v6146_v1, %v6008_v0  ;;  %v6293_v4 = vpop.eup %4909  ;;  %v1664_v8 = vld [vmem:[%s7919_s1 + $0x8] sm:$0xff] }
 0x22e   :  { %v1175_v59 = vadd.f32 %v1023_v61, %v8118_v53  ;;  %v8120_v56 = vmax.f32 %v6004_v33, 0.0  ;;  %v1072_v19 = vmul.f32 -0.5, %v6255_v40  ;;  %4412 = vmatpush3.bf16.msra.mxu0 %v1219_v7  ;;  %v1225_v39 = vpack.c.bf16 %v6176_v51, %v6071_v15 }
 0x22f   :  { %v6302_v29 = vpack.c.bf16 %v6099_v52, %v5980_v11  ;;  %v1039_v48 = vand.u32 2147483647, %v6186_v54  ;;  %v1046_v55 = vadd.f32 1.0, %v1045_v9  ;;  %v1048_v0 = vand.u32 2147483647, %v6204_v47  ;;  %4413 = vmatprep.subr.bf16.mxu0 %v1222_v10  ;;  %1347 = vmatprep.subr.bf16.mxu1 %v1215_v6 }
 0x230   :  { %v1172_v36 = vadd.f32 %v996_v41, %v8120_v56  ;;  %v1087_v1 = vadd.f32 1.0, %v6293_v4  ;;  %v1035_v33 = vmul.f32 0.6931472, %v4906_v60  ;;  %v1064_v42 = vadd.f32 1.0, %v1063_v44 }
 0x231   :  { %v8121_v26 = vpack.c.bf16 %v5999_v2, %v5975_v46  ;;  %v1218_v15 = vpack.c.bf16 %v1169_v25, %v1166_v63  ;;  %v508_v11 = vmax.f32 %v6113_v5, 0.0  ;;  %v1066_v52 = vand.u32 2147483647, %v6235_v37  ;;  %v6313_v16 = vpop.eup %4911  ;;  %v5010_v25 = vld [vmem:[%s7916_s3 + $0x8] sm:$0xff]  ;;  %v6418_v2 = vld [vmem:[%s7918_s2 + $0x58] sm:$0xff]  }
 0x232   :  { %v1221_v51 = vpack.c.bf16 %v1175_v59, %v1172_v36  ;;  %v1075_v12 = vand.u32 2147483647, %v6255_v40  ;;  %4921 = vlog2.f32 %v1087_v1  ;;  %v1038_v45 = vmul.f32 %v6186_v54, %v1037_v30  ;;  %4414 = vmatpush3.bf16.msra.mxu0 %v1222_v10  ;;  %v4914_v21 = vpop.eup %4913 }
 0x233   :  { %1348 = vmatpush1.bf16.msra.mxu1 %v8121_v26  ;;  %v1044_v14 = vmul.f32 0.6931472, %v4908_v17  ;;  %v1073_v61 = vadd.f32 1.0, %v1072_v19  ;;  %vm6316_vm11 = vcmp.lt.f32.partialorder %v1039_v48, 0.0004427343  ;;  %v509_v5 = vmax.f32 %v6117_v3, 0.0  ;;  %4415 = vmatprep.subr.bf16.mxu0 %v1225_v39 }
 0x234   :  { %1349 = vmatprep.subr.bf16.mxu1 %v1218_v15  ;;  %vm6320_vm12 = vcmp.lt.f32.partialorder %v1048_v0, 0.0004427343  ;;  %v1096_v32 = vadd.f32 1.0, %v6313_v16  ;;  %v7938_v20 = vmov 1   ;;  %v6327_v54 = vpop.eup %4915  ;;  %v1041_v24 = vsel %vm6316_vm11, %v1038_v45, %v1035_v33  ;;  %v1663_v3 = vld [vmem:[%s7919_s1] sm:$0xff]  ;;  %v6377_v19 = vld [vmem:[%s7918_s2 + $0x48] sm:$0xff]  }
 0x235   :  { %4638 = vset.pattern.permute.xlu1 %v7938_v20  ;;  %v1047_v63 = vmul.f32 %v6204_v47, %v1046_v55  ;;  %v1062_v31 = vmul.f32 0.6931472, %v4914_v21  ;;  %v1065_v9 = vmul.f32 %v6235_v37, %v1064_v42  ;;  %v8126_v41 = vpack.c.bf16 %v6154_v18, %v6150_v38  ;;  %v4918_v47 = vpop.eup %4917  ;;  %4639 = vset.pattern.permute.xlu0 %v7938_v20  ;;  %v1667_v26 = vld [vmem:[%s7919_s1 + $0x20] sm:$0xff]  ;;  %v1668_v15 = vld [vmem:[%s7919_s1 + $0x28] sm:$0xff] }
 0x236   :  { %1230 = vperm.xlu1 %4638, %v5009_v22   ;;  %vm1067_vm13 = vcmp.lt.f32.partialorder %v1066_v52, 0.0004427343  ;;  %vm6345_vm14 = vcmp.lt.f32.partialorder %v1075_v12, 0.0004427343  ;;  %4923 = vlog2.f32 %v1096_v32  ;;  %v1114_v38 = vadd.f32 1.0, %v6327_v54  ;;  %4416 = vmatpush3.bf16.msra.mxu0 %v1225_v39  ;;  %v5015_v32 = vld [vmem:[%s7916_s3 + $0x28] sm:$0xff] }
 0x237   :  { %1350 = vmatpush1.bf16.msra.mxu1 %v8126_v41  ;;  %v1050_v18 = vsel %vm6320_vm12, %v1047_v63, %v1044_v14  ;;  %v1068_v7 = vsel %vm1067_vm13, %v1065_v9, %v1062_v31  ;;  %v1071_v60 = vmul.f32 0.6931472, %v4918_v47  ;;  %v1074_v34 = vmul.f32 %v6255_v40, %v1073_v61  ;;  %1234 = vperm.xlu0 %4639, %v5010_v25   ;;  %v6357_v53 = vpop.eup %4919  ;;  %v5014_v14 = vld [vmem:[%s7916_s3 + $0x30] sm:$0xff]  ;;  %v1670_v9 = vld [vmem:[%s7919_s1 + $0x38] sm:$0xff]  ;;  %v4664_v47 = vld [vmem:[%s7918_s2 + $0x60] sm:$0xff]  }
 0x238   :  { %1351 = vmatprep.subr.bf16.mxu1 %v1221_v51  ;;  %v8129_v59 = vmax.f32 %v6067_v27, 0.0  ;;  %v1180_v17 = vadd.f32 %v1068_v7, %v508_v11  ;;  %4925 = vlog2.f32 %v1114_v38  ;;  %4417 = vmatprep.subr.bf16.mxu0 %v6302_v29  ;;  %v1679_v30 = vpack.c.bf16 %v1664_v8, %v1663_v3  ;;  %v5011_v27 = vld [vmem:[%s7916_s3 + $0x10] sm:$0xff] }
 0x239   :  { %v1077_v13 = vsel %vm6345_vm14, %v1074_v34, %v1071_v60  ;;  %v1090_v40 = vmul.f32 -0.5, %v6293_v4  ;;  %v1123_v10 = vadd.f32 1.0, %v6357_v53  ;;  %v1178_v6 = vadd.f32 %v1050_v18, %v506_v49  ;;  %v5012_v49 = vld [vmem:[%s7916_s3 + $0x20] sm:$0xff]  ;;  %v1669_v31 = vld [vmem:[%s7919_s1 + $0x30] sm:$0xff] }
 0x23a   :  { %v1177_v44 = vadd.f32 %v1041_v24, %v8129_v59  ;;  %1238 = vperm.xlu1 %4638, %v5011_v27   ;;  %v1181_v36 = vadd.f32 %v1077_v13, %v509_v5  ;;  %4418 = vmatpush3.bf16.msra.mxu0 %v6302_v29  ;;  %v1099_v48 = vmul.f32 -0.5, %v6313_v16  ;;  %v1126_v1 = vmul.f32 -0.5, %v6357_v53  ;;  %v5013_v29 = vld [vmem:[%s7916_s3 + $0x18] sm:$0xff]  ;;  %v4665_v27 = vld [vmem:[%s7918_s2 + $0x68] sm:$0xff]  }
 0x23b   :  { %1352 = vmatpush1.bf16.msra.mxu1 %v1220_v62  ;;  %v1117_v62 = vmul.f32 -0.5, %v6327_v54  ;;  %4927 = vlog2.f32 %v1123_v10  ;;  %1246 = vperm.xlu0 %4639, %v5012_v49   ;;  %v1091_v0 = vadd.f32 1.0, %v1090_v40  ;;  %v1680_v33 = vpack.c.bf16 %v1666_v23, %v1665_v35  ;;  %v4668_v35 = vld [vmem:[%s7918_s2 + $0x80] sm:$0xff]   ;;  %v4669_v23 = vld [vmem:[%s7918_s2 + $0x88] sm:$0xff]  }
 0x23c   :  { %v1223_v56 = vpack.c.bf16 %v1180_v17, %v1177_v44  ;;  %v4922_v39 = vpop.eup %4921  ;;  %v1224_v55 = vpack.c.bf16 %v1181_v36, %v1178_v6  ;;  %4435 = vmatprep.subr.bf16.mxu0 %v1679_v30  ;;  %v1093_v42 = vand.u32 2147483647, %v6293_v4  ;;  %v1100_v12 = vadd.f32 1.0, %v1099_v48  ;;  %v4666_v6 = vld [vmem:[%s7918_s2 + $0x70] sm:$0xff]  }
 0x23d   :  { %4420 = vmatmul.mubr.bf16.vlgmr.msra.gmra.mrb[32].mxu0 %v6377_v19  ;;  %v1089_v51 = vmul.f32 0.6931472, %v4922_v39  ;;  %v1118_v11 = vadd.f32 1.0, %v1117_v62  ;;  %v1120_v45 = vand.u32 2147483647, %v6327_v54  ;;  %v1092_v61 = vmul.f32 %v6293_v4, %v1091_v0  ;;  %v4670_v62 = vld [vmem:[%s7918_s2 + $0x90] sm:$0xff]  }
 0x23e   :  { %1242 = vperm.xlu1 %4638, %v5013_v29   ;;  %1353 = vmatprep.subr.bf16.mxu1 %v1224_v55  ;;  %v1102_v21 = vand.u32 2147483647, %v6313_v16  ;;  %v1127_v46 = vadd.f32 1.0, %v1126_v1  ;;  %v1681_v5 = vpack.c.bf16 %v1668_v15, %v1667_v26  ;;  %vm6423_vm15 = vcmp.lt.f32.partialorder %v1093_v42, 0.0004427343 }
 0x23f   :  { %4423 = vmatprep.mubr.bf16.mxu0 %v6390_v28  ;;  %1354 = vmatpush1.bf16.msra.mxu1 %v1223_v56  ;;  %v1095_v41 = vsel %vm6423_vm15, %v1092_v61, %v1089_v51  ;;  %v1119_v8 = vmul.f32 %v6327_v54, %v1118_v11  ;;  %v1129_v22 = vand.u32 2147483647, %v6357_v53  ;;  %v511_v37 = vmax.f32 %v6184_v43, 0.0  ;;  %v5016_v43 = vld [vmem:[%s7916_s3 + $0x38] sm:$0xff] }
 0x240   :  { %v4924_v52 = vpop.eup %4923  ;;  %4436 = vmatpush3.bf16.msra.mxu0 %v1679_v30  ;;  %1254 = vperm.xlu0 %4639, %v5014_v14   ;;  %v1101_v38 = vmul.f32 %v6313_v16, %v1100_v12  ;;  %v514_v18 = vmax.f32 %v6216_v58, 0.0  ;;  %vm1121_vm1 = vcmp.lt.f32.partialorder %v1120_v45, 0.0004427343  ;;  %vm6443_vm2 = vcmp.lt.f32.partialorder %v1102_v21, 0.0004427343 }
 0x241   :  { %4437 = vmatprep.subr.bf16.mxu0 %v1680_v33  ;;  %v1098_v4 = vmul.f32 0.6931472, %v4924_v52  ;;  %v1128_v34 = vmul.f32 %v6357_v53, %v1127_v46  ;;  %v1682_v25 = vpack.c.bf16 %v1670_v9, %v1669_v31  ;;  %v1183_v16 = vadd.f32 %v1095_v41, %v511_v37  ;;  %v4672_v37 = vld [vmem:[%s7918_s2 + $0x198] sm:$0xff]  }
 0x242   :  { %1250 = vperm.xlu1 %4638, %v5015_v32   ;;  %v4926_v24 = vpop.eup %4925  ;;  %v512_v17 = vmax.f32 %v6202_v50, 0.0  ;;  %v515_v30 = vmax.f32 %v6231_v57, 0.0  ;;  %vm1130_vm3 = vcmp.lt.f32.partialorder %v1129_v22, 0.0004427343  ;;  %v5017_v57 = vld [vmem:[%s7918_s2 + $0x40] sm:$0xff]   ;;  %v4667_v50 = vld [vmem:[%s7918_s2 + $0x78] sm:$0xff]  }
 0x243   :  { %v1116_v3 = vmul.f32 0.6931472, %v4926_v24  ;;  %v1104_v58 = vsel %vm6443_vm2, %v1101_v38, %v1098_v4  ;;  %v8134_v36 = vmov 0   ;;  %vm1703_vm4 = vcmask 523264  }
 0x244   :  { %4438 = vmatpush3.bf16.msra.mxu0 %v1680_v33  ;;  %v1184_v40 = vadd.f32 %v1104_v58, %v512_v17  ;;  %v5071_v42 = vmov 2   ;;  %v4675_v58 = vld [vmem:[%s7918_s2 + $0x160] sm:$0xff]   ;;  %v4678_v17 = vld [vmem:[%s7918_s2 + $0x168] sm:$0xff]   ;;  %vm1957_vm5 = vcmask 392192   ;;  %vm1966_vm6 = vcmask 785408  }
 0x245   :  { %v4928_v7 = vpop.eup %4927  ;;  %v1122_v54 = vsel %vm1121_vm1, %v1119_v8, %v1116_v3  ;;  %4439 = vmatprep.subr.bf16.mxu0 %v1681_v5  ;;  %4424 = vmatmul.mubr.bf16.gmra.mrb[36].mxu0 %v6418_v2  ;;  %vm1991_vm7 = vcmask 916480   ;;  %vm2000_vm8 = vcmask 261120   ;;  %vm2009_vm9 = vcmask 654336  }
 0x246   :  { %1258 = vperm.xlu1 %4638, %v5016_v43   ;;  %v1186_v59 = vadd.f32 %v1122_v54, %v514_v18  ;;  %v1125_v44 = vmul.f32 0.6931472, %v4928_v7  ;;  %4427 = vmatprep.mubr.bf16.mxu0 %v4664_v47  ;;  %v4673_v7 = vld [vmem:[%s7918_s2 + $0x158] sm:$0xff]   ;;  %v4674_v43 = vld [vmem:[%s7918_s2 + $0x1a0] sm:$0xff]  }
 0x247   :  { %4640 = vset.pattern.permute.xlu0 %v5071_v42 }
 0x248   :  { %v1226_v53 = vpack.c.bf16 %v1186_v59, %v1183_v16  ;;  %v1131_v13 = vsel %vm1130_vm3, %v1128_v34, %v1125_v44  ;;  %4440 = vmatpush3.bf16.msra.mxu0 %v1681_v5  ;;  %v4676_v59 = vld [vmem:[%s7918_s2 + $0x1d8] sm:$0xff]   ;;  %v4677_v44 = vld [vmem:[%s7918_s2 + $0x1a8] sm:$0xff]  }
 0x249   :  { %v1187_v10 = vadd.f32 %v1131_v13, %v515_v30  ;;  %4441 = vmatprep.subr.bf16.mxu0 %v1682_v25  ;;  %v4679_v30 = vld [vmem:[%s7918_s2 + $0x1e0] sm:$0xff]   ;;  %v4681_v13 = vld [vmem:[%s7918_s2 + $0x170] sm:$0xff]  }
 0x24a   :  { %4641 = vset.pattern.permute.xlu1 %v5071_v42  ;;  %v4694_v42 = vld [vmem:[%s7918_s2 + $0x208] sm:$0xff]  }
 0x24b   :  { %v1227_v56 = vpack.c.bf16 %v1187_v10, %v1184_v40  ;;  %v4682_v40 = vld [vmem:[%s7918_s2 + $0x1e8] sm:$0xff]   ;;  %v4683_v10 = vld [vmem:[%s7918_s2 + $0x1b8] sm:$0xff]  }
 0x24c   :  { %4442 = vmatpush3.bf16.msra.mxu0 %v1682_v25 }
 0x24d   :  { %1355 = vmatprep.subr.bf16.mxu1 %v1227_v56  ;;  %4428 = vmatmul.mubr.bf16.gmra.mrb[40].mxu0 %v4665_v27  ;;  %v4686_v56 = vld [vmem:[%s7918_s2 + $0x1f0] sm:$0xff]  }
 0x24e   :  { %1356 = vmatpush1.bf16.msra.mxu1 %v1226_v53  ;;  %4431 = vmatprep.mubr.bf16.mxu0 %v4666_v6  ;;  %v4680_v53 = vld [vmem:[%s7918_s2 + $0x1b0] sm:$0xff]  }
 0x24f   :  { %4225 = vmatprep.subr.bf16.mxu1 %v4672_v37  ;;  %4451 = vmatprep.subr.bf16.mxu0 %v4676_v59  ;;  %v4695_v37 = vld [vmem:[%s7918_s2 + $0x210] sm:$0xff]  }
 0x251   :  { %1374 = vmatmul.mubr.bf16.vlgmr.msra.gmra.mrb[16].mxu1 %v5017_v57  ;;  %v4687_v57 = vld [vmem:[%s7918_s2 + $0x180] sm:$0xff]  }
 0x252   :  { %1383 = vmatprep.mubr.bf16.mxu1 %v8134_v36  ;;  %4226 = vmatpush3.bf16.msra.mxu1 %v4673_v7 }
 0x253   :  { %4227 = vmatprep.subr.bf16.mxu1 %v4674_v43 }
 0x255   :  { %4432 = vmatmul.mubr.bf16.gmra.mrb[44].mxu0 %v4667_v50 }
 0x256   :  { %4443 = vmatprep.mubr.msk.bf16.mxu0 %vm1703_vm4, %v4668_v35  ;;  %4228 = vmatpush3.bf16.msra.mxu1 %v4675_v58  ;;  %v4690_v35 = vld [vmem:[%s7918_s2 + $0x188] sm:$0xff]  }
 0x257   :  { %4229 = vmatprep.subr.bf16.mxu1 %v4677_v44 }
 0x259   :  { %1384 = vmatmul.mubr.bf16.gmra.mrb[20].mxu1 %v6377_v19  ;;  %v4671_v19 = vld [vmem:[%s7918_s2 + $0x98] sm:$0xff]  }
 0x25a   :  { %1393 = vmatprep.mubr.bf16.mxu1 %v8134_v36  ;;  %4230 = vmatpush3.bf16.msra.mxu1 %v4678_v17 }
 0x25b   :  { %4231 = vmatprep.subr.bf16.mxu1 %v4680_v53 }
 0x25d   :  { %4444 = vmatmul.mubr.msk.bf16.vlgmr.msra.gmra.mrb[48].mxu0 %vm1703_vm4, %v4669_v23  ;;  %v4691_v23 = vld [vmem:[%s7918_s2 + $0x1d0] sm:$0xff]  }
 0x25e   :  { %4447 = vmatprep.mubr.msk.bf16.mxu0 %vm1703_vm4, %v4670_v62  ;;  %4452 = vmatpush3.bf16.msra.mxu0 %v4676_v59  ;;  %v4692_v62 = vld [vmem:[%s7918_s2 + $0x200] sm:$0xff]  }
 0x25f   :  { %4453 = vmatprep.subr.bf16.mxu0 %v4679_v30  ;;  %4232 = vmatpush3.bf16.msra.mxu1 %v4681_v13  ;;  %v2341_v13 = vld [vmem:[%s7916_s3 + $0x8] sm:$0xff] }
 0x260   :  { %4233 = vmatprep.subr.bf16.mxu1 %v4683_v10  ;;  %v6783_v10 = vld [vmem:[%s7916_s3 + $0x18] sm:$0xff] }
 0x261   :  { %1394 = vmatmul.mubr.bf16.gmra.mrb[24].mxu1 %v6390_v28 }
 0x262   :  { %1403 = vmatprep.mubr.bf16.mxu1 %v8134_v36  ;;  %4454 = vmatpush3.bf16.msra.mxu0 %v4679_v30  ;;  %v2340_v30 = vld [vmem:[%s7916_s3] sm:$0xff] }
 0x263   :  { %4455 = vmatprep.subr.bf16.mxu0 %v4682_v40 }
 0x265   :  { %4448 = vmatmul.mubr.msk.bf16.gmra.mrb[52].mxu0 %vm1703_vm4, %v4671_v19  ;;  %v4693_v19 = vld [vmem:[%s7918_s2 + $0x190] sm:$0xff]  }
 0x266   :  { %4456 = vmatpush3.bf16.msra.mxu0 %v4682_v40 }
 0x267   :  { %4457 = vmatprep.subr.bf16.mxu0 %v4686_v56 }
 0x269   :  { %1404 = vmatmul.mubr.bf16.gmra.mrb[28].mxu1 %v6418_v2 }
 0x26a   :  { %1413 = vmatprep.mubr.bf16.mxu1 %v8134_v36  ;;  %4458 = vmatpush3.bf16.msra.mxu0 %v4686_v56 }
 0x271   :  { %1414 = vmatmul.mubr.bf16.gmra.mrb[32].mxu1 %v4664_v47 }
 0x272   :  { %1423 = vmatprep.mubr.bf16.mxu1 %v8134_v36 }
 0x279   :  { %1424 = vmatmul.mubr.bf16.gmra.mrb[36].mxu1 %v4665_v27  ;;  %v4684_v27 = vld [vmem:[%s7918_s2 + $0x178] sm:$0xff]  }
 0x27a   :  { %1433 = vmatprep.mubr.bf16.mxu1 %v8134_v36  ;;  %4234 = vmatpush3.bf16.msra.mxu1 %v4684_v27 }
 0x281   :  { %1434 = vmatmul.mubr.bf16.gmra.mrb[40].mxu1 %v4666_v6  ;;  %v4685_v6 = vld [vmem:[%s7918_s2 + $0x1c0] sm:$0xff]  }
 0x282   :  { %1443 = vmatprep.mubr.bf16.mxu1 %v8134_v36  ;;  %4235 = vmatprep.subr.bf16.mxu1 %v4685_v6  ;;  %v4689_v36 = vld [vmem:[%s7918_s2 + $0x1f8] sm:$0xff]   ;;  %v2342_v6 = vld [vmem:[%s7916_s3 + $0x10] sm:$0xff] }
 0x283   :  { %4236 = vmatpush3.bf16.msra.mxu1 %v4687_v57  ;;  %4459 = vmatprep.subr.bf16.mxu0 %v4689_v36  ;;  %v6792_v57 = vld [vmem:[%s7916_s3 + $0x28] sm:$0xff] }
 0x284   :  { %4460 = vmatpush3.bf16.msra.mxu0 %v4689_v36  ;;  %v2344_v36 = vld [vmem:[%s7916_s3 + $0x20] sm:$0xff] }
 0x285   :  { %4461 = vmatprep.subr.bf16.mxu0 %v4692_v62 }
 0x288   :  { %4462 = vmatpush3.bf16.msra.mxu0 %v4692_v62 }
 0x289   :  { %1444 = vmatmul.mubr.bf16.gmra.mrb[44].mxu1 %v4667_v50  ;;  %v4688_v50 = vld [vmem:[%s7918_s2 + $0x1c8] sm:$0xff]   ;;  %4463 = vmatprep.subr.bf16.mxu0 %v4694_v42 }
 0x28a   :  { %4237 = vmatprep.subr.bf16.mxu1 %v4688_v50 }
 0x28b   :  { %4238 = vmatpush3.bf16.msra.mxu1 %v4690_v35 }
 0x28c   :  { %4239 = vmatprep.subr.bf16.mxu1 %v4691_v23  ;;  %4464 = vmatpush3.bf16.msra.mxu0 %v4694_v42  ;;  %v6801_v23 = vld [vmem:[%s7916_s3 + $0x38] sm:$0xff]  ;;  %v2346_v42 = vld [vmem:[%s7916_s3 + $0x30] sm:$0xff] }
 0x28d   :  { %4465 = vmatprep.subr.bf16.mxu0 %v4695_v37 }
 0x28f   :  { %4240 = vmatpush3.bf16.msra.mxu1 %v4693_v19 }
 0x290   :  { %4466 = vmatpush3.bf16.msra.mxu0 %v4695_v37 }
 0x2b5   :  { %v6734_v7 = vpop.permute.xlu1 %1230 }
 0x2b6   :  { %v6748_v58 = vpop.permute.xlu0 %1234 }
 0x2b9   :  { %v6742_v43 = vpop.permute.xlu1 %1238 }
 0x2ba   :  { %v6758_v44 = vpop.permute.xlu0 %1246 }
 0x2bd   :  { %v6752_v59 = vpop.permute.xlu1 %1242 }
 0x2bf   :  { %v6771_v53 = vpop.permute.xlu0 %1254 }
 0x2c1   :  { %v6762_v17 = vpop.permute.xlu1 %1250 }
 0x2c5   :  { %v6778_v40 = vpop.permute.xlu1 %1258 }
 0x310   :  { %v6494_v28 = vpop.f32.mrb[32].mxu0 }
 0x311   :  { %v6496_v49 = vpop.f32.mrb[33].mxu0 }
 0x312   :  { %v6498_v39 = vpop.f32.mrb[34].mxu0 }
 0x313   :  { %v6500_v48 = vpop.f32.mrb[35].mxu0 }
 0x318   :  { %v6502_v55 = vpop.f32.mrb[36].mxu0 }
 0x319   :  { %v6504_v0 = vpop.f32.mrb[37].mxu0 }
 0x31a   :  { %v6506_v1 = vpop.f32.mrb[38].mxu0 }
 0x31b   :  { %v6508_v33 = vpop.f32.mrb[39].mxu0 }
 0x320   :  { %v6510_v29 = vpop.f32.mrb[40].mxu0 }
 0x321   :  { %8135 = vst [vmem:[#allocation9_spill] sm:$0xff] %v6510_v29  ;;  %v6512_v26 = vpop.f32.mrb[41].mxu0 }
 0x322   :  { %8136 = vst [vmem:[#allocation10_spill] sm:$0xff] %v6512_v26  ;;  %v6514_v15 = vpop.f32.mrb[42].mxu0  ;;  %v5079_v26 = vmov 3  }
 0x323   :  { %8137 = vst [vmem:[#allocation12_spill] sm:$0xff] %v6514_v15  ;;  %v6516_v51 = vpop.f32.mrb[43].mxu0 }
 0x324   :  { %8138 = vst [vmem:[#allocation13_spill] sm:$0xff] %v6516_v51  ;;  %v6518_v11 = vpop.f32.mrb[16].mxu1 }
 0x325   :  { %v6520_v52 = vpop.f32.mrb[17].mxu1 }
 0x326   :  { %v6522_v12 = vpop.f32.mrb[18].mxu1 }
 0x327   :  { %v6524_v45 = vpop.f32.mrb[19].mxu1 }
 0x328   :  { %v6526_v14 = vpop.f32.mrb[44].mxu0 }
 0x329   :  { %8139 = vst [vmem:[#allocation14_spill] sm:$0xff] %v6526_v14  ;;  %v6528_v61 = vpop.f32.mrb[45].mxu0 }
 0x32a   :  { %8140 = vst [vmem:[#allocation21_spill] sm:$0xff] %v6528_v61  ;;  %v6530_v21 = vpop.f32.mrb[46].mxu0 }
 0x32b   :  { %8141 = vst [vmem:[#allocation15_spill] sm:$0xff] %v6530_v21  ;;  %v6532_v46 = vpop.f32.mrb[47].mxu0  ;;  %v8145_v21 = vld [vmem:[#allocation2_spill] sm:$0xff] }
 0x32c   :  { %8142 = vst [vmem:[#allocation16_spill] sm:$0xff] %v6532_v46  ;;  %v6534_v2 = vpop.f32.mrb[20].mxu1 }
 0x32d   :  { %v6536_v5 = vpop.f32.mrb[21].mxu1  ;;  %v1386_v19 = vadd.f32 %v6534_v2, %v6742_v43 }
 0x32e   :  { %v6538_v32 = vpop.f32.mrb[22].mxu1  ;;  %v1388_v2 = vadd.f32 %v6536_v5, %v6742_v43 }
 0x32f   :  { %v6540_v24 = vpop.f32.mrb[23].mxu1  ;;  %v1390_v20 = vadd.f32 %v6538_v32, %v6752_v59  ;;  %v1573_v29 = vmul.f32 %v8145_v21, %v1386_v19 }
 0x330   :  { %v6542_v63 = vpop.f32.mrb[48].mxu0  ;;  %v1392_v61 = vadd.f32 %v6540_v24, %v6752_v59 }
 0x331   :  { %1817 = vrot.lane.b32.xlu0 %v6542_v63, %s5072_s18  ;;  %v6546_v4 = vpop.f32.mrb[49].mxu0  ;;  %v1576_v32 = vmul.f32 %v8145_v21, %v1390_v20 }
 0x332   :  { %v6548_v31 = vpop.f32.mrb[50].mxu0 }
 0x333   :  { %1819 = vrot.lane.b32.xlu1 %v6548_v31, %s5072_s18  ;;  %v6552_v9 = vpop.f32.mrb[51].mxu0 }
 0x334   :  { %v6554_v41 = vpop.f32.mrb[24].mxu1 }
 0x335   :  { %v6556_v3 = vpop.f32.mrb[25].mxu1  ;;  %1841 = vrot.lane.b32.xlu0 %v6542_v63, %s5073_s19 }
 0x336   :  { %v6560_v8 = vpop.f32.mrb[26].mxu1 }
 0x337   :  { %v6562_v22 = vpop.f32.mrb[27].mxu1  ;;  %1843 = vrot.lane.b32.xlu1 %v6548_v31, %s5073_s19 }
 0x338   :  { %v6566_v47 = vpop.f32.mrb[52].mxu0 }
 0x339   :  { %8143 = vst [vmem:[#allocation19_spill] sm:$0xff] %v6566_v47  ;;  %1865 = vrot.lane.b32.xlu0 %v6542_v63, %s5074_s22  ;;  %v6573_v38 = vpop.f32.mrb[53].mxu0 }
 0x33a   :  { %v6575_v18 = vpop.f32.mrb[54].mxu0 }
 0x33b   :  { %8144 = vst [vmem:[#allocation20_spill] sm:$0xff] %v6575_v18  ;;  %1867 = vrot.lane.b32.xlu1 %v6548_v31, %s5074_s22  ;;  %v6582_v60 = vpop.f32.mrb[55].mxu0 }
 0x33c   :  { %v6584_v54 = vpop.f32.mrb[28].mxu1 }
 0x33d   :  { %v6586_v34 = vpop.f32.mrb[29].mxu1  ;;  %1793 = vrot.lane.b32.xlu0 %v6542_v63, %s5075_s25 }
 0x33e   :  { %v6590_v25 = vpop.f32.mrb[30].mxu1 }
 0x33f   :  { %v6595_v16 = vpop.f32.mrb[31].mxu1  ;;  %1795 = vrot.lane.b32.xlu1 %v6548_v31, %s5075_s25 }
 0x341   :  { %1889 = vrot.lane.b32.xlu0 %v6542_v63, %s5076_s29 }
 0x343   :  { %1891 = vrot.lane.b32.xlu1 %v6548_v31, %s5076_s29 }
 0x345   :  { %1913 = vrot.lane.b32.xlu0 %v6542_v63, %s5077_s14 }
 0x347   :  { %1915 = vrot.lane.b32.xlu1 %v6548_v31, %s5077_s14 }
 0x349   :  { %1937 = vrot.lane.b32.xlu0 %v6542_v63, %s5078_s24 }
 0x34b   :  { %1939 = vrot.lane.b32.xlu1 %v6548_v31, %s5078_s24 }
 0x34d   :  { %1813 = vrot.lane.b32.xlu0 %v6546_v4, %s5072_s18 }
 0x34f   :  { %1815 = vrot.lane.b32.xlu1 %v6552_v9, %s5072_s18 }
 0x351   :  { %1837 = vrot.lane.b32.xlu0 %v6546_v4, %s5073_s19 }
 0x353   :  { %1839 = vrot.lane.b32.xlu1 %v6552_v9, %s5073_s19 }
 0x355   :  { %1861 = vrot.lane.b32.xlu0 %v6546_v4, %s5074_s22 }
 0x357   :  { %1863 = vrot.lane.b32.xlu1 %v6552_v9, %s5074_s22 }
 0x359   :  { %1789 = vrot.lane.b32.xlu0 %v6546_v4, %s5075_s25 }
 0x35b   :  { %1791 = vrot.lane.b32.xlu1 %v6552_v9, %s5075_s25 }
 0x35d   :  { %1885 = vrot.lane.b32.xlu0 %v6546_v4, %s5076_s29 }
 0x35f   :  { %1887 = vrot.lane.b32.xlu1 %v6552_v9, %s5076_s29 }
 0x361   :  { %1909 = vrot.lane.b32.xlu0 %v6546_v4, %s5077_s14 }
 0x363   :  { %1911 = vrot.lane.b32.xlu1 %v6552_v9, %s5077_s14 }
 0x365   :  { %1933 = vrot.lane.b32.xlu0 %v6546_v4, %s5078_s24 }
 0x367   :  { %1935 = vrot.lane.b32.xlu1 %v6552_v9, %s5078_s24 }
 0x369   :  { %1825 = vrot.lane.b32.xlu0 %v6566_v47, %s5072_s18 }
 0x36b   :  { %1827 = vrot.lane.b32.xlu1 %v6575_v18, %s5072_s18 }
 0x36d   :  { %1849 = vrot.lane.b32.xlu0 %v6566_v47, %s5073_s19 }
 0x36f   :  { %1851 = vrot.lane.b32.xlu1 %v6575_v18, %s5073_s19 }
 0x371   :  { %1897 = vrot.lane.b32.xlu0 %v6566_v47, %s5076_s29 }
 0x373   :  { %1899 = vrot.lane.b32.xlu1 %v6575_v18, %s5076_s29 }
 0x375   :  { %1921 = vrot.lane.b32.xlu0 %v6566_v47, %s5077_s14 }
 0x377   :  { %1923 = vrot.lane.b32.xlu1 %v6575_v18, %s5077_s14 }
 0x379   :  { %1873 = vrot.lane.b32.xlu0 %v6566_v47, %s5074_s22 }
 0x37b   :  { %1875 = vrot.lane.b32.xlu1 %v6575_v18, %s5074_s22 }
 0x37d   :  { %1945 = vrot.lane.b32.xlu0 %v6566_v47, %s5078_s24 }
 0x37f   :  { %1947 = vrot.lane.b32.xlu1 %v6575_v18, %s5078_s24 }
 0x381   :  { %1821 = vrot.lane.b32.xlu0 %v6573_v38, %s5072_s18 }
 0x383   :  { %1823 = vrot.lane.b32.xlu1 %v6582_v60, %s5072_s18 }
 0x385   :  { %1845 = vrot.lane.b32.xlu0 %v6573_v38, %s5073_s19 }
 0x387   :  { %1847 = vrot.lane.b32.xlu1 %v6582_v60, %s5073_s19 }
 0x389   :  { %1869 = vrot.lane.b32.xlu0 %v6573_v38, %s5074_s22 }
 0x38b   :  { %1871 = vrot.lane.b32.xlu1 %v6582_v60, %s5074_s22 }
 0x38d   :  { %1797 = vrot.lane.b32.xlu0 %v6573_v38, %s5075_s25 }
 0x38f   :  { %1799 = vrot.lane.b32.xlu1 %v6582_v60, %s5075_s25 }
 0x391   :  { %1893 = vrot.lane.b32.xlu0 %v6573_v38, %s5076_s29 }
 0x393   :  { %1895 = vrot.lane.b32.xlu1 %v6582_v60, %s5076_s29 }
 0x395   :  { %1917 = vrot.lane.b32.xlu0 %v6573_v38, %s5077_s14 }
 0x397   :  { %1919 = vrot.lane.b32.xlu1 %v6582_v60, %s5077_s14 }
 0x399   :  { %1941 = vrot.lane.b32.xlu0 %v6573_v38, %s5078_s24 }
 0x39b   :  { %1943 = vrot.lane.b32.xlu1 %v6582_v60, %s5078_s24 }
 0x39d   :  { %1801 = vrot.lane.b32.xlu0 %v6566_v47, %s5075_s25 }
 0x39f   :  { %1803 = vrot.lane.b32.xlu1 %v6575_v18, %s5075_s25 }
 0x3a1   :  { %2350 = vperm.xlu0 %4640, %v2340_v30  }
 0x3a3   :  { %v1818_v27 = vpop.permute.xlu0 %1817  ;;  %2355 = vperm.xlu1 %4641, %v2341_v13  }
 0x3a5   :  { %v1820_v56 = vpop.permute.xlu1 %1819  ;;  %2365 = vperm.xlu0 %4640, %v6783_v10  }
 0x3a7   :  { %v1842_v50 = vpop.permute.xlu0 %1841  ;;  %2360 = vperm.xlu1 %4641, %v2342_v6  }
 0x3a8   :  { %v1977_v18 = vsel %vm234_vm0, %v1818_v27, %v1842_v50 }
 0x3a9   :  { %v1844_v35 = vpop.permute.xlu1 %1843  ;;  %2375 = vperm.xlu0 %4640, %v6792_v57  }
 0x3ab   :  { %v1866_v62 = vpop.permute.xlu0 %1865  ;;  %2370 = vperm.xlu1 %4641, %v2344_v36  }
 0x3ac   :  { %v1985_v5 = vsel %vm1703_vm4, %v1977_v18, %v1866_v62 }
 0x3ad   :  { %v1868_v37 = vpop.permute.xlu1 %1867  ;;  %2385 = vperm.xlu0 %4640, %v6801_v23  }
 0x3af   :  { %v1794_v14 = vpop.permute.xlu0 %1793  ;;  %2380 = vperm.xlu1 %4641, %v2346_v42  }
 0x3b0   :  { %v1960_v15 = vsel %vm1957_vm5, %v6542_v63, %v1794_v14 }
 0x3b1   :  { %v1969_v51 = vsel %vm1966_vm6, %v1960_v15, %v1818_v27  ;;  %v1796_v46 = vpop.permute.xlu1 %1795  ;;  %4643 = vset.pattern.permute.xlu0 %v5079_v26  ;;  %v1978_v15 = vsel %vm234_vm0, %v1820_v56, %v1844_v35  ;;  %v8146_v27 = vld [vmem:[#allocation3_spill] sm:$0xff] }
 0x3b2   :  { %v6821_v19 = vmul.f32 %v1969_v51, %v1573_v29  ;;  %v1961_v14 = vsel %vm1957_vm5, %v6548_v31, %v1796_v46  ;;  %2630 = vperm.xlu0 %4643, %v2341_v13   ;;  %v1574_v29 = vmul.f32 %v8146_v27, %v1388_v2  ;;  %v1577_v51 = vmul.f32 %v8146_v27, %v1392_v61 }
 0x3b3   :  { %v1970_v24 = vsel %vm1966_vm6, %v1961_v14, %v1820_v56  ;;  %v1890_v63 = vpop.permute.xlu0 %1889  ;;  %4642 = vset.pattern.permute.xlu1 %v5079_v26  ;;  %v1986_v46 = vsel %vm1703_vm4, %v1978_v15, %v1868_v37  ;;  %v1500_v61 = vadd.f32 %v6498_v39, %v6752_v59  ;;  %v8148_v14 = vmov 1  }
 0x3b4   :  { %v6828_v47 = vmul.f32 %v1970_v24, %v1576_v32  ;;  %v1994_v20 = vsel %vm1991_vm7, %v1985_v5, %v1890_v63  ;;  %2626 = vperm.xlu1 %4642, %v2340_v30   ;;  %v1497_v30 = vadd.f32 %v6494_v28, %v6742_v43 }
 0x3b5   :  { %v1892_v31 = vpop.permute.xlu1 %1891  ;;  %v6837_v13 = vmul.f32 %v1994_v20, %v1574_v29  ;;  %v5019_v29 = vld [vmem:[%s7916_s3 + $0x58] sm:$0xff] }
 0x3b6   :  { %v1995_v18 = vsel %vm1991_vm7, %v1986_v46, %v1892_v31  ;;  %2642 = vperm.xlu0 %4643, %v2344_v36   ;;  %v2045_v26 = vpack.c.bf16 %v6828_v47, %v6821_v19  ;;  %v1408_v19 = vadd.f32 %v6586_v34, %v6771_v53 }
 0x3b7   :  { %v6839_v56 = vmul.f32 %v1995_v18, %v1577_v51  ;;  %v1914_v50 = vpop.permute.xlu0 %1913 }
 0x3b8   :  { %2634 = vperm.xlu1 %4642, %v2342_v6   ;;  %v2003_v62 = vsel %vm2000_vm8, %v1890_v63, %v1914_v50  ;;  %v8147_v6 = vld [vmem:[#allocation4_spill] sm:$0xff]  ;;  %v5021_v50 = vld [vmem:[%s7916_s3 + $0x48] sm:$0xff] }
 0x3b9   :  { %v1916_v35 = vpop.permute.xlu1 %1915  ;;  %v2046_v36 = vpack.c.bf16 %v6839_v56, %v6837_v13  ;;  %v1575_v32 = vmul.f32 %v8147_v6, %v1497_v30  ;;  %v1578_v43 = vmul.f32 %v8147_v6, %v1500_v61  ;;  %v5022_v61 = vld [vmem:[%s7916_s3 + $0x78] sm:$0xff] }
 0x3ba   :  { %2650 = vperm.xlu0 %4643, %v2346_v42   ;;  %v2004_v28 = vsel %vm2000_vm8, %v1892_v31, %v1916_v35  ;;  %v5020_v31 = vld [vmem:[%s7916_s3 + $0x68] sm:$0xff] }
 0x3bb   :  { %v1938_v37 = vpop.permute.xlu0 %1937 }
 0x3bc   :  { %v2012_v2 = vsel %vm2009_vm9, %v2003_v62, %v1938_v37  ;;  %2638 = vperm.xlu1 %4642, %v6783_v10   ;;  %v5018_v10 = vld [vmem:[%s7916_s3 + $0x40] sm:$0xff]  ;;  %v1378_v62 = vadd.f32 %v6520_v52, %v6734_v7  ;;  %v1382_v37 = vadd.f32 %v6524_v45, %v6748_v58 }
 0x3bd   :  { %v1940_v39 = vpop.permute.xlu1 %1939  ;;  %v6855_v5 = vmul.f32 %v2012_v2, %v1575_v32  ;;  %v5023_v32 = vld [vmem:[%s7916_s3 + $0x50] sm:$0xff] }
 0x3be   :  { %v2013_v59 = vsel %vm2009_vm9, %v2004_v28, %v1940_v39  ;;  %4644 = vset.pattern.permute.xlu0 %v8148_v14 }
 0x3bf   :  { %v6857_v42 = vmul.f32 %v2013_v59, %v1578_v43  ;;  %v1814_v24 = vpop.permute.xlu0 %1813  ;;  %1262 = vperm.xlu0 %4644, %v5018_v10  }
 0x3c0   :  { %2646 = vperm.xlu1 %4642, %v6792_v57   ;;  %v1376_v57 = vadd.f32 %v6518_v11, %v6734_v7 }
 0x3c1   :  { %v2047_v63 = vpack.c.bf16 %v6857_v42, %v6855_v5  ;;  %v1816_v15 = vpop.permute.xlu1 %1815 }
 0x3c2   :  { %v1567_v35 = vmul.f32 %v8145_v21, %v1376_v57  ;;  %v1571_v57 = vmul.f32 %v8146_v27, %v1382_v37 }
 0x3c3   :  { %v1838_v20 = vpop.permute.xlu0 %1837  ;;  %1274 = vperm.xlu0 %4644, %v5019_v29  }
 0x3c4   :  { %2654 = vperm.xlu1 %4642, %v6801_v23   ;;  %v1380_v23 = vadd.f32 %v6522_v12, %v6748_v58  ;;  %v1975_v43 = vsel %vm234_vm0, %v1814_v24, %v1838_v20 }
 0x3c5   :  { %v1840_v51 = vpop.permute.xlu1 %1839 }
 0x3c6   :  { %v1570_v28 = vmul.f32 %v8145_v21, %v1380_v23 }
 0x3c7   :  { %v1862_v46 = vpop.permute.xlu0 %1861  ;;  %1282 = vperm.xlu0 %4644, %v5020_v31   ;;  %v1568_v31 = vmul.f32 %v8146_v27, %v1378_v62  ;;  %v6916_v62 = vpop.f32.mrb[32].mxu1 }
 0x3c8   :  { %4645 = vset.pattern.permute.xlu1 %v8148_v14  ;;  %v1983_v52 = vsel %vm1703_vm4, %v1975_v43, %v1862_v46  ;;  %v1976_v14 = vsel %vm234_vm0, %v1816_v15, %v1840_v51  ;;  %v6918_v37 = vpop.f32.mrb[33].mxu1 }
 0x3c9   :  { %v1864_v18 = vpop.permute.xlu1 %1863  ;;  %1266 = vperm.xlu1 %4645, %v5021_v50  }
 0x3cb   :  { %v1790_v30 = vpop.permute.xlu0 %1789  ;;  %1290 = vperm.xlu0 %4644, %v5022_v61   ;;  %v1492_v61 = vadd.f32 %v6500_v48, %v6748_v58 }
 0x3cc   :  { %v1958_v11 = vsel %vm1957_vm5, %v6546_v4, %v1790_v30  ;;  %v1489_v30 = vadd.f32 %v6496_v49, %v6734_v7 }
 0x3cd   :  { %v1967_v2 = vsel %vm1966_vm6, %v1958_v11, %v1814_v24  ;;  %v1792_v12 = vpop.permute.xlu1 %1791  ;;  %1270 = vperm.xlu1 %4645, %v5023_v32   ;;  %v1984_v24 = vsel %vm1703_vm4, %v1976_v14, %v1864_v18  ;;  %v5025_v18 = vld [vmem:[%s7916_s3 + $0x70] sm:$0xff]  ;;  %v6921_v32 = vpop.f32.mrb[34].mxu1  ;;  %v1572_v58 = vmul.f32 %v8147_v6, %v1492_v61 }
 0x3ce   :  { %v2018_v39 = vmul.f32 %v1967_v2, %v1567_v35  ;;  %v1959_v4 = vsel %vm1957_vm5, %v6552_v9, %v1792_v12  ;;  %v5024_v9 = vld [vmem:[%s7916_s3 + $0x60] sm:$0xff]  ;;  %v6924_v48 = vpop.f32.mrb[35].mxu1  ;;  %v1569_v7 = vmul.f32 %v8147_v6, %v1489_v30 }
 0x3cf   :  { %v1968_v45 = vsel %vm1966_vm6, %v1959_v4, %v1816_v15  ;;  %v1886_v59 = vpop.permute.xlu0 %1885 }
 0x3d0   :  { %v2021_v10 = vmul.f32 %v1968_v45, %v1570_v28  ;;  %v1992_v29 = vsel %vm1991_vm7, %v1983_v52, %v1886_v59 }
 0x3d1   :  { %v1888_v20 = vpop.permute.xlu1 %1887  ;;  %1278 = vperm.xlu1 %4645, %v5024_v9   ;;  %v2019_v23 = vmul.f32 %v1992_v29, %v1568_v31 }
 0x3d2   :  { %v2042_v46 = vpack.c.bf16 %v2021_v10, %v2018_v39  ;;  %v1993_v50 = vsel %vm1991_vm7, %v1984_v24, %v1888_v20  ;;  %v6932_v39 = vpop.f32.mrb[36].mxu1 }
 0x3d3   :  { %v2022_v15 = vmul.f32 %v1993_v50, %v1571_v57  ;;  %v1910_v51 = vpop.permute.xlu0 %1909  ;;  %v6935_v52 = vpop.f32.mrb[37].mxu1 }
 0x3d4   :  { %v2001_v2 = vsel %vm2000_vm8, %v1886_v59, %v1910_v51  ;;  %v6939_v10 = vpop.f32.mrb[38].mxu1 }
 0x3d5   :  { %v1912_v35 = vpop.permute.xlu1 %1911  ;;  %1286 = vperm.xlu1 %4645, %v5025_v18   ;;  %v2043_v11 = vpack.c.bf16 %v2022_v15, %v2019_v23  ;;  %v6941_v29 = vpop.f32.mrb[39].mxu1  ;;  %v1513_v18 = vadd.f32 %v6502_v55, %v6771_v53 }
 0x3d6   :  { %v2002_v28 = vsel %vm2000_vm8, %v1888_v20, %v1912_v35  ;;  %v6945_v24 = vpop.f32.mrb[40].mxu1  ;;  %v1516_v35 = vadd.f32 %v6506_v1, %v6778_v40 }
 0x3d7   :  { %v1934_v12 = vpop.permute.xlu0 %1933  ;;  %2230 = vmatprep.mubr.bf16.mxu1 %v2043_v11  ;;  %v6947_v13 = vpop.f32.mrb[41].mxu1 }
 0x3d8   :  { %v2010_v49 = vsel %vm2009_vm9, %v2001_v2, %v1934_v12  ;;  %2231 = vmatmul.mubr.bf16.vlgmr.msra.gmra.mrb[48].mxu1 %v2042_v46 }
 0x3d9   :  { %v1936_v43 = vpop.permute.xlu1 %1935  ;;  %2238 = vmatprep.mubr.bf16.mxu1 %v2046_v36  ;;  %v2020_v45 = vmul.f32 %v2010_v49, %v1569_v7  ;;  %v6949_v36 = vpop.f32.mrb[42].mxu1 }
 0x3da   :  { %v2011_v4 = vsel %vm2009_vm9, %v2002_v28, %v1936_v43  ;;  %v6957_v20 = vpop.f32.mrb[43].mxu1 }
 0x3db   :  { %v2023_v59 = vmul.f32 %v2011_v4, %v1572_v58  ;;  %v6937_v14 = vpop.permute.xlu0 %1825  ;;  %v6959_v46 = vpop.f32.mrb[44].mxu1 }
 0x3dc   :  { %8149 = vst [vmem:[#allocation18_spill] sm:$0xff] %v6959_v46  ;;  %v6961_v50 = vpop.f32.mrb[45].mxu1 }
 0x3dd   :  { %v6943_v31 = vpop.permute.xlu1 %1827  ;;  %v2044_v57 = vpack.c.bf16 %v2023_v59, %v2020_v45  ;;  %8150 = vst [vmem:[#allocation17_spill] sm:$0xff] %v6961_v50  ;;  %v6963_v15 = vpop.f32.mrb[46].mxu1  ;;  %v1587_v45 = vmul.f32 %v8147_v6, %v1513_v18  ;;  %v1590_v59 = vmul.f32 %v8147_v6, %v1516_v35  ;;  %v1400_v18 = vadd.f32 %v6560_v8, %v6762_v17 }
 0x3de   :  { %8151 = vst [vmem:[#allocation22_spill] sm:$0xff] %v6963_v15  ;;  %v6965_v51 = vpop.f32.mrb[47].mxu1 }
 0x3df   :  { %v1850_v56 = vpop.permute.xlu0 %1849  ;;  %4467 = vmatprep.mubr.bf16.mxu0 %v2044_v57  ;;  %8152 = vst [vmem:[#allocation23_spill] sm:$0xff] %v6965_v51 }
 0x3e0   :  { %2239 = vmatmul.mubr.bf16.gmra.mrb[52].mxu1 %v2045_v26  ;;  %4468 = vmatmul.mubr.bf16.vlgmr.msra.gmra.mrb[56].mxu0 %v2047_v63  ;;  %v1412_v26 = vadd.f32 %v6595_v16, %v6778_v40  ;;  %v1981_v5 = vsel %vm234_vm0, %v6937_v14, %v1850_v56  ;;  %v1586_v16 = vmul.f32 %v8146_v27, %v1408_v19 }
 0x3e1   :  { %v1852_v9 = vpop.permute.xlu1 %1851 }
 0x3e2   :  { %v1982_v11 = vsel %vm234_vm0, %v6943_v31, %v1852_v9  ;;  %v1589_v12 = vmul.f32 %v8146_v27, %v1412_v26 }
 0x3e3   :  { %v1898_v23 = vpop.permute.xlu0 %1897 }
 0x3e5   :  { %v1900_v30 = vpop.permute.xlu1 %1899 }
 0x3e7   :  { %v1922_v61 = vpop.permute.xlu0 %1921 }
 0x3e8   :  { %v2007_v7 = vsel %vm2000_vm8, %v1898_v23, %v1922_v61 }
 0x3e9   :  { %v1924_v47 = vpop.permute.xlu1 %1923 }
 0x3ea   :  { %v2008_v4 = vsel %vm2000_vm8, %v1900_v30, %v1924_v47  ;;  %v1396_v47 = vadd.f32 %v6554_v41, %v6758_v44  ;;  %v1582_v41 = vmul.f32 %v8145_v21, %v1400_v18 }
 0x3eb   :  { %v1874_v42 = vpop.permute.xlu0 %1873 }
 0x3ec   :  { %v1989_v63 = vsel %vm1703_vm4, %v1981_v5, %v1874_v42 }
 0x3ed   :  { %v1998_v34 = vsel %vm1991_vm7, %v1989_v63, %v1898_v23  ;;  %v1876_v2 = vpop.permute.xlu1 %1875 }
 0x3ee   :  { %v1990_v49 = vsel %vm1703_vm4, %v1982_v11, %v1876_v2  ;;  %v2037_v28 = vmul.f32 %v1998_v34, %v1586_v16  ;;  %v1579_v34 = vmul.f32 %v8145_v21, %v1396_v47  ;;  %v1398_v16 = vadd.f32 %v6556_v3, %v6758_v44 }
 0x3ef   :  { %v1999_v58 = vsel %vm1991_vm7, %v1990_v49, %v1900_v30  ;;  %v1946_v1 = vpop.permute.xlu0 %1945  ;;  %v1505_v47 = vadd.f32 %v6504_v0, %v6758_v44 }
 0x3f0   :  { %v2040_v43 = vmul.f32 %v1999_v58, %v1589_v12  ;;  %v2016_v55 = vsel %vm2009_vm9, %v2007_v7, %v1946_v1  ;;  %v1402_v12 = vadd.f32 %v6562_v22, %v6762_v17 }
 0x3f1   :  { %v1948_v57 = vpop.permute.xlu1 %1947  ;;  %v6991_v19 = vmul.f32 %v2016_v55, %v1587_v45 }
 0x3f2   :  { %v2017_v56 = vsel %vm2009_vm9, %v2008_v4, %v1948_v57  ;;  %v2052_v9 = vpack.c.bf16 %v2040_v43, %v2037_v28  ;;  %v1580_v4 = vmul.f32 %v8146_v27, %v1398_v16  ;;  %v1583_v45 = vmul.f32 %v8146_v27, %v1402_v12 }
 0x3f3   :  { %v6993_v23 = vmul.f32 %v2017_v56, %v1590_v59  ;;  %v1822_v61 = vpop.permute.xlu0 %1821  ;;  %v1581_v16 = vmul.f32 %v8147_v6, %v1505_v47  ;;  %v8155_v47 = vld [vmem:[#allocation10_spill] sm:$0xff] }
 0x3f5   :  { %v1824_v26 = vpop.permute.xlu1 %1823  ;;  %v2053_v5 = vpack.c.bf16 %v6993_v23, %v6991_v19 }
 0x3f7   :  { %v1846_v42 = vpop.permute.xlu0 %1845 }
 0x3f8   :  { %v1979_v58 = vsel %vm234_vm0, %v1822_v61, %v1846_v42 }
 0x3f9   :  { %v1848_v63 = vpop.permute.xlu1 %1847 }
 0x3fa   :  { %v1980_v3 = vsel %vm234_vm0, %v1824_v26, %v1848_v63 }
 0x3fb   :  { %v1870_v30 = vpop.permute.xlu0 %1869 }
 0x3fc   :  { %v1987_v28 = vsel %vm1703_vm4, %v1979_v58, %v1870_v30 }
 0x3fd   :  { %v1872_v35 = vpop.permute.xlu1 %1871 }
 0x3fe   :  { %v1988_v59 = vsel %vm1703_vm4, %v1980_v3, %v1872_v35  ;;  %v1406_v35 = vadd.f32 %v6584_v54, %v6771_v53  ;;  %v8153_v53 = vld [vmem:[#allocation19_spill] sm:$0xff] }
 0x3ff   :  { %v1798_v11 = vpop.permute.xlu0 %1797 }
 0x400   :  { %v1962_v2 = vsel %vm1957_vm5, %v6573_v38, %v1798_v11  ;;  %v1585_v54 = vmul.f32 %v8145_v21, %v1406_v35  ;;  %v8156_v35 = vld [vmem:[#allocation16_spill] sm:$0xff] }
 0x401   :  { %v1971_v49 = vsel %vm1966_vm6, %v1962_v2, %v1822_v61  ;;  %v1800_v7 = vpop.permute.xlu1 %1799 }
 0x402   :  { %v2030_v8 = vmul.f32 %v1971_v49, %v1579_v34  ;;  %v1963_v1 = vsel %vm1957_vm5, %v6582_v60, %v1800_v7 }
 0x403   :  { %v1972_v38 = vsel %vm1966_vm6, %v1963_v1, %v1824_v26  ;;  %v1894_v43 = vpop.permute.xlu0 %1893  ;;  %v1508_v26 = vadd.f32 %v6508_v33, %v6762_v17  ;;  %v1410_v33 = vadd.f32 %v6590_v25, %v6778_v40 }
 0x404   :  { %v2033_v55 = vmul.f32 %v1972_v38, %v1582_v41  ;;  %v1996_v22 = vsel %vm1991_vm7, %v1987_v28, %v1894_v43 }
 0x405   :  { %v1896_v57 = vpop.permute.xlu1 %1895  ;;  %v2031_v61 = vmul.f32 %v1996_v22, %v1580_v4  ;;  %v1584_v12 = vmul.f32 %v8147_v6, %v1508_v26 }
 0x406   :  { %v1997_v56 = vsel %vm1991_vm7, %v1988_v59, %v1896_v57  ;;  %v2048_v60 = vpack.c.bf16 %v2033_v55, %v2030_v8 }
 0x407   :  { %v2034_v42 = vmul.f32 %v1997_v56, %v1583_v45  ;;  %v1918_v30 = vpop.permute.xlu0 %1917 }
 0x408   :  { %v2005_v11 = vsel %vm2000_vm8, %v1894_v43, %v1918_v30  ;;  %v8154_v43 = vld [vmem:[#allocation20_spill] sm:$0xff] }
 0x409   :  { %v1920_v63 = vpop.permute.xlu1 %1919  ;;  %v2049_v18 = vpack.c.bf16 %v2034_v42, %v2031_v61 }
 0x40a   :  { %v2006_v0 = vsel %vm2000_vm8, %v1896_v57, %v1920_v63 }
 0x40b   :  { %v1942_v34 = vpop.permute.xlu0 %1941  ;;  %2246 = vmatprep.mubr.bf16.mxu1 %v2049_v18 }
 0x40c   :  { %v2014_v2 = vsel %vm2009_vm9, %v2005_v11, %v1942_v34  ;;  %2247 = vmatmul.mubr.bf16.gmra.mrb[56].mxu1 %v2048_v60 }
 0x40d   :  { %v1944_v44 = vpop.permute.xlu1 %1943  ;;  %2254 = vmatprep.mubr.bf16.mxu1 %v2052_v9  ;;  %v2032_v49 = vmul.f32 %v2014_v2, %v1581_v16  ;;  %v1588_v9 = vmul.f32 %v8145_v21, %v1410_v33 }
 0x40e   :  { %v2015_v17 = vsel %vm2009_vm9, %v2006_v0, %v1944_v44  ;;  %v8160_v44 = vld [vmem:[#allocation13_spill] sm:$0xff] }
 0x40f   :  { %v2035_v7 = vmul.f32 %v2015_v17, %v1584_v12  ;;  %v1802_v41 = vpop.permute.xlu0 %1801 }
 0x410   :  { %v1964_v58 = vsel %vm1957_vm5, %v8153_v53, %v1802_v41 }
 0x411   :  { %v1973_v8 = vsel %vm1966_vm6, %v1964_v58, %v6937_v14  ;;  %v1804_v1 = vpop.permute.xlu1 %1803  ;;  %v2050_v28 = vpack.c.bf16 %v2035_v7, %v2032_v49  ;;  %v8162_v7 = vld [vmem:[#allocation21_spill] sm:$0xff] }
 0x412   :  { %v2036_v38 = vmul.f32 %v1973_v8, %v1585_v54  ;;  %v1965_v25 = vsel %vm1957_vm5, %v8154_v43, %v1804_v1 }
 0x413   :  { %v1974_v40 = vsel %vm1966_vm6, %v1965_v25, %v6943_v31  ;;  %4471 = vmatprep.mubr.bf16.mxu0 %v2050_v28 }
 0x414   :  { %v2039_v3 = vmul.f32 %v1974_v40, %v1588_v9  ;;  %4472 = vmatmul.mubr.bf16.gmra.mrb[60].mxu0 %v2053_v5 }
 0x416   :  { %v2051_v55 = vpack.c.bf16 %v2039_v3, %v2036_v38 }
 0x418   :  { %2255 = vmatmul.mubr.bf16.gmra.mrb[60].mxu1 %v2051_v55 }
 0x420   :  { %v7048_v14 = vpop.permute.xlu0 %2350 }
 0x422   :  { %v7050_v22 = vpop.permute.xlu1 %2355 }
 0x424   :  { %v7052_v4 = vpop.permute.xlu0 %2365 }
 0x426   :  { %v7054_v45 = vpop.permute.xlu1 %2360 }
 0x428   :  { %v7056_v59 = vpop.permute.xlu0 %2375 }
 0x42a   :  { %v7058_v57 = vpop.permute.xlu1 %2370 }
 0x42c   :  { %v7060_v31 = vpop.permute.xlu0 %2385 }
 0x42e   :  { %v7062_v56 = vpop.permute.xlu1 %2380 }
 0x431   :  { %v7064_v19 = vpop.permute.xlu0 %2630 }
 0x433   :  { %v7066_v23 = vpop.permute.xlu1 %2626 }
 0x435   :  { %v7068_v5 = vpop.permute.xlu0 %2642 }
 0x437   :  { %v7070_v60 = vpop.permute.xlu1 %2634 }
 0x439   :  { %v7072_v61 = vpop.permute.xlu0 %2650 }
 0x43b   :  { %v7074_v42 = vpop.permute.xlu1 %2638 }
 0x43e   :  { %v7076_v30 = vpop.permute.xlu0 %1262 }
 0x43f   :  { %v7080_v26 = vadd.f32 %v8155_v47, %v7076_v30  ;;  %v7082_v63 = vpop.permute.xlu1 %2646 }
 0x442   :  { %v7084_v18 = vpop.permute.xlu0 %1274 }
 0x443   :  { %v7086_v11 = vpop.permute.xlu1 %2654 }
 0x446   :  { %v1283_v34 = vpop.permute.xlu0 %1282 }
 0x447   :  { %v7089_v2 = vadd.f32 %v8156_v35, %v1283_v34  ;;  %v7092_v16 = vadd.f32 %v6949_v36, %v1283_v34  ;;  %v7095_v12 = vadd.f32 %v6957_v20, %v1283_v34  ;;  %v4696_v20 = vld [vmem:[%s7918_s2 + $0xa0] sm:$0xff]  }
 0x448   :  { %v7097_v0 = vpop.permute.xlu1 %1266  ;;  %4483 = vmatprep.mubr.msk.bf16.mxu1 %vm1703_vm4, %v4696_v20 }
 0x449   :  { %8157 = vst [vmem:[#allocation24_spill] sm:$0xff] %v7089_v2  ;;  %8158 = vst [vmem:[#allocation25_spill] sm:$0xff] %v7092_v16  ;;  %v7101_v33 = vadd.f32 %v8160_v44, %v7097_v0 }
 0x44a   :  { %8159 = vst [vmem:[#allocation31_spill] sm:$0xff] %v7095_v12 }
 0x44b   :  { %8161 = vst [vmem:[#allocation30_spill] sm:$0xff] %v7101_v33 }
 0x44c   :  { %v7103_v17 = vpop.permute.xlu1 %1270 }
 0x450   :  { %v1279_v49 = vpop.permute.xlu1 %1278 }
 0x451   :  { %v7106_v41 = vadd.f32 %v8162_v7, %v1279_v49  ;;  %v7109_v54 = vadd.f32 %v6945_v24, %v1279_v49  ;;  %v7112_v36 = vadd.f32 %v6947_v13, %v1279_v49 }
 0x453   :  { %8163 = vst [vmem:[#allocation26_spill] sm:$0xff] %v7106_v41  ;;  %8164 = vst [vmem:[#allocation27_spill] sm:$0xff] %v7109_v54 }
 0x454   :  { %8165 = vst [vmem:[#allocation5_spill] sm:$0xff] %v7112_v36 }
 0x4ab   :  { %v4241_v53 = vpop.f32.mrb[48].mxu1 }
 0x4ac   :  { %v4242_v58 = vpop.f32.mrb[49].mxu1 }
 0x4ad   :  { %v4243_v8 = vadd.f32 %v4242_v58, %v4241_v53  ;;  %v4244_v1 = vpop.f32.mrb[50].mxu1 }
 0x4ae   :  { %v4245_v28 = vpop.f32.mrb[51].mxu1 }
 0x4af   :  { %v4246_v9 = vadd.f32 %v4245_v28, %v4244_v1 }
 0x4b3   :  { %v4247_v38 = vpop.f32.mrb[52].mxu1  ;;  %v4469_v43 = vpop.f32.mrb[56].mxu0 }
 0x4b4   :  { %v4248_v25 = vpop.f32.mrb[53].mxu1  ;;  %v2297_v24 = vpop.f32.mrb[57].mxu0 }
 0x4b5   :  { %v4249_v40 = vadd.f32 %v4248_v25, %v4247_v38  ;;  %v2298_v3 = vadd.f32 %v4243_v8, %v2297_v24  ;;  %v4250_v13 = vpop.f32.mrb[54].mxu1  ;;  %v4470_v55 = vpop.f32.mrb[58].mxu0 }
 0x4b6   :  { %v4251_v47 = vpop.f32.mrb[55].mxu1  ;;  %v2300_v34 = vpop.f32.mrb[59].mxu0 }
 0x4b7   :  { %v2306_v35 = vadd.f32 %v4469_v43, %v4249_v40  ;;  %v4252_v44 = vadd.f32 %v4251_v47, %v4250_v13  ;;  %v2301_v49 = vadd.f32 %v4246_v9, %v2300_v34 }
 0x4b9   :  { %v2309_v7 = vadd.f32 %v4470_v55, %v4252_v44  ;;  %v2336_v20 = vpack.c.bf16 %v2301_v49, %v2298_v3 }
 0x4bb   :  { %4475 = vmatprep.subr.bf16.mxu1 %v2336_v20  ;;  %v2337_v53 = vpack.c.bf16 %v2309_v7, %v2306_v35 }
 0x4bc   :  { %4476 = vmatpush3.bf16.msra.mxu1 %v2336_v20  ;;  %v4698_v20 = vld [vmem:[%s7918_s2 + $0xb0] sm:$0xff]  }
 0x4bd   :  { %4477 = vmatprep.subr.bf16.mxu1 %v2337_v53 }
 0x4c0   :  { %4478 = vmatpush3.bf16.msra.mxu1 %v2337_v53 }
 0x4df   :  { %v4253_v58 = vpop.f32.mrb[56].mxu1 }
 0x4e0   :  { %v4254_v1 = vpop.f32.mrb[57].mxu1 }
 0x4e1   :  { %v4255_v28 = vadd.f32 %v4254_v1, %v4253_v58  ;;  %v4256_v15 = vpop.f32.mrb[58].mxu1 }
 0x4e2   :  { %v4257_v38 = vpop.f32.mrb[59].mxu1 }
 0x4e3   :  { %v4258_v8 = vadd.f32 %v4257_v38, %v4256_v15  ;;  %v4697_v15 = vld [vmem:[%s7918_s2 + $0xa8] sm:$0xff]  }
 0x4e7   :  { %v4473_v25 = vpop.f32.mrb[60].mxu0 }
 0x4e8   :  { %v2313_v24 = vpop.f32.mrb[61].mxu0 }
 0x4e9   :  { %v2314_v2 = vadd.f32 %v4255_v28, %v2313_v24  ;;  %v4474_v41 = vpop.f32.mrb[62].mxu0 }
 0x4ea   :  { %v2316_v43 = vpop.f32.mrb[63].mxu0 }
 0x4eb   :  { %v2317_v40 = vadd.f32 %v4258_v8, %v2316_v43  ;;  %v4259_v9 = vpop.f32.mrb[60].mxu1 }
 0x4ec   :  { %v4260_v13 = vpop.f32.mrb[61].mxu1 }
 0x4ed   :  { %v2338_v3 = vpack.c.bf16 %v2317_v40, %v2314_v2  ;;  %v4261_v55 = vadd.f32 %v4260_v13, %v4259_v9  ;;  %v4262_v47 = vpop.f32.mrb[62].mxu1  ;;  %v4699_v2 = vld [vmem:[%s7918_s2 + $0xb8] sm:$0xff]  }
 0x4ee   :  { %v4263_v34 = vpop.f32.mrb[63].mxu1 }
 0x4ef   :  { %v2322_v35 = vadd.f32 %v4473_v25, %v4261_v55  ;;  %v4264_v44 = vadd.f32 %v4263_v34, %v4262_v47  ;;  %4479 = vmatprep.subr.bf16.mxu1 %v2338_v3 }
 0x4f0   :  { %4480 = vmatpush3.bf16.msra.mxu1 %v2338_v3 }
 0x4f1   :  { %v2325_v49 = vadd.f32 %v4474_v41, %v4264_v44  ;;  %v4700_v41 = vld [vmem:[%s7918_s2 + $0xc0] sm:$0xff]  }
 0x4f2   :  { %4499 = vmatprep.mubr.msk.bf16.mxu0 %vm1703_vm4, %v4700_v41 }
 0x4f3   :  { %v2339_v7 = vpack.c.bf16 %v2325_v49, %v2322_v35 }
 0x4f5   :  { %4481 = vmatprep.subr.bf16.mxu1 %v2339_v7 }
 0x4f6   :  { %4482 = vmatpush3.bf16.msra.mxu1 %v2339_v7 }
 0x4f9   :  { %4484 = vmatmul.mubr.msk.bf16.vlgmr.msra.gmra.mrb[64].mxu1 %vm1703_vm4, %v4697_v15 }
 0x4fa   :  { %4487 = vmatprep.mubr.msk.bf16.mxu1 %vm1703_vm4, %v4698_v20 }
 0x501   :  { %4488 = vmatmul.mubr.msk.bf16.gmra.mrb[68].mxu1 %vm1703_vm4, %v4699_v2 }
 0x5cc   :  { %v4485_v53 = vpop.f32.mrb[64].mxu1 }
 0x5cd   :  { %v7135_v58 = vadd.f32 %v4485_v53, %v7054_v45  ;;  %v2454_v1 = vpop.f32.mrb[65].mxu1 }
 0x5ce   :  { %v7138_v28 = vadd.f32 %v2454_v1, %v7048_v14  ;;  %v4486_v38 = vpop.f32.mrb[66].mxu1 }
 0x5cf   :  { %v2495_v8 = vand.u32 2147483647, %v7135_v58  ;;  %v7142_v25 = vadd.f32 %v4486_v38, %v7052_v4  ;;  %v2457_v24 = vpop.f32.mrb[67].mxu1 }
 0x5d0   :  { %v2493_v43 = vand.u32 2147483647, %v7138_v28  ;;  %v7146_v40 = vadd.f32 %v2457_v24, %v7050_v22 }
 0x5d1   :  { %v2503_v9 = vsub.f32 0.0, %v2495_v8  ;;  %v2496_v45 = vand.u32 2147483647, %v7142_v25 }
 0x5d2   :  { %v2501_v13 = vsub.f32 0.0, %v2493_v43  ;;  %v2494_v3 = vand.u32 2147483647, %v7146_v40 }
 0x5d3   :  { %v2513_v14 = vmul.f32 1.442695, %v2503_v9  ;;  %v2504_v55 = vsub.f32 0.0, %v2496_v45 }
 0x5d4   :  { %v2509_v47 = vmul.f32 1.442695, %v2501_v13  ;;  %v2502_v34 = vsub.f32 0.0, %v2494_v3  ;;  %v4489_v35 = vpop.f32.mrb[68].mxu1 }
 0x5d5   :  { %4929 = vpow2.f32 %v2513_v14  ;;  %v2515_v4 = vmul.f32 1.442695, %v2504_v55  ;;  %v7151_v44 = vadd.f32 %v4489_v35, %v7062_v56  ;;  %v2470_v49 = vpop.f32.mrb[69].mxu1 }
 0x5d6   :  { %4931 = vpow2.f32 %v2509_v47  ;;  %v2511_v22 = vmul.f32 1.442695, %v2502_v34  ;;  %v7154_v7 = vadd.f32 %v2470_v49, %v7058_v57  ;;  %v4490_v15 = vpop.f32.mrb[70].mxu1 }
 0x5d7   :  { %4933 = vpow2.f32 %v2515_v4  ;;  %v2499_v20 = vand.u32 2147483647, %v7151_v44  ;;  %v7158_v2 = vadd.f32 %v4490_v15, %v7060_v31  ;;  %v2473_v41 = vpop.f32.mrb[71].mxu1  ;;  %v2487_v15 = vmax.f32 %v7135_v58, 0.0 }
 0x5d8   :  { %4935 = vpow2.f32 %v2511_v22  ;;  %v2497_v53 = vand.u32 2147483647, %v7154_v7  ;;  %v7162_v56 = vadd.f32 %v2473_v41, %v7056_v59 }
 0x5d9   :  { %v2507_v1 = vsub.f32 0.0, %v2499_v20  ;;  %v2500_v38 = vand.u32 2147483647, %v7158_v2 }
 0x5da   :  { %v2505_v8 = vsub.f32 0.0, %v2497_v53  ;;  %v2498_v57 = vand.u32 2147483647, %v7162_v56 }
 0x5db   :  { %v2521_v24 = vmul.f32 1.442695, %v2507_v1  ;;  %v2508_v43 = vsub.f32 0.0, %v2500_v38  ;;  %v2485_v38 = vmax.f32 %v7138_v28, 0.0 }
 0x5dc   :  { %v2517_v9 = vmul.f32 1.442695, %v2505_v8  ;;  %v2506_v45 = vsub.f32 0.0, %v2498_v57  ;;  %v2488_v57 = vmax.f32 %v7142_v25, 0.0 }
 0x5dd   :  { %4937 = vpow2.f32 %v2521_v24  ;;  %v2523_v31 = vmul.f32 1.442695, %v2508_v43  ;;  %v2486_v43 = vmax.f32 %v7146_v40, 0.0 }
 0x5de   :  { %4939 = vpow2.f32 %v2517_v9  ;;  %v2519_v13 = vmul.f32 1.442695, %v2506_v45 }
 0x5df   :  { %v4930_v3 = vpop.eup %4929  ;;  %4941 = vpow2.f32 %v2523_v31 }
 0x5e0   :  { %v4932_v14 = vpop.eup %4931  ;;  %v2543_v55 = vadd.f32 1.0, %v4930_v3  ;;  %4943 = vpow2.f32 %v2519_v13  ;;  %v2546_v4 = vmul.f32 -0.5, %v4930_v3  ;;  %v2549_v20 = vand.u32 2147483647, %v4930_v3 }
 0x5e1   :  { %v4934_v59 = vpop.eup %4933  ;;  %v2525_v47 = vadd.f32 1.0, %v4932_v14  ;;  %v2528_v22 = vmul.f32 -0.5, %v4932_v14  ;;  %v2531_v8 = vand.u32 2147483647, %v4932_v14 }
 0x5e2   :  { %v7166_v34 = vpop.eup %4935  ;;  %4945 = vlog2.f32 %v2543_v55  ;;  %v2552_v35 = vadd.f32 1.0, %v4934_v59  ;;  %v2555_v41 = vmul.f32 -0.5, %v4934_v59  ;;  %v2547_v1 = vadd.f32 1.0, %v2546_v4 }
 0x5e3   :  { %4947 = vlog2.f32 %v2525_v47  ;;  %v2534_v49 = vadd.f32 1.0, %v7166_v34  ;;  %v2537_v9 = vmul.f32 -0.5, %v7166_v34  ;;  %v2529_v13 = vadd.f32 1.0, %v2528_v22 }
 0x5e4   :  { %4949 = vlog2.f32 %v2552_v35  ;;  %vm7184_vm10 = vcmp.lt.f32.partialorder %v2549_v20, 0.0004427343  ;;  %v2556_v40 = vadd.f32 1.0, %v2555_v41  ;;  %vm7189_vm11 = vcmp.lt.f32.partialorder %v2531_v8, 0.0004427343 }
 0x5e5   :  { %4951 = vlog2.f32 %v2534_v49  ;;  %v2548_v49 = vmul.f32 %v4930_v3, %v2547_v1  ;;  %v2558_v46 = vand.u32 2147483647, %v4934_v59  ;;  %v2538_v28 = vadd.f32 1.0, %v2537_v9 }
 0x5e6   :  { %v2530_v16 = vmul.f32 %v4932_v14, %v2529_v13  ;;  %v2540_v41 = vand.u32 2147483647, %v7166_v34  ;;  %v2557_v8 = vmul.f32 %v4934_v59, %v2556_v40 }
 0x5e7   :  { %v4938_v53 = vpop.eup %4937  ;;  %vm2559_vm12 = vcmp.lt.f32.partialorder %v2558_v46, 0.0004427343  ;;  %v2539_v13 = vmul.f32 %v7166_v34, %v2538_v28 }
 0x5e8   :  { %v7172_v24 = vpop.eup %4939  ;;  %v2579_v31 = vadd.f32 1.0, %v4938_v53  ;;  %v2582_v22 = vmul.f32 -0.5, %v4938_v53  ;;  %v2585_v54 = vand.u32 2147483647, %v4938_v53  ;;  %vm2541_vm13 = vcmp.lt.f32.partialorder %v2540_v41, 0.0004427343 }
 0x5e9   :  { %v7177_v58 = vpop.eup %4941  ;;  %v2561_v47 = vadd.f32 1.0, %v7172_v24 }
 0x5ea   :  { %v7182_v35 = vpop.eup %4943  ;;  %4953 = vlog2.f32 %v2579_v31  ;;  %v2588_v4 = vadd.f32 1.0, %v7177_v58  ;;  %v2564_v31 = vmul.f32 -0.5, %v7172_v24  ;;  %v2583_v9 = vadd.f32 1.0, %v2582_v22 }
 0x5eb   :  { %4955 = vlog2.f32 %v2561_v47  ;;  %v2570_v20 = vadd.f32 1.0, %v7182_v35  ;;  %v2573_v40 = vmul.f32 -0.5, %v7182_v35  ;;  %vm7204_vm14 = vcmp.lt.f32.partialorder %v2585_v54, 0.0004427343 }
 0x5ec   :  { %v4946_v55 = vpop.eup %4945  ;;  %4957 = vlog2.f32 %v2588_v4  ;;  %v2591_v4 = vmul.f32 -0.5, %v7177_v58  ;;  %v2565_v59 = vadd.f32 1.0, %v2564_v31  ;;  %v2584_v22 = vmul.f32 %v4938_v53, %v2583_v9 }
 0x5ed   :  { %v4948_v12 = vpop.eup %4947  ;;  %v2545_v36 = vmul.f32 0.6931472, %v4946_v55  ;;  %4959 = vlog2.f32 %v2570_v20  ;;  %v2576_v41 = vand.u32 2147483647, %v7182_v35 }
 0x5ee   :  { %v4950_v3 = vpop.eup %4949  ;;  %v2527_v1 = vmul.f32 0.6931472, %v4948_v12 }
 0x5ef   :  { %v2551_v47 = vsel %vm7184_vm10, %v2548_v49, %v2545_v36  ;;  %v2554_v51 = vmul.f32 0.6931472, %v4950_v3  ;;  %v4952_v50 = vpop.eup %4951  ;;  %v2567_v36 = vand.u32 2147483647, %v7172_v24  ;;  %vm2577_vm2 = vcmp.lt.f32.partialorder %v2576_v41, 0.0004427343 }
 0x5f0   :  { %v2599_v33 = vadd.f32 %v2551_v47, %v2487_v15  ;;  %v2533_v14 = vsel %vm7189_vm11, %v2530_v16, %v2527_v1  ;;  %v2536_v12 = vmul.f32 0.6931472, %v4952_v50  ;;  %v2592_v16 = vadd.f32 1.0, %v2591_v4  ;;  %v5033_v41 = vld [vmem:[%s7918_s2 + $0x170] sm:$0xff]  }
 0x5f1   :  { %v2560_v55 = vsel %vm2559_vm12, %v2557_v8, %v2554_v51  ;;  %v2597_v20 = vadd.f32 %v2533_v14, %v2485_v38  ;;  %v2594_v50 = vand.u32 2147483647, %v7177_v58  ;;  %v2566_v38 = vmul.f32 %v7172_v24, %v2565_v59 }
 0x5f2   :  { %v2600_v25 = vadd.f32 %v2560_v55, %v2488_v57  ;;  %v2542_v49 = vsel %vm2541_vm13, %v2539_v13, %v2536_v12  ;;  %v4128_v45 = vadd.f32 -0.6931472, %v2599_v33  ;;  %v2574_v57 = vadd.f32 1.0, %v2573_v40 }
 0x5f3   :  { %v2598_v51 = vadd.f32 %v2542_v49, %v2486_v43  ;;  %v4126_v53 = vadd.f32 -0.6931472, %v2597_v20  ;;  %vm2568_vm15 = vcmp.lt.f32.partialorder %v2567_v36, 0.0004427343  ;;  %v2593_v43 = vmul.f32 %v7177_v58, %v2592_v16 }
 0x5f4   :  { %v4954_v46 = vpop.eup %4953  ;;  %v4129_v34 = vadd.f32 -0.6931472, %v2600_v25  ;;  %v8172_v4 = vmax.f32 %v7151_v44, 0.0  ;;  %vm2595_vm1 = vcmp.lt.f32.partialorder %v2594_v50, 0.0004427343  ;;  %v2575_v59 = vmul.f32 %v7182_v35, %v2574_v57  ;;  %v4703_v50 = vld [vmem:[%s7918_s2 + $0xd8] sm:$0xff]  }
 0x5f5   :  { %v4956_v28 = vpop.eup %4955  ;;  %v2581_v31 = vmul.f32 0.6931472, %v4954_v46  ;;  %v4127_v54 = vadd.f32 -0.6931472, %v2598_v51  ;;  %v8173_v40 = vmax.f32 %v7154_v7, 0.0  ;;  %v8174_v25 = vmax.f32 %v7158_v2, 0.0 }
 0x5f6   :  { %v4958_v3 = vpop.eup %4957  ;;  %v2563_v1 = vmul.f32 0.6931472, %v4956_v28  ;;  %v2622_v8 = vpack.c.bf16 %v4129_v34, %v4128_v45  ;;  %v2490_v49 = vmax.f32 %v7162_v56, 0.0  ;;  %v4701_v7 = vld [vmem:[%s7918_s2 + $0xc8] sm:$0xff]   ;;  %v4702_v2 = vld [vmem:[%s7918_s2 + $0xd0] sm:$0xff]   ;;  %v5026_v56 = vld [vmem:[%s7918_s2 + $0x198] sm:$0xff]  }
 0x5f7   :  { %v2587_v47 = vsel %vm7204_vm14, %v2584_v22, %v2581_v31  ;;  %v2590_v33 = vmul.f32 0.6931472, %v4958_v3  ;;  %v4960_v9 = vpop.eup %4959  ;;  %v2621_v13 = vpack.c.bf16 %v4127_v54, %v4126_v53  ;;  %v5027_v34 = vld [vmem:[%s7918_s2 + $0x158] sm:$0xff]   ;;  %v5028_v51 = vld [vmem:[%s7918_s2 + $0x1a0] sm:$0xff]   ;;  %v5030_v31 = vld [vmem:[%s7918_s2 + $0x1a8] sm:$0xff]  }
 0x5f8   :  { %v2603_v14 = vadd.f32 %v2587_v47, %v8172_v4  ;;  %v2569_v24 = vsel %vm2568_vm15, %v2566_v38, %v2563_v1  ;;  %v2572_v12 = vmul.f32 0.6931472, %v4960_v9  ;;  %v5029_v28 = vld [vmem:[%s7918_s2 + $0x160] sm:$0xff]   ;;  %v5031_v38 = vld [vmem:[%s7918_s2 + $0x168] sm:$0xff]   ;;  %v5032_v57 = vld [vmem:[%s7918_s2 + $0x1b0] sm:$0xff]  }
 0x5f9   :  { %v2596_v55 = vsel %vm2595_vm1, %v2593_v43, %v2590_v33  ;;  %v2601_v20 = vadd.f32 %v2569_v24, %v8173_v40  ;;  %4491 = vmatprep.subr.bf16.mxu0 %v2621_v13  ;;  %v5034_v3 = vld [vmem:[%s7918_s2 + $0x1b8] sm:$0xff]   ;;  %v5036_v54 = vld [vmem:[%s7918_s2 + $0x1c0] sm:$0xff]   ;;  %v5039_v47 = vld [vmem:[%s7918_s2 + $0x188] sm:$0xff]  }
 0x5fa   :  { %v2604_v36 = vadd.f32 %v2596_v55, %v8174_v25  ;;  %v2578_v58 = vsel %vm2577_vm2, %v2575_v59, %v2572_v12  ;;  %4492 = vmatpush3.bf16.msra.mxu0 %v2621_v13  ;;  %v4132_v44 = vadd.f32 -0.6931472, %v2603_v14  ;;  %v5035_v53 = vld [vmem:[%s7918_s2 + $0x178] sm:$0xff]   ;;  %v5037_v1 = vld [vmem:[%s7918_s2 + $0x180] sm:$0xff]   ;;  %v5040_v33 = vld [vmem:[%s7918_s2 + $0x1d0] sm:$0xff]  }
 0x5fb   :  { %v2602_v15 = vadd.f32 %v2578_v58, %v2490_v49  ;;  %4493 = vmatprep.subr.bf16.mxu0 %v2622_v8  ;;  %v4130_v16 = vadd.f32 -0.6931472, %v2601_v20  ;;  %v5041_v43 = vld [vmem:[%s7918_s2 + $0x190] sm:$0xff]   ;;  %v4704_v9 = vld [vmem:[%s7918_s2 + $0xe0] sm:$0xff]  }
 0x5fc   :  { %v4133_v22 = vadd.f32 -0.6931472, %v2604_v36  ;;  %4515 = vmatprep.mubr.msk.bf16.mxu1 %vm1703_vm4, %v4704_v9  ;;  %v5042_v20 = vld [vmem:[%s7919_s1] sm:$0xff]  ;;  %v5043_v36 = vld [vmem:[%s7919_s1 + $0x18] sm:$0xff] }
 0x5fd   :  { %v4131_v46 = vadd.f32 -0.6931472, %v2602_v15 }
 0x5fe   :  { %v2624_v45 = vpack.c.bf16 %v4133_v22, %v4132_v44  ;;  %4494 = vmatpush3.bf16.msra.mxu0 %v2622_v8  ;;  %v5038_v8 = vld [vmem:[%s7918_s2 + $0x1c8] sm:$0xff]  }
 0x5ff   :  { %v2623_v35 = vpack.c.bf16 %v4131_v46, %v4130_v16 }
 0x601   :  { %4495 = vmatprep.subr.bf16.mxu0 %v2623_v35 }
 0x602   :  { %4496 = vmatpush3.bf16.msra.mxu0 %v2623_v35 }
 0x603   :  { %4497 = vmatprep.subr.bf16.mxu0 %v2624_v45 }
 0x606   :  { %4498 = vmatpush3.bf16.msra.mxu0 %v2624_v45 }
 0x607   :  { %4301 = vmatprep.subr.bf16.mxu0 %v5026_v56  ;;  %v5046_v56 = vld [vmem:[%s7919_s1 + $0x20] sm:$0xff] }
 0x609   :  { %4500 = vmatmul.mubr.msk.bf16.vlgmr.msra.gmra.mrb[64].mxu0 %vm1703_vm4, %v4701_v7 }
 0x60a   :  { %4503 = vmatprep.mubr.msk.bf16.mxu0 %vm1703_vm4, %v4702_v2  ;;  %4302 = vmatpush3.bf16.msra.mxu0 %v5027_v34 }
 0x60b   :  { %4303 = vmatprep.subr.bf16.mxu0 %v5028_v51 }
 0x60e   :  { %4304 = vmatpush3.bf16.msra.mxu0 %v5029_v28 }
 0x60f   :  { %4305 = vmatprep.subr.bf16.mxu0 %v5030_v31 }
 0x611   :  { %4504 = vmatmul.mubr.msk.bf16.gmra.mrb[68].mxu0 %vm1703_vm4, %v4703_v50 }
 0x612   :  { %4306 = vmatpush3.bf16.msra.mxu0 %v5031_v38  ;;  %v4705_v38 = vld [vmem:[%s7918_s2 + $0xe8] sm:$0xff]  }
 0x613   :  { %4307 = vmatprep.subr.bf16.mxu0 %v5032_v57  ;;  %v4706_v57 = vld [vmem:[%s7918_s2 + $0xf0] sm:$0xff]  }
 0x616   :  { %4308 = vmatpush3.bf16.msra.mxu0 %v5033_v41  ;;  %v5050_v41 = vld [vmem:[%s7918_s2 + $0x1d8] sm:$0xff]  }
 0x617   :  { %4309 = vmatprep.subr.bf16.mxu0 %v5034_v3  ;;  %v5051_v3 = vld [vmem:[%s7918_s2 + $0x1e0] sm:$0xff]  }
 0x61a   :  { %4310 = vmatpush3.bf16.msra.mxu0 %v5035_v53  ;;  %v4707_v53 = vld [vmem:[%s7918_s2 + $0xf8] sm:$0xff]  }
 0x61b   :  { %4311 = vmatprep.subr.bf16.mxu0 %v5036_v54  ;;  %v5052_v54 = vld [vmem:[%s7918_s2 + $0x1e8] sm:$0xff]  }
 0x61e   :  { %4312 = vmatpush3.bf16.msra.mxu0 %v5037_v1  ;;  %v5053_v1 = vld [vmem:[%s7918_s2 + $0x1f0] sm:$0xff]  }
 0x61f   :  { %4313 = vmatprep.subr.bf16.mxu0 %v5038_v8  ;;  %v5054_v8 = vld [vmem:[%s7918_s2 + $0x1f8] sm:$0xff]  }
 0x622   :  { %4314 = vmatpush3.bf16.msra.mxu0 %v5039_v47  ;;  %v5055_v47 = vld [vmem:[%s7918_s2 + $0x200] sm:$0xff]  }
 0x623   :  { %4315 = vmatprep.subr.bf16.mxu0 %v5040_v33  ;;  %v5056_v33 = vld [vmem:[%s7918_s2 + $0x208] sm:$0xff]  }
 0x626   :  { %4316 = vmatpush3.bf16.msra.mxu0 %v5041_v43  ;;  %v5057_v43 = vld [vmem:[%s7918_s2 + $0x210] sm:$0xff]  }
 0x6dc   :  { %v4501_v4 = vpop.f32.mrb[64].mxu0 }
 0x6dd   :  { %v2723_v14 = vpop.f32.mrb[65].mxu0  ;;  %v2732_v59 = vadd.f32 %v4501_v4, %v7070_v60 }
 0x6de   :  { %v2724_v24 = vadd.f32 %v2723_v14, %v7066_v23  ;;  %v4502_v13 = vpop.f32.mrb[66].mxu0  ;;  %v5044_v23 = vld [vmem:[%s7919_s1 + $0x8] sm:$0xff] }
 0x6df   :  { %v2735_v55 = vadd.f32 %v4502_v13, %v7074_v42  ;;  %v2726_v12 = vpop.f32.mrb[67].mxu0 }
 0x6e0   :  { %v2727_v40 = vadd.f32 %v2726_v12, %v7064_v19  ;;  %v7293_v25 = vadd.f32 %v5042_v20, %v2724_v24  ;;  %v5045_v19 = vld [vmem:[%s7919_s1 + $0x10] sm:$0xff]  ;;  %v7508_v20 = vpop.permute.xlu0 %1290 }
 0x6e1   :  { %v7298_v49 = vadd.f32 %v5043_v36, %v2735_v55  ;;  %v7308_v60 = vadd.f32 %v5045_v19, %v2732_v59 }
 0x6e2   :  { %v7303_v42 = vadd.f32 %v5044_v23, %v2727_v40  ;;  %v7504_v40 = vpop.permute.xlu1 %1286 }
 0x6e3   :  { %v2771_v46 = vpack.c.bf16 %v7298_v49, %v7308_v60 }
 0x6e4   :  { %v4505_v58 = vpop.f32.mrb[68].mxu0  ;;  %v2770_v44 = vpack.c.bf16 %v7303_v42, %v7293_v25 }
 0x6e5   :  { %v2739_v22 = vpop.f32.mrb[69].mxu0  ;;  %v2748_v7 = vadd.f32 %v4505_v58, %v7072_v61 }
 0x6e6   :  { %v2740_v15 = vadd.f32 %v2739_v22, %v7068_v5  ;;  %v4506_v16 = vpop.f32.mrb[70].mxu0  ;;  %4507 = vmatprep.subr.bf16.mxu1 %v2770_v44  ;;  %v5047_v5 = vld [vmem:[%s7919_s1 + $0x38] sm:$0xff]  ;;  %v1426_v22 = vadd.f32 %v6932_v39, %v7103_v17 }
 0x6e7   :  { %v2751_v45 = vadd.f32 %v4506_v16, %v7086_v11  ;;  %v2742_v35 = vpop.f32.mrb[71].mxu0  ;;  %4508 = vmatpush3.bf16.msra.mxu1 %v2770_v44  ;;  %v5048_v11 = vld [vmem:[%s7919_s1 + $0x28] sm:$0xff]  ;;  %v1430_v16 = vadd.f32 %v6939_v10, %v7084_v18 }
 0x6e8   :  { %v2743_v2 = vadd.f32 %v2742_v35, %v7082_v63  ;;  %4509 = vmatprep.subr.bf16.mxu1 %v2771_v46  ;;  %v7321_v34 = vadd.f32 %v5046_v56, %v2740_v15  ;;  %v5049_v63 = vld [vmem:[%s7919_s1 + $0x30] sm:$0xff] }
 0x6e9   :  { %v7326_v51 = vadd.f32 %v5047_v5, %v2751_v45  ;;  %v7336_v50 = vadd.f32 %v5049_v63, %v2748_v7  ;;  %v1597_v45 = vmul.f32 %v8145_v21, %v1426_v22  ;;  %v1428_v7 = vadd.f32 %v6935_v52, %v7103_v17 }
 0x6ea   :  { %v7331_v61 = vadd.f32 %v5048_v11, %v2743_v2  ;;  %v1432_v2 = vadd.f32 %v6941_v29, %v7084_v18  ;;  %v1600_v39 = vmul.f32 %v8145_v21, %v1430_v16 }
 0x6eb   :  { %4510 = vmatpush3.bf16.msra.mxu1 %v2771_v46  ;;  %v2773_v31 = vpack.c.bf16 %v7326_v51, %v7336_v50 }
 0x6ec   :  { %v2772_v28 = vpack.c.bf16 %v7331_v61, %v7321_v34 }
 0x6ee   :  { %4511 = vmatprep.subr.bf16.mxu1 %v2772_v28 }
 0x6ef   :  { %4512 = vmatpush3.bf16.msra.mxu1 %v2772_v28 }
 0x6f0   :  { %4513 = vmatprep.subr.bf16.mxu1 %v2773_v31 }
 0x6f3   :  { %4514 = vmatpush3.bf16.msra.mxu1 %v2773_v31 }
 0x6f4   :  { %4523 = vmatprep.subr.bf16.mxu1 %v5050_v41 }
 0x6f6   :  { %4516 = vmatmul.mubr.msk.bf16.vlgmr.msra.gmra.mrb[72].mxu1 %vm1703_vm4, %v4705_v38 }
 0x6f7   :  { %4519 = vmatprep.mubr.msk.bf16.mxu1 %vm1703_vm4, %v4706_v57  ;;  %4524 = vmatpush3.bf16.msra.mxu1 %v5050_v41  ;;  %v1598_v41 = vmul.f32 %v8146_v27, %v1428_v7 }
 0x6f8   :  { %4525 = vmatprep.subr.bf16.mxu1 %v5051_v3 }
 0x6fb   :  { %4526 = vmatpush3.bf16.msra.mxu1 %v5051_v3  ;;  %v1601_v3 = vmul.f32 %v8146_v27, %v1432_v2 }
 0x6fc   :  { %4527 = vmatprep.subr.bf16.mxu1 %v5052_v54 }
 0x6fe   :  { %4520 = vmatmul.mubr.msk.bf16.gmra.mrb[76].mxu1 %vm1703_vm4, %v4707_v53 }
 0x6ff   :  { %4528 = vmatpush3.bf16.msra.mxu1 %v5052_v54 }
 0x700   :  { %4529 = vmatprep.subr.bf16.mxu1 %v5053_v1 }
 0x703   :  { %4530 = vmatpush3.bf16.msra.mxu1 %v5053_v1 }
 0x704   :  { %4531 = vmatprep.subr.bf16.mxu1 %v5054_v8 }
 0x707   :  { %4532 = vmatpush3.bf16.msra.mxu1 %v5054_v8 }
 0x708   :  { %4533 = vmatprep.subr.bf16.mxu1 %v5055_v47 }
 0x70b   :  { %4534 = vmatpush3.bf16.msra.mxu1 %v5055_v47 }
 0x70c   :  { %4535 = vmatprep.subr.bf16.mxu1 %v5056_v33 }
 0x70f   :  { %4536 = vmatpush3.bf16.msra.mxu1 %v5056_v33 }
 0x710   :  { %4537 = vmatprep.subr.bf16.mxu1 %v5057_v43 }
 0x713   :  { %4538 = vmatpush3.bf16.msra.mxu1 %v5057_v43 }
 0x7c9   :  { %v7378_v9 = vpop.f32.mrb[72].mxu1 }
 0x7ca   :  { %2907 = vrot.lane.b32.xlu1 %v7378_v9, %s5072_s18  ;;  %v7382_v4 = vpop.f32.mrb[73].mxu1 }
 0x7cb   :  { %v7384_v14 = vpop.f32.mrb[74].mxu1 }
 0x7cc   :  { %2909 = vrot.lane.b32.xlu0 %v7384_v14, %s5072_s18  ;;  %v7388_v24 = vpop.f32.mrb[75].mxu1 }
 0x7ce   :  { %2931 = vrot.lane.b32.xlu1 %v7378_v9, %s5073_s19 }
 0x7d0   :  { %2933 = vrot.lane.b32.xlu0 %v7384_v14, %s5073_s19 }
 0x7d1   :  { %v7394_v13 = vpop.f32.mrb[76].mxu1 }
 0x7d2   :  { %2955 = vrot.lane.b32.xlu1 %v7378_v9, %s5074_s22  ;;  %v7398_v55 = vpop.f32.mrb[77].mxu1 }
 0x7d3   :  { %v7400_v12 = vpop.f32.mrb[78].mxu1 }
 0x7d4   :  { %2957 = vrot.lane.b32.xlu0 %v7384_v14, %s5074_s22  ;;  %v7404_v59 = vpop.f32.mrb[79].mxu1 }
 0x7d6   :  { %2883 = vrot.lane.b32.xlu1 %v7378_v9, %s5075_s25 }
 0x7d8   :  { %2885 = vrot.lane.b32.xlu0 %v7384_v14, %s5075_s25 }
 0x7da   :  { %2979 = vrot.lane.b32.xlu1 %v7378_v9, %s5076_s29 }
 0x7dc   :  { %2981 = vrot.lane.b32.xlu0 %v7384_v14, %s5076_s29 }
 0x7de   :  { %3003 = vrot.lane.b32.xlu1 %v7378_v9, %s5077_s14 }
 0x7e0   :  { %3005 = vrot.lane.b32.xlu0 %v7384_v14, %s5077_s14 }
 0x7e2   :  { %3027 = vrot.lane.b32.xlu1 %v7378_v9, %s5078_s24 }
 0x7e4   :  { %3029 = vrot.lane.b32.xlu0 %v7384_v14, %s5078_s24 }
 0x7e6   :  { %2903 = vrot.lane.b32.xlu1 %v7382_v4, %s5072_s18 }
 0x7e8   :  { %2905 = vrot.lane.b32.xlu0 %v7388_v24, %s5072_s18 }
 0x7ea   :  { %2927 = vrot.lane.b32.xlu1 %v7382_v4, %s5073_s19 }
 0x7ec   :  { %2929 = vrot.lane.b32.xlu0 %v7388_v24, %s5073_s19 }
 0x7ee   :  { %2951 = vrot.lane.b32.xlu1 %v7382_v4, %s5074_s22 }
 0x7f0   :  { %2953 = vrot.lane.b32.xlu0 %v7388_v24, %s5074_s22 }
 0x7f2   :  { %2879 = vrot.lane.b32.xlu1 %v7382_v4, %s5075_s25 }
 0x7f4   :  { %2881 = vrot.lane.b32.xlu0 %v7388_v24, %s5075_s25 }
 0x7f6   :  { %2975 = vrot.lane.b32.xlu1 %v7382_v4, %s5076_s29 }
 0x7f8   :  { %2977 = vrot.lane.b32.xlu0 %v7388_v24, %s5076_s29 }
 0x7fa   :  { %2999 = vrot.lane.b32.xlu1 %v7382_v4, %s5077_s14 }
 0x7fc   :  { %3001 = vrot.lane.b32.xlu0 %v7388_v24, %s5077_s14 }
 0x7fe   :  { %3023 = vrot.lane.b32.xlu1 %v7382_v4, %s5078_s24 }
 0x800   :  { %3025 = vrot.lane.b32.xlu0 %v7388_v24, %s5078_s24 }
 0x802   :  { %2915 = vrot.lane.b32.xlu1 %v7394_v13, %s5072_s18 }
 0x804   :  { %2917 = vrot.lane.b32.xlu0 %v7400_v12, %s5072_s18 }
 0x806   :  { %2939 = vrot.lane.b32.xlu1 %v7394_v13, %s5073_s19 }
 0x808   :  { %2941 = vrot.lane.b32.xlu0 %v7400_v12, %s5073_s19 }
 0x80a   :  { %2987 = vrot.lane.b32.xlu1 %v7394_v13, %s5076_s29 }
 0x80c   :  { %2989 = vrot.lane.b32.xlu0 %v7400_v12, %s5076_s29 }
 0x80e   :  { %3011 = vrot.lane.b32.xlu1 %v7394_v13, %s5077_s14 }
 0x810   :  { %3013 = vrot.lane.b32.xlu0 %v7400_v12, %s5077_s14 }
 0x812   :  { %2963 = vrot.lane.b32.xlu1 %v7394_v13, %s5074_s22 }
 0x814   :  { %2965 = vrot.lane.b32.xlu0 %v7400_v12, %s5074_s22 }
 0x816   :  { %3035 = vrot.lane.b32.xlu1 %v7394_v13, %s5078_s24 }
 0x818   :  { %3037 = vrot.lane.b32.xlu0 %v7400_v12, %s5078_s24 }
 0x81a   :  { %2911 = vrot.lane.b32.xlu1 %v7398_v55, %s5072_s18 }
 0x81c   :  { %2913 = vrot.lane.b32.xlu0 %v7404_v59, %s5072_s18 }
 0x81e   :  { %2935 = vrot.lane.b32.xlu1 %v7398_v55, %s5073_s19 }
 0x820   :  { %2937 = vrot.lane.b32.xlu0 %v7404_v59, %s5073_s19 }
 0x822   :  { %2959 = vrot.lane.b32.xlu1 %v7398_v55, %s5074_s22 }
 0x824   :  { %2961 = vrot.lane.b32.xlu0 %v7404_v59, %s5074_s22  ;;  %s5085_s22 = smov 120  }
 0x826   :  { %2887 = vrot.lane.b32.xlu1 %v7398_v55, %s5075_s25 }
 0x828   :  { %2889 = vrot.lane.b32.xlu0 %v7404_v59, %s5075_s25 }
 0x82a   :  { %2983 = vrot.lane.b32.xlu1 %v7398_v55, %s5076_s29 }
 0x82c   :  { %2985 = vrot.lane.b32.xlu0 %v7404_v59, %s5076_s29 }
 0x82e   :  { %3007 = vrot.lane.b32.xlu1 %v7398_v55, %s5077_s14 }
 0x830   :  { %3009 = vrot.lane.b32.xlu0 %v7404_v59, %s5077_s14 }
 0x832   :  { %3031 = vrot.lane.b32.xlu1 %v7398_v55, %s5078_s24 }
 0x834   :  { %3033 = vrot.lane.b32.xlu0 %v7404_v59, %s5078_s24 }
 0x836   :  { %2891 = vrot.lane.b32.xlu1 %v7394_v13, %s5075_s25 }
 0x838   :  { %2893 = vrot.lane.b32.xlu0 %v7400_v12, %s5075_s25 }
 0x83c   :  { %v2908_v36 = vpop.permute.xlu1 %2907 }
 0x83e   :  { %v2910_v23 = vpop.permute.xlu0 %2909 }
 0x840   :  { %v2932_v19 = vpop.permute.xlu1 %2931 }
 0x841   :  { %v3065_v11 = vsel %vm234_vm0, %v2908_v36, %v2932_v19 }
 0x842   :  { %v2934_v58 = vpop.permute.xlu0 %2933 }
 0x843   :  { %v3066_v38 = vsel %vm234_vm0, %v2910_v23, %v2934_v58 }
 0x844   :  { %v2956_v44 = vpop.permute.xlu1 %2955 }
 0x845   :  { %v3073_v28 = vsel %vm1703_vm4, %v3065_v11, %v2956_v44 }
 0x846   :  { %v2958_v15 = vpop.permute.xlu0 %2957 }
 0x847   :  { %v3074_v53 = vsel %vm1703_vm4, %v3066_v38, %v2958_v15 }
 0x848   :  { %v2884_v46 = vpop.permute.xlu1 %2883 }
 0x849   :  { %v3049_v35 = vsel %vm1957_vm5, %v7378_v9, %v2884_v46  ;;  %v8175_v9 = vld [vmem:[#allocation12_spill] sm:$0xff] }
 0x84a   :  { %v3057_v56 = vsel %vm1966_vm6, %v3049_v35, %v2908_v36  ;;  %v2886_v5 = vpop.permute.xlu0 %2885  ;;  %v8176_v36 = vld [vmem:[#allocation9_spill] sm:$0xff] }
 0x84b   :  { %v7524_v10 = vmul.f32 %v3057_v56, %v1597_v45  ;;  %v3050_v63 = vsel %vm1957_vm5, %v7384_v14, %v2886_v5  ;;  %v1532_v14 = vadd.f32 %v8175_v9, %v7084_v18 }
 0x84c   :  { %v3058_v31 = vsel %vm1966_vm6, %v3050_v63, %v2910_v23  ;;  %v2980_v52 = vpop.permute.xlu1 %2979  ;;  %v1529_v23 = vadd.f32 %v8176_v36, %v7103_v17 }
 0x84d   :  { %v7531_v29 = vmul.f32 %v3058_v31, %v1600_v39  ;;  %v3081_v57 = vsel %vm1991_vm7, %v3073_v28, %v2980_v52  ;;  %v1602_v45 = vmul.f32 %v8147_v6, %v1532_v14  ;;  %v1416_v28 = vadd.f32 %v6916_v62, %v7076_v30 }
 0x84e   :  { %v2982_v54 = vpop.permute.xlu0 %2981  ;;  %v3110_v47 = vmul.f32 %v3081_v57, %v1598_v41  ;;  %v1599_v46 = vmul.f32 %v8147_v6, %v1529_v23 }
 0x84f   :  { %v3082_v1 = vsel %vm1991_vm7, %v3074_v53, %v2982_v54  ;;  %v3130_v8 = vpack.c.bf16 %v7531_v29, %v7524_v10  ;;  %v1591_v57 = vmul.f32 %v8145_v21, %v1416_v28  ;;  %v1422_v53 = vadd.f32 %v6924_v48, %v7097_v0  ;;  %v8180_v10 = vld [vmem:[#allocation15_spill] sm:$0xff] }
 0x850   :  { %v3113_v33 = vmul.f32 %v3082_v1, %v1601_v3  ;;  %v3004_v43 = vpop.permute.xlu1 %3003  ;;  %v1418_v3 = vadd.f32 %v6918_v37, %v7076_v30  ;;  %v1548_v29 = vadd.f32 %v8180_v10, %v7508_v20 }
 0x851   :  { %v3089_v44 = vsel %vm2000_vm8, %v2980_v52, %v3004_v43  ;;  %v1420_v52 = vadd.f32 %v6921_v32, %v7097_v0  ;;  %v1595_v14 = vmul.f32 %v8146_v27, %v1422_v53 }
 0x852   :  { %v3006_v19 = vpop.permute.xlu0 %3005  ;;  %v3131_v58 = vpack.c.bf16 %v3113_v33, %v3110_v47  ;;  %v1592_v0 = vmul.f32 %v8146_v27, %v1418_v3 }
 0x853   :  { %v3090_v16 = vsel %vm2000_vm8, %v2982_v54, %v3006_v19  ;;  %v1594_v62 = vmul.f32 %v8145_v21, %v1420_v52 }
 0x854   :  { %v3028_v22 = vpop.permute.xlu1 %3027 }
 0x855   :  { %v3097_v15 = vsel %vm2009_vm9, %v3089_v44, %v3028_v22 }
 0x856   :  { %v3030_v35 = vpop.permute.xlu0 %3029  ;;  %v3111_v18 = vmul.f32 %v3097_v15, %v1599_v46 }
 0x857   :  { %v3098_v7 = vsel %vm2009_vm9, %v3090_v16, %v3030_v35 }
 0x858   :  { %v3114_v2 = vmul.f32 %v3098_v7, %v1602_v45  ;;  %v2904_v56 = vpop.permute.xlu1 %2903 }
 0x85a   :  { %v3132_v17 = vpack.c.bf16 %v3114_v2, %v3111_v18  ;;  %v2906_v5 = vpop.permute.xlu0 %2905  ;;  %v1593_v2 = vmul.f32 %v8147_v6, %v7080_v26 }
 0x85c   :  { %v2928_v39 = vpop.permute.xlu1 %2927 }
 0x85d   :  { %v3063_v47 = vsel %vm234_vm0, %v2904_v56, %v2928_v39 }
 0x85e   :  { %v2930_v11 = vpop.permute.xlu0 %2929 }
 0x85f   :  { %v3064_v37 = vsel %vm234_vm0, %v2906_v5, %v2930_v11 }
 0x860   :  { %v2952_v63 = vpop.permute.xlu1 %2951 }
 0x861   :  { %v3071_v43 = vsel %vm1703_vm4, %v3063_v47, %v2952_v63 }
 0x862   :  { %v2954_v31 = vpop.permute.xlu0 %2953 }
 0x863   :  { %v3072_v36 = vsel %vm1703_vm4, %v3064_v37, %v2954_v31 }
 0x864   :  { %v2880_v38 = vpop.permute.xlu1 %2879 }
 0x865   :  { %v3047_v41 = vsel %vm1957_vm5, %v7382_v4, %v2880_v38 }
 0x866   :  { %v3055_v54 = vsel %vm1966_vm6, %v3047_v41, %v2904_v56  ;;  %v2882_v1 = vpop.permute.xlu0 %2881  ;;  %v8177_v56 = vld [vmem:[#allocation30_spill] sm:$0xff] }
 0x867   :  { %v3103_v32 = vmul.f32 %v3055_v54, %v1591_v57  ;;  %v3048_v33 = vsel %vm1957_vm5, %v7388_v24, %v2882_v1  ;;  %v8178_v54 = vld [vmem:[#allocation17_spill] sm:$0xff] }
 0x868   :  { %v3056_v4 = vsel %vm1966_vm6, %v3048_v33, %v2906_v5  ;;  %v2976_v9 = vpop.permute.xlu1 %2975  ;;  %v1596_v5 = vmul.f32 %v8147_v6, %v8177_v56  ;;  %v1448_v1 = vadd.f32 %v8178_v54, %v7504_v40 }
 0x869   :  { %v3106_v30 = vmul.f32 %v3056_v4, %v1594_v62  ;;  %v3079_v48 = vsel %vm1991_vm7, %v3071_v43, %v2976_v9  ;;  %v8179_v62 = vld [vmem:[#allocation23_spill] sm:$0xff] }
 0x86a   :  { %v2978_v23 = vpop.permute.xlu0 %2977  ;;  %v3104_v44 = vmul.f32 %v3079_v48, %v1592_v0  ;;  %v1452_v47 = vadd.f32 %v8179_v62, %v7508_v20 }
 0x86b   :  { %v3127_v19 = vpack.c.bf16 %v3106_v30, %v3103_v32  ;;  %v3080_v24 = vsel %vm1991_vm7, %v3072_v36, %v2978_v23  ;;  %v1610_v30 = vmul.f32 %v8146_v27, %v1448_v1 }
 0x86c   :  { %v3107_v22 = vmul.f32 %v3080_v24, %v1595_v14  ;;  %v3000_v15 = vpop.permute.xlu1 %2999  ;;  %v1613_v48 = vmul.f32 %v8146_v27, %v1452_v47 }
 0x86d   :  { %v3087_v45 = vsel %vm2000_vm8, %v2976_v9, %v3000_v15 }
 0x86e   :  { %v3002_v16 = vpop.permute.xlu0 %3001  ;;  %v3128_v46 = vpack.c.bf16 %v3107_v22, %v3104_v44 }
 0x86f   :  { %v3088_v18 = vsel %vm2000_vm8, %v2978_v23, %v3002_v16  ;;  %v1614_v16 = vmul.f32 %v8147_v6, %v1548_v29 }
 0x870   :  { %v3024_v35 = vpop.permute.xlu1 %3023  ;;  %3171 = vmatprep.mubr.bf16.mxu0 %v3128_v46 }
 0x871   :  { %v3095_v7 = vsel %vm2009_vm9, %v3087_v45, %v3024_v35  ;;  %3172 = vmatmul.mubr.bf16.vlgmr.msra.gmra.mrb[72].mxu0 %v3127_v19 }
 0x872   :  { %3179 = vmatprep.mubr.bf16.mxu0 %v3131_v58  ;;  %v3026_v39 = vpop.permute.xlu0 %3025  ;;  %v3105_v63 = vmul.f32 %v3095_v7, %v1593_v2 }
 0x873   :  { %v3096_v11 = vsel %vm2009_vm9, %v3088_v18, %v3026_v39 }
 0x874   :  { %v3108_v28 = vmul.f32 %v3096_v11, %v1596_v5  ;;  %v7582_v31 = vpop.permute.xlu1 %2915 }
 0x876   :  { %v7584_v52 = vpop.permute.xlu0 %2917  ;;  %v3129_v38 = vpack.c.bf16 %v3108_v28, %v3105_v63 }
 0x878   :  { %4539 = vmatprep.mubr.bf16.mxu1 %v3129_v38  ;;  %v2940_v57 = vpop.permute.xlu1 %2939 }
 0x879   :  { %3180 = vmatmul.mubr.bf16.gmra.mrb[76].mxu0 %v3130_v8  ;;  %4540 = vmatmul.mubr.bf16.vlgmr.msra.gmra.mrb[80].mxu1 %v3132_v17  ;;  %v3069_v32 = vsel %vm234_vm0, %v7582_v31, %v2940_v57  ;;  %v8181_v8 = vld [vmem:[#allocation14_spill] sm:$0xff]  ;;  %v8182_v57 = vld [vmem:[#allocation27_spill] sm:$0xff] }
 0x87a   :  { %v2942_v26 = vpop.permute.xlu0 %2941  ;;  %v1545_v17 = vadd.f32 %v8181_v8, %v7504_v40  ;;  %v8184_v8 = vld [vmem:[#allocation5_spill] sm:$0xff] }
 0x87b   :  { %v3070_v4 = vsel %vm234_vm0, %v7584_v52, %v2942_v26  ;;  %v1603_v26 = vmul.f32 %v8145_v21, %v8182_v57 }
 0x87c   :  { %v2988_v58 = vpop.permute.xlu1 %2987  ;;  %v1611_v15 = vmul.f32 %v8147_v6, %v1545_v17  ;;  %v1604_v17 = vmul.f32 %v8146_v27, %v8184_v8 }
 0x87e   :  { %v2990_v41 = vpop.permute.xlu0 %2989 }
 0x880   :  { %v3012_v3 = vpop.permute.xlu1 %3011 }
 0x881   :  { %v3093_v14 = vsel %vm2000_vm8, %v2988_v58, %v3012_v3 }
 0x882   :  { %v3014_v53 = vpop.permute.xlu0 %3013 }
 0x883   :  { %v3094_v22 = vsel %vm2000_vm8, %v2990_v41, %v3014_v53  ;;  %v8183_v53 = vld [vmem:[#allocation25_spill] sm:$0xff] }
 0x884   :  { %v2964_v33 = vpop.permute.xlu1 %2963  ;;  %v1606_v54 = vmul.f32 %v8145_v21, %v8183_v53 }
 0x885   :  { %v3077_v43 = vsel %vm1703_vm4, %v3069_v32, %v2964_v33 }
 0x886   :  { %v3085_v9 = vsel %vm1991_vm7, %v3077_v43, %v2988_v58  ;;  %v2966_v37 = vpop.permute.xlu0 %2965 }
 0x887   :  { %v3078_v0 = vsel %vm1703_vm4, %v3070_v4, %v2966_v37  ;;  %v3122_v19 = vmul.f32 %v3085_v9, %v1610_v30  ;;  %v8185_v4 = vld [vmem:[#allocation31_spill] sm:$0xff] }
 0x888   :  { %v3086_v36 = vsel %vm1991_vm7, %v3078_v0, %v2990_v41  ;;  %v3036_v23 = vpop.permute.xlu1 %3035  ;;  %v1607_v9 = vmul.f32 %v8146_v27, %v8185_v4 }
 0x889   :  { %v3125_v24 = vmul.f32 %v3086_v36, %v1613_v48  ;;  %v3101_v44 = vsel %vm2009_vm9, %v3093_v14, %v3036_v23 }
 0x88a   :  { %v3038_v46 = vpop.permute.xlu0 %3037  ;;  %v3123_v7 = vmul.f32 %v3101_v44, %v1611_v15 }
 0x88b   :  { %v3102_v45 = vsel %vm2009_vm9, %v3094_v22, %v3038_v46  ;;  %v3137_v35 = vpack.c.bf16 %v3125_v24, %v3122_v19  ;;  %v8186_v22 = vld [vmem:[#allocation18_spill] sm:$0xff] }
 0x88c   :  { %v3126_v18 = vmul.f32 %v3102_v45, %v1614_v16  ;;  %v2912_v2 = vpop.permute.xlu1 %2911  ;;  %v1446_v15 = vadd.f32 %v8186_v22, %v7504_v40  ;;  %v8187_v46 = vld [vmem:[#allocation26_spill] sm:$0xff] }
 0x88d   :  { %v1605_v45 = vmul.f32 %v8147_v6, %v8187_v46 }
 0x88e   :  { %v2914_v56 = vpop.permute.xlu0 %2913  ;;  %v3138_v5 = vpack.c.bf16 %v3126_v18, %v3123_v7  ;;  %v8188_v7 = vld [vmem:[#allocation24_spill] sm:$0xff] }
 0x88f   :  { %v1608_v18 = vmul.f32 %v8147_v6, %v8188_v7 }
 0x890   :  { %v2936_v39 = vpop.permute.xlu1 %2935 }
 0x891   :  { %v3067_v1 = vsel %vm234_vm0, %v2912_v2, %v2936_v39 }
 0x892   :  { %v2938_v11 = vpop.permute.xlu0 %2937 }
 0x893   :  { %v3068_v10 = vsel %vm234_vm0, %v2914_v56, %v2938_v11 }
 0x894   :  { %v2960_v63 = vpop.permute.xlu1 %2959 }
 0x895   :  { %v3075_v32 = vsel %vm1703_vm4, %v3067_v1, %v2960_v63  ;;  %v7686_v1 = vld [vmem:[%s7916_s3 + $0x18] sm:$0xff] }
 0x896   :  { %v2962_v28 = vpop.permute.xlu0 %2961 }
 0x897   :  { %v3076_v37 = vsel %vm1703_vm4, %v3068_v10, %v2962_v28 }
 0x898   :  { %v2888_v38 = vpop.permute.xlu1 %2887 }
 0x899   :  { %v3051_v58 = vsel %vm1957_vm5, %v7398_v55, %v2888_v38  ;;  %v1609_v38 = vmul.f32 %v8145_v21, %v1446_v15 }
 0x89a   :  { %v3059_v41 = vsel %vm1966_vm6, %v3051_v58, %v2912_v2  ;;  %v2890_v3 = vpop.permute.xlu0 %2889 }
 0x89b   :  { %v3115_v62 = vmul.f32 %v3059_v41, %v1603_v26  ;;  %v3052_v47 = vsel %vm1957_vm5, %v7404_v59, %v2890_v3 }
 0x89c   :  { %v3060_v33 = vsel %vm1966_vm6, %v3052_v47, %v2914_v56  ;;  %v2984_v43 = vpop.permute.xlu1 %2983  ;;  %v8189_v56 = vld [vmem:[#allocation22_spill] sm:$0xff]  ;;  %v7698_v47 = vld [vmem:[%s7916_s3 + $0x28] sm:$0xff] }
 0x89d   :  { %v3118_v55 = vmul.f32 %v3060_v33, %v1606_v54  ;;  %v3083_v29 = vsel %vm1991_vm7, %v3075_v32, %v2984_v43  ;;  %v1450_v39 = vadd.f32 %v8189_v56, %v7508_v20  ;;  %v7704_v32 = vld [vmem:[%s7916_s3 + $0x38] sm:$0xff] }
 0x89e   :  { %v2986_v30 = vpop.permute.xlu0 %2985  ;;  %v3116_v0 = vmul.f32 %v3083_v29, %v1604_v17 }
 0x89f   :  { %v3084_v59 = vsel %vm1991_vm7, %v3076_v37, %v2986_v30  ;;  %v3133_v48 = vpack.c.bf16 %v3118_v55, %v3115_v62  ;;  %v1612_v6 = vmul.f32 %v8145_v21, %v1450_v39  ;;  %v7662_v21 = vld [vmem:[%s7916_s3] sm:$0xff]  ;;  %v7692_v62 = vld [vmem:[%s7916_s3 + $0x30] sm:$0xff] }
 0x8a0   :  { %v3119_v14 = vmul.f32 %v3084_v59, %v1607_v9  ;;  %v3008_v36 = vpop.permute.xlu1 %3007 }
 0x8a1   :  { %v3091_v24 = vsel %vm2000_vm8, %v2984_v43, %v3008_v36 }
 0x8a2   :  { %v3010_v23 = vpop.permute.xlu0 %3009  ;;  %v3134_v19 = vpack.c.bf16 %v3119_v14, %v3116_v0 }
 0x8a3   :  { %v3092_v16 = vsel %vm2000_vm8, %v2986_v30, %v3010_v23 }
 0x8a4   :  { %v3032_v44 = vpop.permute.xlu1 %3031  ;;  %3187 = vmatprep.mubr.bf16.mxu0 %v3134_v19 }
 0x8a5   :  { %v3099_v27 = vsel %vm2009_vm9, %v3091_v24, %v3032_v44  ;;  %3188 = vmatmul.mubr.bf16.gmra.mrb[80].mxu0 %v3133_v48 }
 0x8a6   :  { %3195 = vmatprep.mubr.bf16.mxu0 %v3137_v35  ;;  %v3034_v2 = vpop.permute.xlu0 %3033  ;;  %v3117_v63 = vmul.f32 %v3099_v27, %v1605_v45 }
 0x8a7   :  { %v3100_v11 = vsel %vm2009_vm9, %v3092_v16, %v3034_v2 }
 0x8a8   :  { %v3120_v40 = vmul.f32 %v3100_v11, %v1608_v18  ;;  %v2892_v28 = vpop.permute.xlu1 %2891 }
 0x8a9   :  { %v3053_v57 = vsel %vm1957_vm5, %v7394_v13, %v2892_v28  ;;  %v4708_v13 = vld [vmem:[%s7918_s2 + $0x100] sm:$0xff]  }
 0x8aa   :  { %v3061_v35 = vsel %vm1966_vm6, %v3053_v57, %v7582_v31  ;;  %v2894_v26 = vpop.permute.xlu0 %2893  ;;  %v3135_v58 = vpack.c.bf16 %v3120_v40, %v3117_v63  ;;  %v5080_v31 = vmov 4  }
 0x8ab   :  { %v3121_v41 = vmul.f32 %v3061_v35, %v1609_v38  ;;  %v3054_v20 = vsel %vm1957_vm5, %v7400_v12, %v2894_v26  ;;  %4646 = vset.pattern.permute.xlu1 %v5080_v31  ;;  %4647 = vset.pattern.permute.xlu0 %v5080_v31  ;;  %v7668_v12 = vld [vmem:[%s7916_s3 + $0x8] sm:$0xff]  ;;  %v4712_v31 = vld [vmem:[%s7918_s2 + $0x120] sm:$0xff]  }
 0x8ac   :  { %v3062_v3 = vsel %vm1966_vm6, %v3054_v20, %v7584_v52  ;;  %4543 = vmatprep.mubr.bf16.mxu1 %v3135_v58  ;;  %3282 = vperm.xlu1 %4646, %v7662_v21   ;;  %v7674_v52 = vld [vmem:[%s7916_s3 + $0x10] sm:$0xff] }
 0x8ad   :  { %v3124_v53 = vmul.f32 %v3062_v3, %v1612_v6  ;;  %4544 = vmatmul.mubr.bf16.gmra.mrb[84].mxu1 %v3138_v5  ;;  %3286 = vperm.xlu0 %4647, %v7668_v12   ;;  %v7680_v5 = vld [vmem:[%s7916_s3 + $0x20] sm:$0xff] }
 0x8ae   :  { %4555 = vmatprep.mubr.msk.bf16.mxu1 %vm1703_vm4, %v4708_v13  ;;  %v4711_v13 = vld [vmem:[%s7918_s2 + $0x118] sm:$0xff]  }
 0x8af   :  { %v3136_v54 = vpack.c.bf16 %v3124_v53, %v3121_v41  ;;  %v4709_v53 = vld [vmem:[%s7918_s2 + $0x108] sm:$0xff]  }
 0x8b0   :  { %3290 = vperm.xlu1 %4646, %v7674_v52  }
 0x8b1   :  { %3196 = vmatmul.mubr.bf16.gmra.mrb[84].mxu0 %v3136_v54  ;;  %3298 = vperm.xlu0 %4647, %v7680_v5   ;;  %v4710_v54 = vld [vmem:[%s7918_s2 + $0x110] sm:$0xff]  }
 0x8b2   :  { %4571 = vmatprep.mubr.msk.bf16.mxu0 %vm1703_vm4, %v4712_v31 }
 0x8b4   :  { %3294 = vperm.xlu1 %4646, %v7686_v1  }
 0x8b5   :  { %3306 = vperm.xlu0 %4647, %v7692_v62  }
 0x8b8   :  { %3302 = vperm.xlu1 %4646, %v7698_v47  }
 0x8bc   :  { %3310 = vperm.xlu1 %4646, %v7704_v32  }
 0x944   :  { %v4317_v33 = vpop.f32.mrb[72].mxu0 }
 0x945   :  { %v4318_v43 = vpop.f32.mrb[73].mxu0 }
 0x946   :  { %v4319_v10 = vadd.f32 %v4318_v43, %v4317_v33  ;;  %v4320_v55 = vpop.f32.mrb[74].mxu0  ;;  %v5081_v33 = vmov 5   ;;  %v3283_v43 = vpop.permute.xlu1 %3282 }
 0x947   :  { %v4321_v29 = vpop.f32.mrb[75].mxu0  ;;  %4649 = vset.pattern.permute.xlu1 %v5081_v33  ;;  %4648 = vset.pattern.permute.xlu0 %v5081_v33 }
 0x948   :  { %v4322_v8 = vadd.f32 %v4321_v29, %v4320_v55  ;;  %3555 = vperm.xlu1 %4649, %v7668_v12   ;;  %3551 = vperm.xlu0 %4648, %v7662_v21   ;;  %v3287_v55 = vpop.permute.xlu0 %3286 }
 0x94c   :  { %v4323_v17 = vpop.f32.mrb[76].mxu0  ;;  %v4541_v4 = vpop.f32.mrb[80].mxu1  ;;  %3559 = vperm.xlu1 %4649, %v7674_v52   ;;  %3563 = vperm.xlu0 %4648, %v7686_v1  }
 0x94d   :  { %v4324_v9 = vpop.f32.mrb[77].mxu0  ;;  %v3238_v37 = vpop.f32.mrb[81].mxu1 }
 0x94e   :  { %v4325_v30 = vadd.f32 %v4324_v9, %v4323_v17  ;;  %v3239_v59 = vadd.f32 %v4319_v10, %v3238_v37  ;;  %v4326_v48 = vpop.f32.mrb[78].mxu0  ;;  %v4542_v0 = vpop.f32.mrb[82].mxu1 }
 0x94f   :  { %v4327_v14 = vpop.f32.mrb[79].mxu0  ;;  %v3241_v36 = vpop.f32.mrb[83].mxu1 }
 0x950   :  { %v3247_v23 = vadd.f32 %v4541_v4, %v4325_v30  ;;  %v4328_v19 = vadd.f32 %v4327_v14, %v4326_v48  ;;  %v3242_v24 = vadd.f32 %v4322_v8, %v3241_v36  ;;  %3567 = vperm.xlu1 %4649, %v7680_v5   ;;  %3571 = vperm.xlu0 %4648, %v7698_v47   ;;  %v3291_v10 = vpop.permute.xlu1 %3290  ;;  %v3299_v1 = vpop.permute.xlu0 %3298 }
 0x952   :  { %v3250_v44 = vadd.f32 %v4542_v0, %v4328_v19  ;;  %v3277_v22 = vpack.c.bf16 %v3242_v24, %v3239_v59 }
 0x954   :  { %4547 = vmatprep.subr.bf16.mxu1 %v3277_v22  ;;  %v3278_v15 = vpack.c.bf16 %v3250_v44, %v3247_v23  ;;  %3575 = vperm.xlu1 %4649, %v7692_v62   ;;  %v3295_v29 = vpop.permute.xlu1 %3294  ;;  %v3307_v19 = vpop.permute.xlu0 %3306 }
 0x955   :  { %4548 = vmatpush3.bf16.msra.mxu1 %v3277_v22  ;;  %3579 = vperm.xlu0 %4648, %v7704_v32  }
 0x956   :  { %4549 = vmatprep.subr.bf16.mxu1 %v3278_v15 }
 0x958   :  { %v3303_v9 = vpop.permute.xlu1 %3302 }
 0x959   :  { %4550 = vmatpush3.bf16.msra.mxu1 %v3278_v15 }
 0x978   :  { %v4329_v27 = vpop.f32.mrb[80].mxu0 }
 0x979   :  { %v4330_v16 = vpop.f32.mrb[81].mxu0 }
 0x97a   :  { %v4331_v46 = vadd.f32 %v4330_v16, %v4329_v27  ;;  %v4332_v45 = vpop.f32.mrb[82].mxu0 }
 0x97b   :  { %v4333_v7 = vpop.f32.mrb[83].mxu0 }
 0x97c   :  { %v4334_v18 = vadd.f32 %v4333_v7, %v4332_v45 }
 0x980   :  { %v4545_v2 = vpop.f32.mrb[84].mxu1 }
 0x981   :  { %v3254_v56 = vpop.f32.mrb[85].mxu1 }
 0x982   :  { %v3255_v39 = vadd.f32 %v4331_v46, %v3254_v56  ;;  %v4546_v11 = vpop.f32.mrb[86].mxu1  ;;  %v3311_v46 = vpop.permute.xlu1 %3310 }
 0x983   :  { %v3257_v63 = vpop.f32.mrb[87].mxu1 }
 0x984   :  { %v3258_v40 = vadd.f32 %v4334_v18, %v3257_v63  ;;  %v4335_v28 = vpop.f32.mrb[84].mxu0 }
 0x985   :  { %v4336_v38 = vpop.f32.mrb[85].mxu0 }
 0x986   :  { %v3279_v57 = vpack.c.bf16 %v3258_v40, %v3255_v39  ;;  %v4337_v35 = vadd.f32 %v4336_v38, %v4335_v28  ;;  %v4338_v26 = vpop.f32.mrb[86].mxu0 }
 0x987   :  { %v4339_v58 = vpop.f32.mrb[87].mxu0 }
 0x988   :  { %v3263_v6 = vadd.f32 %v4545_v2, %v4337_v35  ;;  %v4340_v41 = vadd.f32 %v4339_v58, %v4338_v26  ;;  %4551 = vmatprep.subr.bf16.mxu1 %v3279_v57 }
 0x989   :  { %4552 = vmatpush3.bf16.msra.mxu1 %v3279_v57 }
 0x98a   :  { %v3266_v20 = vadd.f32 %v4546_v11, %v4340_v41 }
 0x98c   :  { %v3280_v3 = vpack.c.bf16 %v3266_v20, %v3263_v6 }
 0x98e   :  { %4553 = vmatprep.subr.bf16.mxu1 %v3280_v3 }
 0x98f   :  { %4554 = vmatpush3.bf16.msra.mxu1 %v3280_v3 }
 0x992   :  { %4556 = vmatmul.mubr.msk.bf16.vlgmr.msra.gmra.mrb[88].mxu1 %vm1703_vm4, %v4709_v53 }
 0x993   :  { %4559 = vmatprep.mubr.msk.bf16.mxu1 %vm1703_vm4, %v4710_v54 }
 0x99a   :  { %4560 = vmatmul.mubr.msk.bf16.gmra.mrb[92].mxu1 %vm1703_vm4, %v4711_v13 }
 0xa65   :  { %v4557_v8 = vpop.f32.mrb[88].mxu1 }
 0xa66   :  { %v7731_v12 = vadd.f32 %v4557_v8, %v3291_v10  ;;  %v3379_v21 = vpop.f32.mrb[89].mxu1 }
 0xa67   :  { %v7733_v17 = vadd.f32 %v3379_v21, %v3283_v43  ;;  %v4558_v52 = vpop.f32.mrb[90].mxu1 }
 0xa68   :  { %v3420_v5 = vand.u32 2147483647, %v7731_v12  ;;  %v7736_v4 = vadd.f32 %v4558_v52, %v3295_v29  ;;  %v3382_v47 = vpop.f32.mrb[91].mxu1 }
 0xa69   :  { %v3418_v62 = vand.u32 2147483647, %v7733_v17  ;;  %v7739_v32 = vadd.f32 %v3382_v47, %v3287_v55  ;;  %v3412_v55 = vmax.f32 %v7731_v12, 0.0 }
 0xa6a   :  { %v3428_v37 = vsub.f32 0.0, %v3420_v5  ;;  %v3421_v30 = vand.u32 2147483647, %v7736_v4  ;;  %v3413_v47 = vmax.f32 %v7736_v4, 0.0 }
 0xa6b   :  { %v3426_v59 = vsub.f32 0.0, %v3418_v62  ;;  %v3419_v48 = vand.u32 2147483647, %v7739_v32 }
 0xa6c   :  { %v3438_v0 = vmul.f32 1.442695, %v3428_v37  ;;  %v3429_v14 = vsub.f32 0.0, %v3421_v30 }
 0xa6d   :  { %v3434_v36 = vmul.f32 1.442695, %v3426_v59  ;;  %v3427_v23 = vsub.f32 0.0, %v3419_v48  ;;  %v4561_v24 = vpop.f32.mrb[92].mxu1 }
 0xa6e   :  { %4961 = vpow2.f32 %v3438_v0  ;;  %v3440_v44 = vmul.f32 1.442695, %v3429_v14  ;;  %v7743_v22 = vadd.f32 %v4561_v24, %v3307_v19  ;;  %v3395_v15 = vpop.f32.mrb[93].mxu1 }
 0xa6f   :  { %4963 = vpow2.f32 %v3434_v36  ;;  %v3436_v27 = vmul.f32 1.442695, %v3427_v23  ;;  %v7745_v16 = vadd.f32 %v3395_v15, %v3299_v1  ;;  %v4562_v45 = vpop.f32.mrb[94].mxu1  ;;  %v3410_v1 = vmax.f32 %v7733_v17, 0.0 }
 0xa70   :  { %4965 = vpow2.f32 %v3440_v44  ;;  %v3424_v7 = vand.u32 2147483647, %v7743_v22  ;;  %v7748_v18 = vadd.f32 %v4562_v45, %v3311_v46  ;;  %v3398_v2 = vpop.f32.mrb[95].mxu1  ;;  %v3416_v30 = vmax.f32 %v7743_v22, 0.0 }
 0xa71   :  { %4967 = vpow2.f32 %v3436_v27  ;;  %v3422_v56 = vand.u32 2147483647, %v7745_v16  ;;  %v7751_v39 = vadd.f32 %v3398_v2, %v3303_v9  ;;  %v3411_v9 = vmax.f32 %v7739_v32, 0.0 }
 0xa72   :  { %v3432_v11 = vsub.f32 0.0, %v3424_v7  ;;  %v3425_v63 = vand.u32 2147483647, %v7748_v18  ;;  %v3414_v0 = vmax.f32 %v7745_v16, 0.0  ;;  %v3417_v17 = vmax.f32 %v7748_v18, 0.0  ;;  %v4713_v16 = vld [vmem:[%s7918_s2 + $0x128] sm:$0xff]  }
 0xa73   :  { %v3430_v40 = vsub.f32 0.0, %v3422_v56  ;;  %v3423_v28 = vand.u32 2147483647, %v7751_v39  ;;  %v4714_v18 = vld [vmem:[%s7918_s2 + $0x130] sm:$0xff]  }
 0xa74   :  { %v3446_v38 = vmul.f32 1.442695, %v3432_v11  ;;  %v3433_v57 = vsub.f32 0.0, %v3425_v63 }
 0xa75   :  { %v3442_v35 = vmul.f32 1.442695, %v3430_v40  ;;  %v3431_v26 = vsub.f32 0.0, %v3423_v28 }
 0xa76   :  { %4969 = vpow2.f32 %v3446_v38  ;;  %v3448_v58 = vmul.f32 1.442695, %v3433_v57 }
 0xa77   :  { %4971 = vpow2.f32 %v3442_v35  ;;  %v3444_v6 = vmul.f32 1.442695, %v3431_v26 }
 0xa78   :  { %v4962_v41 = vpop.eup %4961  ;;  %4973 = vpow2.f32 %v3448_v58 }
 0xa79   :  { %v4964_v20 = vpop.eup %4963  ;;  %v3468_v3 = vadd.f32 1.0, %v4962_v41  ;;  %4975 = vpow2.f32 %v3444_v6  ;;  %v3471_v33 = vmul.f32 -0.5, %v4962_v41  ;;  %v3474_v29 = vand.u32 2147483647, %v4962_v41 }
 0xa7a   :  { %v4966_v53 = vpop.eup %4965  ;;  %v3450_v54 = vadd.f32 1.0, %v4964_v20  ;;  %v3453_v10 = vmul.f32 -0.5, %v4964_v20  ;;  %v3456_v5 = vand.u32 2147483647, %v4964_v20 }
 0xa7b   :  { %v7755_v13 = vpop.eup %4967  ;;  %4977 = vlog2.f32 %v3468_v3  ;;  %v3477_v31 = vadd.f32 1.0, %v4966_v53  ;;  %v3480_v8 = vmul.f32 -0.5, %v4966_v53  ;;  %v3472_v52 = vadd.f32 1.0, %v3471_v33 }
 0xa7c   :  { %4979 = vlog2.f32 %v3450_v54  ;;  %v3459_v43 = vadd.f32 1.0, %v7755_v13  ;;  %v3462_v37 = vmul.f32 -0.5, %v7755_v13  ;;  %v3454_v48 = vadd.f32 1.0, %v3453_v10 }
 0xa7d   :  { %4981 = vlog2.f32 %v3477_v31  ;;  %vm7773_vm3 = vcmp.lt.f32.partialorder %v3474_v29, 0.0004427343  ;;  %v3481_v32 = vadd.f32 1.0, %v3480_v8  ;;  %v3473_v19 = vmul.f32 %v4962_v41, %v3472_v52 }
 0xa7e   :  { %4983 = vlog2.f32 %v3459_v43  ;;  %vm7778_vm6 = vcmp.lt.f32.partialorder %v3456_v5, 0.0004427343  ;;  %v3483_v27 = vand.u32 2147483647, %v4966_v53  ;;  %v3463_v46 = vadd.f32 1.0, %v3462_v37 }
 0xa7f   :  { %v3455_v56 = vmul.f32 %v4964_v20, %v3454_v48  ;;  %v3465_v11 = vand.u32 2147483647, %v7755_v13  ;;  %v3482_v38 = vmul.f32 %v4966_v53, %v3481_v32 }
 0xa80   :  { %v4970_v21 = vpop.eup %4969  ;;  %vm3484_vm7 = vcmp.lt.f32.partialorder %v3483_v27, 0.0004427343  ;;  %v3464_v54 = vmul.f32 %v7755_v13, %v3463_v46 }
 0xa81   :  { %v7761_v62 = vpop.eup %4971  ;;  %v3504_v59 = vadd.f32 1.0, %v4970_v21  ;;  %v3507_v44 = vmul.f32 -0.5, %v4970_v21  ;;  %v3510_v57 = vand.u32 2147483647, %v4970_v21  ;;  %vm3466_vm8 = vcmp.lt.f32.partialorder %v3465_v11, 0.0004427343 }
 0xa82   :  { %v7766_v12 = vpop.eup %4973  ;;  %v3486_v14 = vadd.f32 1.0, %v7761_v62  ;;  %v3489_v63 = vmul.f32 -0.5, %v7761_v62  ;;  %v3492_v8 = vand.u32 2147483647, %v7761_v62 }
 0xa83   :  { %v7771_v36 = vpop.eup %4975  ;;  %4985 = vlog2.f32 %v3504_v59  ;;  %v3513_v23 = vadd.f32 1.0, %v7766_v12  ;;  %v3508_v58 = vadd.f32 1.0, %v3507_v44  ;;  %v3516_v6 = vmul.f32 -0.5, %v7766_v12 }
 0xa84   :  { %4987 = vlog2.f32 %v3486_v14  ;;  %v3495_v45 = vadd.f32 1.0, %v7771_v36  ;;  %v3490_v53 = vadd.f32 1.0, %v3489_v63  ;;  %v3498_v43 = vmul.f32 -0.5, %v7771_v36 }
 0xa85   :  { %v4978_v15 = vpop.eup %4977  ;;  %4989 = vlog2.f32 %v3513_v23  ;;  %v3509_v5 = vmul.f32 %v4970_v21, %v3508_v58  ;;  %vm7793_vm9 = vcmp.lt.f32.partialorder %v3510_v57, 0.0004427343  ;;  %v3517_v37 = vadd.f32 1.0, %v3516_v6 }
 0xa86   :  { %v4980_v7 = vpop.eup %4979  ;;  %v3470_v2 = vmul.f32 0.6931472, %v4978_v15  ;;  %4991 = vlog2.f32 %v3495_v45  ;;  %v3519_v4 = vand.u32 2147483647, %v7766_v12  ;;  %vm3493_vm10 = vcmp.lt.f32.partialorder %v3492_v8, 0.0004427343 }
 0xa87   :  { %v4982_v40 = vpop.eup %4981  ;;  %v3452_v28 = vmul.f32 0.6931472, %v4980_v7  ;;  %v3415_v57 = vmax.f32 %v7751_v39, 0.0  ;;  %v4715_v39 = vld [vmem:[%s7918_s2 + $0x138] sm:$0xff]  }
 0xa88   :  { %v3476_v35 = vsel %vm7773_vm3, %v3473_v19, %v3470_v2  ;;  %v3479_v26 = vmul.f32 0.6931472, %v4982_v40  ;;  %v4984_v41 = vpop.eup %4983  ;;  %v3501_v19 = vand.u32 2147483647, %v7771_v36  ;;  %vm3520_vm11 = vcmp.lt.f32.partialorder %v3519_v4, 0.0004427343 }
 0xa89   :  { %v3524_v3 = vadd.f32 %v3476_v35, %v3412_v55  ;;  %v3458_v20 = vsel %vm7778_vm6, %v3455_v56, %v3452_v28  ;;  %v3461_v33 = vmul.f32 0.6931472, %v4984_v41  ;;  %v5082_v41 = vmov 6  }
 0xa8a   :  { %v3485_v31 = vsel %vm3484_vm7, %v3482_v38, %v3479_v26  ;;  %v3522_v10 = vadd.f32 %v3458_v20, %v3410_v1  ;;  %v3491_v1 = vmul.f32 %v7761_v62, %v3490_v53  ;;  %vm3502_vm12 = vcmp.lt.f32.partialorder %v3501_v19, 0.0004427343  ;;  %4650 = vset.pattern.permute.xlu1 %v5082_v41  ;;  %4651 = vset.pattern.permute.xlu0 %v5082_v41  ;;  %v3697_v20 = vld [vmem:[%s7916_s3 + $0x10] sm:$0xff] }
 0xa8b   :  { %v3525_v29 = vadd.f32 %v3485_v31, %v3413_v47  ;;  %v3467_v52 = vsel %vm3466_vm8, %v3464_v54, %v3461_v33  ;;  %v4160_v48 = vadd.f32 -0.6931472, %v3524_v3  ;;  %v3499_v47 = vadd.f32 1.0, %v3498_v43  ;;  %v3696_v3 = vld [vmem:[%s7916_s3 + $0x8] sm:$0xff]  ;;  %v3698_v54 = vld [vmem:[%s7916_s3 + $0x18] sm:$0xff]  ;;  %v3556_v31 = vpop.permute.xlu1 %3555  ;;  %v3552_v33 = vpop.permute.xlu0 %3551 }
 0xa8c   :  { %v3523_v14 = vadd.f32 %v3467_v52, %v3411_v9  ;;  %v4158_v21 = vadd.f32 -0.6931472, %v3522_v10  ;;  %v3518_v9 = vmul.f32 %v7766_v12, %v3517_v37  ;;  %3706 = vperm.xlu0 %4651, %v3696_v3  }
 0xa8d   :  { %v4986_v59 = vpop.eup %4985  ;;  %v4161_v13 = vadd.f32 -0.6931472, %v3525_v29  ;;  %v3500_v40 = vmul.f32 %v7771_v36, %v3499_v47 }
 0xa8e   :  { %v4988_v32 = vpop.eup %4987  ;;  %v3506_v23 = vmul.f32 0.6931472, %v4986_v59  ;;  %v4159_v44 = vadd.f32 -0.6931472, %v3523_v14 }
 0xa8f   :  { %v4990_v24 = vpop.eup %4989  ;;  %v3488_v15 = vmul.f32 0.6931472, %v4988_v32  ;;  %v3547_v27 = vpack.c.bf16 %v4161_v13, %v4160_v48  ;;  %v3560_v53 = vpop.permute.xlu1 %3559 }
 0xa90   :  { %v3512_v46 = vsel %vm7793_vm9, %v3509_v5, %v3506_v23  ;;  %v3515_v45 = vmul.f32 0.6931472, %v4990_v24  ;;  %v4992_v7 = vpop.eup %4991  ;;  %v3546_v56 = vpack.c.bf16 %v4159_v44, %v4158_v21  ;;  %v3564_v43 = vpop.permute.xlu0 %3563 }
 0xa91   :  { %v3528_v2 = vadd.f32 %v3512_v46, %v3416_v30  ;;  %v3494_v62 = vsel %vm3493_vm10, %v3491_v1, %v3488_v15  ;;  %v3497_v63 = vmul.f32 0.6931472, %v4992_v7 }
 0xa92   :  { %v3521_v11 = vsel %vm3520_vm11, %v3518_v9, %v3515_v45  ;;  %v3526_v28 = vadd.f32 %v3494_v62, %v3414_v0  ;;  %4563 = vmatprep.subr.bf16.mxu0 %v3546_v56  ;;  %v4716_v0 = vld [vmem:[%s7918_s2 + $0x140] sm:$0xff]  }
 0xa93   :  { %v3529_v38 = vadd.f32 %v3521_v11, %v3417_v17  ;;  %v3503_v12 = vsel %vm3502_vm12, %v3500_v40, %v3497_v63  ;;  %4564 = vmatpush3.bf16.msra.mxu0 %v3546_v56  ;;  %v4164_v22 = vadd.f32 -0.6931472, %v3528_v2  ;;  %4587 = vmatprep.mubr.msk.bf16.mxu1 %vm1703_vm4, %v4716_v0  ;;  %v3695_v17 = vld [vmem:[%s7916_s3] sm:$0xff]  ;;  %v3568_v55 = vpop.permute.xlu1 %3567  ;;  %v4717_v56 = vld [vmem:[%s7918_s2 + $0x148] sm:$0xff]  }
 0xa94   :  { %v3527_v35 = vadd.f32 %v3503_v12, %v3415_v57  ;;  %4565 = vmatprep.subr.bf16.mxu0 %v3547_v27  ;;  %v4162_v26 = vadd.f32 -0.6931472, %v3526_v28  ;;  %3701 = vperm.xlu1 %4650, %v3695_v17   ;;  %v3572_v13 = vpop.permute.xlu0 %3571  ;;  %v4721_v11 = vld [vmem:[%s7918_s2 + $0x220] sm:$0xff]   ;;  %v4723_v40 = vld [vmem:[%s7918_s2 + $0x228] sm:$0xff]  }
 0xa95   :  { %v4165_v30 = vadd.f32 -0.6931472, %v3529_v38  ;;  %v4722_v63 = vld [vmem:[%s7918_s2 + $0x240] sm:$0xff]  }
 0xa96   :  { %v4163_v58 = vadd.f32 -0.6931472, %v3527_v35 }
 0xa97   :  { %v3549_v6 = vpack.c.bf16 %v4165_v30, %v4164_v22  ;;  %4566 = vmatpush3.bf16.msra.mxu0 %v3547_v27  ;;  %v3576_v47 = vpop.permute.xlu1 %3575 }
 0xa98   :  { %v3548_v36 = vpack.c.bf16 %v4163_v58, %v4162_v26  ;;  %3711 = vperm.xlu1 %4650, %v3697_v20   ;;  %v3580_v27 = vpop.permute.xlu0 %3579 }
 0xa9a   :  { %4567 = vmatprep.subr.bf16.mxu0 %v3548_v36 }
 0xa9b   :  { %4568 = vmatpush3.bf16.msra.mxu0 %v3548_v36 }
 0xa9c   :  { %4569 = vmatprep.subr.bf16.mxu0 %v3549_v6  ;;  %3716 = vperm.xlu1 %4650, %v3698_v54  }
 0xa9f   :  { %4570 = vmatpush3.bf16.msra.mxu0 %v3549_v6 }
 0xaa2   :  { %4572 = vmatmul.mubr.msk.bf16.vlgmr.msra.gmra.mrb[88].mxu0 %vm1703_vm4, %v4713_v16 }
 0xaa3   :  { %4575 = vmatprep.mubr.msk.bf16.mxu0 %vm1703_vm4, %v4714_v18 }
 0xaaa   :  { %4576 = vmatmul.mubr.msk.bf16.gmra.mrb[92].mxu0 %vm1703_vm4, %v4715_v39 }
 0xb0b   :  { %v3707_v35 = vpop.permute.xlu0 %3706 }
 0xb13   :  { %v3702_v28 = vpop.permute.xlu1 %3701 }
 0xb17   :  { %v3712_v38 = vpop.permute.xlu1 %3711 }
 0xb1b   :  { %v3717_v12 = vpop.permute.xlu1 %3716 }
 0xb75   :  { %v4573_v10 = vpop.f32.mrb[88].mxu0 }
 0xb76   :  { %v3657_v29 = vadd.f32 %v4573_v10, %v3560_v53  ;;  %v3648_v8 = vpop.f32.mrb[89].mxu0 }
 0xb77   :  { %v3649_v52 = vadd.f32 %v3648_v8, %v3552_v33  ;;  %v4574_v5 = vpop.f32.mrb[90].mxu0 }
 0xb78   :  { %v3660_v37 = vadd.f32 %v4574_v5, %v3564_v43  ;;  %v3651_v59 = vpop.f32.mrb[91].mxu0  ;;  %v3681_v14 = vadd.f32 %v3657_v29, %v7308_v60 }
 0xb79   :  { %v3652_v48 = vadd.f32 %v3651_v59, %v3556_v31  ;;  %v3679_v32 = vadd.f32 %v3649_v52, %v7293_v25 }
 0xb7a   :  { %v3682_v4 = vadd.f32 %v3660_v37, %v7298_v49 }
 0xb7b   :  { %v3680_v23 = vadd.f32 %v3652_v48, %v7303_v42 }
 0xb7c   :  { %v3692_v1 = vpack.c.bf16 %v3682_v4, %v3681_v14 }
 0xb7d   :  { %v4577_v19 = vpop.f32.mrb[92].mxu0  ;;  %v3691_v24 = vpack.c.bf16 %v3680_v23, %v3679_v32 }
 0xb7e   :  { %v3673_v21 = vadd.f32 %v4577_v19, %v3576_v47  ;;  %v3664_v44 = vpop.f32.mrb[93].mxu0 }
 0xb7f   :  { %v3665_v15 = vadd.f32 %v3664_v44, %v3568_v55  ;;  %v4578_v46 = vpop.f32.mrb[94].mxu0  ;;  %4579 = vmatprep.subr.bf16.mxu1 %v3691_v24 }
 0xb80   :  { %v3676_v45 = vadd.f32 %v4578_v46, %v3580_v27  ;;  %v3667_v9 = vpop.f32.mrb[95].mxu0  ;;  %4580 = vmatpush3.bf16.msra.mxu1 %v3691_v24  ;;  %v3685_v49 = vadd.f32 %v3673_v21, %v7336_v50  ;;  %v4720_v50 = vld [vmem:[%s7918_s2 + $0x238] sm:$0xff]  }
 0xb81   :  { %v3668_v60 = vadd.f32 %v3667_v9, %v3572_v13  ;;  %4581 = vmatprep.subr.bf16.mxu1 %v3692_v1  ;;  %v3683_v42 = vadd.f32 %v3665_v15, %v7321_v34  ;;  %v5083_v34 = vmov 0.0  }
 0xb82   :  { %v3686_v25 = vadd.f32 %v3676_v45, %v7326_v51  ;;  %v4718_v51 = vld [vmem:[%s7918_s2 + $0x230] sm:$0xff]   ;;  %4601 = vmatprep.subr.bf16.mxu0 %v5083_v34 }
 0xb83   :  { %v3684_v7 = vadd.f32 %v3668_v60, %v7331_v61  ;;  %v4719_v61 = vld [vmem:[%s7918_s2 + $0x218] sm:$0xff]   ;;  %4602 = vmatpush3.bf16.msra.mxu0 %v4718_v51 }
 0xb84   :  { %4582 = vmatpush3.bf16.msra.mxu1 %v3692_v1  ;;  %v3694_v2 = vpack.c.bf16 %v3686_v25, %v3685_v49  ;;  %4603 = vmatprep.subr.bf16.mxu0 %v5083_v34 }
 0xb85   :  { %v3693_v62 = vpack.c.bf16 %v3684_v7, %v3683_v42 }
 0xb87   :  { %4583 = vmatprep.subr.bf16.mxu1 %v3693_v62  ;;  %4604 = vmatpush3.bf16.msra.mxu0 %v4720_v50 }
 0xb88   :  { %4584 = vmatpush3.bf16.msra.mxu1 %v3693_v62  ;;  %4605 = vmatprep.subr.bf16.mxu0 %v5083_v34 }
 0xb89   :  { %4585 = vmatprep.subr.bf16.mxu1 %v3694_v2 }
 0xb8b   :  { %4606 = vmatpush3.bf16.msra.mxu0 %v4722_v63 }
 0xb8c   :  { %4586 = vmatpush3.bf16.msra.mxu1 %v3694_v2 }
 0xb8d   :  { %4591 = vmatprep.subr.bf16.mxu1 %v5083_v34 }
 0xb8f   :  { %4588 = vmatmul.mubr.msk.bf16.vlgmr.msra.gmra.mrb[96].mxu1 %vm1703_vm4, %v4717_v56  ;;  %vm5084_vm4 = vmmov 0  }
 0xb90   :  { %4592 = vmatpush3.bf16.msra.mxu1 %v4719_v61  ;;  %4607 = vmatprep.mubr.msk.bf16.mxu0 %vm5084_vm4, %v5083_v34 }
 0xb91   :  { %4593 = vmatprep.subr.bf16.mxu1 %v5083_v34  ;;  %4597 = vmatprep.mubr.msk.bf16.mxu1 %vm5084_vm4, %v5083_v34 }
 0xb94   :  { %4594 = vmatpush3.bf16.msra.mxu1 %v4721_v11 }
 0xb95   :  { %4595 = vmatprep.subr.bf16.mxu1 %v5083_v34 }
 0xb98   :  { %4596 = vmatpush3.bf16.msra.mxu1 %v4723_v40 }
 0xb99   :  { %4611 = vmatprep.subr.bf16.mxu1 %v5083_v34 }
 0xc62   :  { %v4589_v57 = vpop.f32.mrb[96].mxu1 }
 0xc63   :  { %v7880_v22 = vadd.f32 %v4589_v57, %v3712_v38  ;;  %v3769_v30 = vpop.f32.mrb[97].mxu1 }
 0xc64   :  { %v7882_v26 = vadd.f32 %v3769_v30, %v3702_v28  ;;  %v4590_v58 = vpop.f32.mrb[98].mxu1 }
 0xc65   :  { %v3790_v6 = vand.u32 2147483647, %v7880_v22  ;;  %v7885_v36 = vadd.f32 %v4590_v58, %v3717_v12  ;;  %v3772_v16 = vpop.f32.mrb[99].mxu1  ;;  %v3786_v21 = vmax.f32 %v7880_v22, 0.0 }
 0xc66   :  { %v3788_v18 = vand.u32 2147483647, %v7882_v26  ;;  %v7888_v39 = vadd.f32 %v3772_v16, %v3707_v35  ;;  %v3784_v45 = vmax.f32 %v7882_v26, 0.0 }
 0xc67   :  { %v3794_v0 = vsub.f32 0.0, %v3790_v6  ;;  %v3791_v17 = vand.u32 2147483647, %v7885_v36  ;;  %v3787_v50 = vmax.f32 %v7885_v36, 0.0  ;;  %v5066_v36 = vld [vmem:[%s7916_s3] sm:$0xff] }
 0xc68   :  { %v3792_v41 = vsub.f32 0.0, %v3788_v18  ;;  %v3789_v3 = vand.u32 2147483647, %v7888_v39  ;;  %v3785_v57 = vmax.f32 %v7888_v39, 0.0  ;;  %4038 = vrot.lane.b32.xlu0 %v5066_v36, %s5085_s22  ;;  %v5067_v18 = vld [vmem:[%s7916_s3 + $0x8] sm:$0xff] }
 0xc69   :  { %v3800_v20 = vmul.f32 1.442695, %v3794_v0  ;;  %v3795_v54 = vsub.f32 0.0, %v3791_v17  ;;  %4040 = vrot.lane.b32.xlu1 %v5067_v18, %s5085_s22 }
 0xc6a   :  { %v3796_v31 = vmul.f32 1.442695, %v3792_v41  ;;  %v3793_v33 = vsub.f32 0.0, %v3789_v3 }
 0xc6b   :  { %4993 = vpow2.f32 %v3800_v20  ;;  %v3802_v53 = vmul.f32 1.442695, %v3795_v54 }
 0xc6c   :  { %4995 = vpow2.f32 %v3796_v31  ;;  %v3798_v43 = vmul.f32 1.442695, %v3793_v33  ;;  %v4724_v33 = vld [vmem:[%s7918_s2 + $0x150] sm:$0xff]  }
 0xc6d   :  { %4997 = vpow2.f32 %v3802_v53 }
 0xc6e   :  { %4999 = vpow2.f32 %v3798_v43 }
 0xc75   :  { %v4994_v10 = vpop.eup %4993 }
 0xc76   :  { %v4996_v29 = vpop.eup %4995  ;;  %v3822_v8 = vadd.f32 1.0, %v4994_v10  ;;  %v3825_v48 = vmul.f32 -0.5, %v4994_v10  ;;  %v3828_v23 = vand.u32 2147483647, %v4994_v10 }
 0xc77   :  { %v4998_v52 = vpop.eup %4997  ;;  %v3804_v5 = vadd.f32 1.0, %v4996_v29  ;;  %v3807_v13 = vmul.f32 -0.5, %v4996_v29  ;;  %v3810_v47 = vand.u32 2147483647, %v4996_v29 }
 0xc78   :  { %v5000_v55 = vpop.eup %4999  ;;  %5001 = vlog2.f32 %v3822_v8  ;;  %v3831_v37 = vadd.f32 1.0, %v4998_v52  ;;  %v3834_v14 = vmul.f32 -0.5, %v4998_v52  ;;  %v3826_v4 = vadd.f32 1.0, %v3825_v48 }
 0xc79   :  { %5003 = vlog2.f32 %v3804_v5  ;;  %v3813_v59 = vadd.f32 1.0, %v5000_v55  ;;  %v3816_v32 = vmul.f32 -0.5, %v5000_v55  ;;  %v3808_v1 = vadd.f32 1.0, %v3807_v13 }
 0xc7a   :  { %5005 = vlog2.f32 %v3831_v37  ;;  %v3835_v19 = vadd.f32 1.0, %v3834_v14  ;;  %v3837_v44 = vand.u32 2147483647, %v4998_v52  ;;  %v3827_v46 = vmul.f32 %v4994_v10, %v3826_v4 }
 0xc7b   :  { %5007 = vlog2.f32 %v3813_v59  ;;  %v3817_v9 = vadd.f32 1.0, %v3816_v32  ;;  %vm3829_vm13 = vcmp.lt.f32.partialorder %v3828_v23, 0.0004427343  ;;  %v3809_v25 = vmul.f32 %v4996_v29, %v3808_v1 }
 0xc7c   :  { %v3819_v42 = vand.u32 2147483647, %v5000_v55  ;;  %vm3811_vm14 = vcmp.lt.f32.partialorder %v3810_v47, 0.0004427343  ;;  %v3836_v62 = vmul.f32 %v4998_v52, %v3835_v19  ;;  %vm3838_vm15 = vcmp.lt.f32.partialorder %v3837_v44, 0.0004427343 }
 0xc7d   :  { %v3818_v40 = vmul.f32 %v5000_v55, %v3817_v9 }
 0xc7e   :  { %vm3820_vm1 = vcmp.lt.f32.partialorder %v3819_v42, 0.0004427343 }
 0xc82   :  { %v5002_v24 = vpop.eup %5001 }
 0xc83   :  { %v5004_v15 = vpop.eup %5003  ;;  %v3824_v27 = vmul.f32 0.6931472, %v5002_v24 }
 0xc84   :  { %v5006_v60 = vpop.eup %5005  ;;  %v3806_v49 = vmul.f32 0.6931472, %v5004_v15 }
 0xc85   :  { %v3830_v7 = vsel %vm3829_vm13, %v3827_v46, %v3824_v27  ;;  %v3833_v2 = vmul.f32 0.6931472, %v5006_v60  ;;  %v5008_v56 = vpop.eup %5007 }
 0xc86   :  { %v3842_v51 = vadd.f32 %v3830_v7, %v3786_v21  ;;  %v3812_v61 = vsel %vm3811_vm14, %v3809_v25, %v3806_v49  ;;  %v3815_v63 = vmul.f32 0.6931472, %v5008_v56 }
 0xc87   :  { %v3839_v11 = vsel %vm3838_vm15, %v3836_v62, %v3833_v2  ;;  %v3840_v28 = vadd.f32 %v3812_v61, %v3784_v45 }
 0xc88   :  { %v3843_v38 = vadd.f32 %v3839_v11, %v3787_v50  ;;  %v3821_v12 = vsel %vm3820_vm1, %v3818_v40, %v3815_v63  ;;  %v4180_v22 = vadd.f32 -0.6931472, %v3842_v51 }
 0xc89   :  { %v3841_v35 = vadd.f32 %v3821_v12, %v3785_v57  ;;  %v4178_v26 = vadd.f32 -0.6931472, %v3840_v28 }
 0xc8a   :  { %v4181_v30 = vadd.f32 -0.6931472, %v3843_v38 }
 0xc8b   :  { %v4179_v6 = vadd.f32 -0.6931472, %v3841_v35 }
 0xc8c   :  { %v3917_v58 = vpack.c.bf16 %v4181_v30, %v4180_v22 }
 0xc8d   :  { %v3848_v16 = vpack.c.bf16 %v4179_v6, %v4178_v26 }
 0xc8e   :  { %4608 = vmatmul.mubr.msk.bf16.vlgmr.msra.gmra.mrb[96].mxu0 %vm1957_vm5, %v3917_v58 }
 0xc8f   :  { %4598 = vmatmul.mubr.msk.bf16.vlgmr.msra.gmra.mrb[100].mxu1 %vm1957_vm5, %v3848_v16  ;;  %vm4046_vm5 = vcmask 15360  }
 0xc90   :  { %4613 = vmatprep.mubr.msk.bf16.mxu1 %vm5084_vm4, %v5083_v34 }
 0xcda   :  { %v4039_v43 = vpop.permute.xlu0 %4038 }
 0xcdb   :  { %v4041_v52 = vpop.permute.xlu1 %4040 }
 0xd61   :  { %v3979_v39 = vpop.f32.mrb[96].mxu0 }
 0xd62   :  { %v4609_v0 = vpop.f32.mrb[97].mxu0  ;;  %v3910_v17 = vpop.f32.mrb[100].mxu1 }
 0xd63   :  { %v3982_v41 = vpop.f32.mrb[98].mxu0  ;;  %v4599_v3 = vpop.f32.mrb[101].mxu1 }
 0xd64   :  { %v4610_v20 = vpop.f32.mrb[99].mxu0  ;;  %v3913_v54 = vpop.f32.mrb[102].mxu1 }
 0xd65   :  { %v3988_v31 = vpack.c.bf16 %v3913_v54, %v3910_v17  ;;  %v4600_v34 = vpop.f32.mrb[103].mxu1 }
 0xd67   :  { %4612 = vmatpush3.bf16.msra.mxu1 %v3988_v31 }
 0xd6a   :  { %4614 = vmatmul.mubr.msk.bf16.vlgmr.msra.gmra.mrb[104].mxu1 %vm234_vm0, %v4724_v33 }
 0xe3d   :  { %v4031_v53 = vpop.f32.mrb[104].mxu1 }
 0xe3e   :  { %v4032_v10 = vadd.f32 %v4031_v53, %v3979_v39  ;;  %v4615_v29 = vpop.f32.mrb[105].mxu1 }
 0xe3f   :  { %v4034_v8 = vpop.f32.mrb[106].mxu1 }
 0xe40   :  { %v4044_v5 = vadd.f32 %v4039_v43, %v4032_v10  ;;  %v4035_v55 = vadd.f32 %v4034_v8, %v3982_v41  ;;  %v4616_v37 = vpop.f32.mrb[107].mxu1 }
 0xe42   :  { %4047 = vst.msk [vmem:[%s7920_s4] sm:$0xff] %vm4046_vm5, %v4044_v5  ;;  %v4045_v59 = vadd.f32 %v4041_v52, %v4035_v55 }
 0xe44   :  { %4048 = vst.msk [vmem:[%s7920_s4 + $0x8] sm:$0xff] %vm4046_vm5, %v4045_v59 }

</bundles_post_ra>
